<compile_context>
chip_gen: v7x
topology: tpu7x:2x2x1
jax: 0.10.0
libtpu: 0.0.40
codegen_flags: <defaults>
</compile_context>

<pallas_src>
import functools
import math

import jax
import jax.numpy as jnp
from jax.experimental import pallas as pl
from jax.experimental.pallas import tpu as pltpu

_MM_DTYPE = jnp.bfloat16       # MXU operand dtype (accumulation is float32)


# ---------------------------------------------------------------------------
# Pallas kernel (entire Net12 forward for one image per grid step)
# ---------------------------------------------------------------------------
def _conv_taps(src_ref, rows_out, w_ref, b_ref, offsets, alpha):
    """Valid conv as shifted-row matmul accumulation + bias + PReLU.

    src_ref : (rows_in, Cin) VMEM ref; row p corresponds to flat position p
              on the ORIGINAL H*W grid.
    w_ref   : (n_taps, Cin, Cout) per-tap weight matrices (bf16).
    offsets : static flat-row offset of each tap on the original grid.
    """
    acc = None
    for t, off in enumerate(offsets):
        xt = src_ref[off:off + rows_out, :].astype(_MM_DTYPE)
        y = jnp.dot(xt, w_ref[t], preferred_element_type=jnp.float32)
        acc = y if acc is None else acc + y
    acc = acc + b_ref[...]                                  # (1, Cout) broadcast
    return jnp.where(acc > 0.0, acc, alpha * acc)           # PReLU (scalar slope)


def _net12_kernel(alpha_ref, x_ref, w1_ref, b1_ref, w2_ref, b2_ref,
                  w3_ref, b3_ref, wh_ref, bh_ref, out_ref,
                  a1_ref, a2_ref, a3_ref, *, W):
    offs1 = tuple(di * W + dj for di in range(3) for dj in range(3))
    offs2 = tuple(2 * o for o in offs1)        # taps dilated by the pool stride
    R1, R2 = a1_ref.shape[0], a2_ref.shape[0]
    R3, R4 = a3_ref.shape[0], out_ref.shape[0]

    # conv1 (3x3, stride 1) + PReLU
    a1_ref[...] = _conv_taps(x_ref, R1, w1_ref, b1_ref, offs1, alpha_ref[0])

    # 2x2 / stride-2 max pool: pooled (h, w) stays at flat slot 2h*W + 2w
    a2_ref[...] = jnp.maximum(
        jnp.maximum(a1_ref[0:R2, :], a1_ref[1:1 + R2, :]),
        jnp.maximum(a1_ref[W:W + R2, :], a1_ref[W + 1:W + 1 + R2, :]))

    # conv2 (3x3) + PReLU and conv3 (3x3) + PReLU on the stride-2 grid
    a3_ref[...] = _conv_taps(a2_ref, R3, w2_ref, b2_ref, offs2, alpha_ref[1])
    x3 = _conv_taps(a3_ref, R4, w3_ref, b3_ref, offs2, alpha_ref[2])

    # fused 1x1 heads: output columns = [cls | bbox0..bbox3]
    y = jnp.dot(x3.astype(_MM_DTYPE), wh_ref[...],
                preferred_element_type=jnp.float32) + bh_ref[...]
    # numerically-stable sigmoid, applied to the cls column only
    z = jnp.exp(-jnp.abs(y))
    sig = jnp.where(y >= 0.0, 1.0 / (1.0 + z), z / (1.0 + z))
    col = jax.lax.broadcasted_iota(jnp.int32, y.shape, 1)
    out_ref[...] = jnp.where(col == 0, sig, y)


# ---------------------------------------------------------------------------
# Host-side wrapper
# ---------------------------------------------------------------------------
def _pack_conv3x3(w_oihw):
    co, ci, kh, kw = w_oihw.shape
    # (co, ci, 3, 3) -> (3, 3, ci, co) -> (9, ci, co), tap index t = 3*di + dj
    return jnp.transpose(w_oihw, (2, 3, 1, 0)).reshape(kh * kw, ci, co).astype(_MM_DTYPE)


def net12_forward(params, x_nchw):
    x = jnp.transpose(x_nchw.astype(jnp.float32), (0, 2, 3, 1))    # NCHW -> NHWC
    N, H, W, cin = x.shape
    assert H >= 12 and W >= 12, "Net12 needs at least 12x12 spatial input"
    HW = H * W
    c1 = params["conv1_w"].shape[0]          # 10
    c2 = params["conv2_w"].shape[0]          # 16

    # Valid-region row counts after each stage; every activation stays on the
    # original H*W flat grid (row p <-> original position (p // W, p % W)),
    # only trailing rows are dropped.  Wrap-around rows are computed but never
    # selected by the final gather.
    R1 = HW - (2 * W + 2)                    # conv1  (3x3, stride 1)
    R2 = R1 - (W + 1)                        # pool   (2x2, stride 2)
    R3 = R2 - (4 * W + 4)                    # conv2  (3x3 on stride-2 grid)
    R4 = R3 - (4 * W + 4)                    # conv3  (3x3 on stride-2 grid)
    Ho, Wo = (H - 2) // 2 - 4, (W - 2) // 2 - 4

    x_flat = x.reshape(N, HW, cin)
    alphas = jnp.stack([params["prelu1"], params["prelu2"],
                        params["prelu3"]]).astype(jnp.float32)
    w1 = _pack_conv3x3(params["conv1_w"]); b1 = params["conv1_b"].reshape(1, -1)
    w2 = _pack_conv3x3(params["conv2_w"]); b2 = params["conv2_b"].reshape(1, -1)
    w3 = _pack_conv3x3(params["conv3_w"]); b3 = params["conv3_b"].reshape(1, -1)
    wh = jnp.concatenate([params["cls_w"].reshape(1, -1),
                          params["bbox_w"].reshape(4, -1)], axis=0)
    wh = jnp.transpose(wh).astype(_MM_DTYPE)                        # (32, 5)
    bh = jnp.concatenate([params["cls_b"], params["bbox_b"]]).reshape(1, -1)
    n_out = wh.shape[1]                                             # 5

    out_full = pl.pallas_call(
        functools.partial(_net12_kernel, W=W),
        out_shape=jax.ShapeDtypeStruct((N, R4, n_out), jnp.float32),
        grid=(N,),
        in_specs=[
            pl.BlockSpec(memory_space=pltpu.MemorySpace.SMEM),      # PReLU slopes
            pl.BlockSpec((None, HW, cin), lambda n: (n, 0, 0)),     # image n
            pl.BlockSpec(w1.shape, lambda n: (0, 0, 0)),
            pl.BlockSpec(b1.shape, lambda n: (0, 0)),
            pl.BlockSpec(w2.shape, lambda n: (0, 0, 0)),
            pl.BlockSpec(b2.shape, lambda n: (0, 0)),
            pl.BlockSpec(w3.shape, lambda n: (0, 0, 0)),
            pl.BlockSpec(b3.shape, lambda n: (0, 0)),
            pl.BlockSpec(wh.shape, lambda n: (0, 0)),
            pl.BlockSpec(bh.shape, lambda n: (0, 0)),
        ],
        out_specs=pl.BlockSpec((None, R4, n_out), lambda n: (n, 0, 0)),
        scratch_shapes=[
            pltpu.VMEM((R1, c1), jnp.float32),      # conv1 + PReLU output
            pltpu.VMEM((R2, c1), jnp.float32),      # pooled output
            pltpu.VMEM((R3, c2), jnp.float32),      # conv2 + PReLU output
        ],
        compiler_params=pltpu.CompilerParams(
            dimension_semantics=("parallel",)),
    )(alphas, x_flat, w1, b1, w2, b2, w3, b3, wh, bh)

    # Gather the valid output positions (original flat slot 2h*W + 2w).
    idx = (2 * jnp.arange(Ho))[:, None] * W + (2 * jnp.arange(Wo))[None, :]
    y = jnp.take(out_full, idx.reshape(-1), axis=1).reshape(N, Ho, Wo, n_out)
    classes = jnp.transpose(y[..., :1], (0, 3, 1, 2))               # (N,1,Ho,Wo)
    bbox = jnp.transpose(y[..., 1:], (0, 3, 1, 2))                  # (N,4,Ho,Wo)
    return classes, bbox


# ---------------------------------------------------------------------------
# Parameters (deterministic xavier_uniform weights, bias = 0.1, PReLU = 0.25)
# ---------------------------------------------------------------------------
def _xavier_uniform(key, shape):
    co, ci, kh, kw = shape
    fan_in = ci * kh * kw
    fan_out = co * kh * kw
    bound = math.sqrt(6.0 / (fan_in + fan_out))
    return jax.random.uniform(key, shape, jnp.float32, -bound, bound)


def init_net12_params(key):
    shapes = {
        "conv1": (10, 3, 3, 3),
        "conv2": (16, 10, 3, 3),
        "conv3": (32, 16, 3, 3),
        "cls":   (1, 32, 1, 1),
        "bbox":  (4, 32, 1, 1),
    }
    keys = jax.random.split(key, len(shapes))
    params = {}
    for k_, (name, shp) in zip(keys, shapes.items()):
        params[name + "_w"] = _xavier_uniform(k_, shp)
        params[name + "_b"] = jnp.full((shp[0],), 0.1, dtype=jnp.float32)
    params["prelu1"] = jnp.float32(0.25)
    params["prelu2"] = jnp.float32(0.25)
    params["prelu3"] = jnp.float32(0.25)
    return params


# ---------------------------------------------------------------------------
# Plain-JAX reference (same semantics) for a correctness cross-check
# ---------------------------------------------------------------------------
def _net12_reference(params, x_nchw):
    def conv(v, w, b):
        y = jax.lax.conv_general_dilated(
            v, w, window_strides=(1, 1), padding="VALID",
            dimension_numbers=("NCHW", "OIHW", "NCHW"))
        return y + b[None, :, None, None]

    def prelu(v, a):
        return jnp.where(v > 0, v, a * v)

    v = prelu(conv(x_nchw.astype(jnp.float32), params["conv1_w"],
                   params["conv1_b"]), params["prelu1"])
    v = jax.lax.reduce_window(v, -jnp.inf, jax.lax.max,
                              (1, 1, 2, 2), (1, 1, 2, 2), "VALID")
    v = prelu(conv(v, params["conv2_w"], params["conv2_b"]), params["prelu2"])
    v = prelu(conv(v, params["conv3_w"], params["conv3_b"]), params["prelu3"])
    classes = jax.nn.sigmoid(conv(v, params["cls_w"], params["cls_b"]))
    bbox = conv(v, params["bbox_w"], params["bbox_b"])
    return classes, bbox


if __name__ == "__main__":
    key = jax.random.PRNGKey(0)
    pkey, xkey = jax.random.split(key)
    params = init_net12_params(pkey)
    # batch=2, channels=3, spatial 16 -> 14 -> 7 -> 5 -> 3 output grid
    x = jax.random.normal(xkey, (2, 3, 16, 16), dtype=jnp.float32)

    classes, bbox = jax.jit(net12_forward)(params, x)
    jax.block_until_ready((classes, bbox))

    assert classes.shape == (2, 1, 3, 3), classes.shape
    assert bbox.shape == (2, 4, 3, 3), bbox.shape
    assert bool(jnp.all((classes >= 0.0) & (classes <= 1.0)))

    # cross-check against the XLA reference (bf16 MXU operands => loose tol)
    ref_classes, ref_bbox = jax.jit(_net12_reference)(params, x)
    assert bool(jnp.allclose(classes, ref_classes, rtol=5e-2, atol=5e-2))
    assert bool(jnp.allclose(bbox, ref_bbox, rtol=5e-2, atol=5e-2))

    print("KERNEL_OK")
</pallas_src>

<mosaic_0001>
module attributes {stable_mosaic.version = 11 : i64} {
  func.func @_net12_kernel(%arg0: i32, %arg1: memref<3xf32, #tpu.memory_space<smem>>, %arg2: memref<1x256x3xf32, #tpu.memory_space<vmem>>, %arg3: memref<9x3x10xbf16, #tpu.memory_space<vmem>>, %arg4: memref<1x10xf32, #tpu.memory_space<vmem>>, %arg5: memref<9x10x16xbf16, #tpu.memory_space<vmem>>, %arg6: memref<1x16xf32, #tpu.memory_space<vmem>>, %arg7: memref<9x16x32xbf16, #tpu.memory_space<vmem>>, %arg8: memref<1x32xf32, #tpu.memory_space<vmem>>, %arg9: memref<32x5xbf16, #tpu.memory_space<vmem>>, %arg10: memref<1x5xf32, #tpu.memory_space<vmem>>, %arg11: memref<1x69x5xf32, #tpu.memory_space<vmem>>, %arg12: memref<222x10xf32, #tpu.memory_space<vmem>>, %arg13: memref<205x10xf32, #tpu.memory_space<vmem>>, %arg14: memref<137x16xf32, #tpu.memory_space<vmem>>) attributes {dimension_semantics = [#tpu.dimension_semantics<parallel>], iteration_bounds = array<i64: 2>, scalar_prefetch = 0 : i64, scratch_operands = 3 : i64, tpu.core_type = #tpu.core_type<tc>, window_params = [{transform_indices = @transform_0, window_bounds = array<i64: 3>}, {transform_indices = @transform_1, window_bounds = array<i64: 1, 256, 3>}, {pipeline_mode = #tpu.pipeline_mode<synchronous>, transform_indices = @transform_2, window_bounds = array<i64: 9, 3, 10>}, {pipeline_mode = #tpu.pipeline_mode<synchronous>, transform_indices = @transform_3, window_bounds = array<i64: 1, 10>}, {pipeline_mode = #tpu.pipeline_mode<synchronous>, transform_indices = @transform_4, window_bounds = array<i64: 9, 10, 16>}, {pipeline_mode = #tpu.pipeline_mode<synchronous>, transform_indices = @transform_5, window_bounds = array<i64: 1, 16>}, {pipeline_mode = #tpu.pipeline_mode<synchronous>, transform_indices = @transform_6, window_bounds = array<i64: 9, 16, 32>}, {pipeline_mode = #tpu.pipeline_mode<synchronous>, transform_indices = @transform_7, window_bounds = array<i64: 1, 32>}, {pipeline_mode = #tpu.pipeline_mode<synchronous>, transform_indices = @transform_8, window_bounds = array<i64: 32, 5>}, {pipeline_mode = #tpu.pipeline_mode<synchronous>, transform_indices = @transform_9, window_bounds = array<i64: 1, 5>}, {transform_indices = @transform_10, window_bounds = array<i64: 1, 69, 5>}]} {
    %c0 = arith.constant 0 : index
    %0 = memref.load %arg1[%c0] : memref<3xf32, #tpu.memory_space<smem>>
    %c0_0 = arith.constant 0 : index
    %c0_1 = arith.constant 0 : index
    %c0_2 = arith.constant 0 : index
    %1 = vector.load %arg2[%c0_0, %c0_1, %c0_2] : memref<1x256x3xf32, #tpu.memory_space<vmem>>, vector<1x222x3xf32>
    %2 = vector.shape_cast %1 : vector<1x222x3xf32> to vector<222x3xf32>
    %3 = arith.truncf %2 : vector<222x3xf32> to vector<222x3xbf16>
    %c0_3 = arith.constant 0 : index
    %c0_4 = arith.constant 0 : index
    %c0_5 = arith.constant 0 : index
    %4 = vector.load %arg3[%c0_3, %c0_4, %c0_5] : memref<9x3x10xbf16, #tpu.memory_space<vmem>>, vector<1x3x10xbf16>
    %5 = vector.shape_cast %4 : vector<1x3x10xbf16> to vector<3x10xbf16>
    %cst = arith.constant dense<0.000000e+00> : vector<222x10xf32>
    %6 = tpu.matmul %3, %5, %cst {dimension_numbers = #tpu.dot_dimension_numbers<[1], [0], [0], [1], [0, 0, 1, 1], [], []>} : vector<222x3xbf16>, vector<3x10xbf16>, vector<222x10xf32> -> vector<222x10xf32>
    %c0_6 = arith.constant 0 : index
    %c1 = arith.constant 1 : index
    %c0_7 = arith.constant 0 : index
    %7 = vector.load %arg2[%c0_6, %c1, %c0_7] : memref<1x256x3xf32, #tpu.memory_space<vmem>>, vector<1x222x3xf32>
    %8 = vector.shape_cast %7 : vector<1x222x3xf32> to vector<222x3xf32>
    %9 = arith.truncf %8 : vector<222x3xf32> to vector<222x3xbf16>
    %c1_8 = arith.constant 1 : index
    %c0_9 = arith.constant 0 : index
    %c0_10 = arith.constant 0 : index
    %10 = vector.load %arg3[%c1_8, %c0_9, %c0_10] : memref<9x3x10xbf16, #tpu.memory_space<vmem>>, vector<1x3x10xbf16>
    %11 = vector.shape_cast %10 : vector<1x3x10xbf16> to vector<3x10xbf16>
    %cst_11 = arith.constant dense<0.000000e+00> : vector<222x10xf32>
    %12 = tpu.matmul %9, %11, %cst_11 {dimension_numbers = #tpu.dot_dimension_numbers<[1], [0], [0], [1], [0, 0, 1, 1], [], []>} : vector<222x3xbf16>, vector<3x10xbf16>, vector<222x10xf32> -> vector<222x10xf32>
    %13 = arith.addf %6, %12 : vector<222x10xf32>
    %c0_12 = arith.constant 0 : index
    %c2 = arith.constant 2 : index
    %c0_13 = arith.constant 0 : index
    %14 = vector.load %arg2[%c0_12, %c2, %c0_13] : memref<1x256x3xf32, #tpu.memory_space<vmem>>, vector<1x222x3xf32>
    %15 = vector.shape_cast %14 : vector<1x222x3xf32> to vector<222x3xf32>
    %16 = arith.truncf %15 : vector<222x3xf32> to vector<222x3xbf16>
    %c2_14 = arith.constant 2 : index
    %c0_15 = arith.constant 0 : index
    %c0_16 = arith.constant 0 : index
    %17 = vector.load %arg3[%c2_14, %c0_15, %c0_16] : memref<9x3x10xbf16, #tpu.memory_space<vmem>>, vector<1x3x10xbf16>
    %18 = vector.shape_cast %17 : vector<1x3x10xbf16> to vector<3x10xbf16>
    %cst_17 = arith.constant dense<0.000000e+00> : vector<222x10xf32>
    %19 = tpu.matmul %16, %18, %cst_17 {dimension_numbers = #tpu.dot_dimension_numbers<[1], [0], [0], [1], [0, 0, 1, 1], [], []>} : vector<222x3xbf16>, vector<3x10xbf16>, vector<222x10xf32> -> vector<222x10xf32>
    %20 = arith.addf %13, %19 : vector<222x10xf32>
    %c0_18 = arith.constant 0 : index
    %c16 = arith.constant 16 : index
    %c0_19 = arith.constant 0 : index
    %21 = vector.load %arg2[%c0_18, %c16, %c0_19] : memref<1x256x3xf32, #tpu.memory_space<vmem>>, vector<1x222x3xf32>
    %22 = vector.shape_cast %21 : vector<1x222x3xf32> to vector<222x3xf32>
    %23 = arith.truncf %22 : vector<222x3xf32> to vector<222x3xbf16>
    %c3 = arith.constant 3 : index
    %c0_20 = arith.constant 0 : index
    %c0_21 = arith.constant 0 : index
    %24 = vector.load %arg3[%c3, %c0_20, %c0_21] : memref<9x3x10xbf16, #tpu.memory_space<vmem>>, vector<1x3x10xbf16>
    %25 = vector.shape_cast %24 : vector<1x3x10xbf16> to vector<3x10xbf16>
    %cst_22 = arith.constant dense<0.000000e+00> : vector<222x10xf32>
    %26 = tpu.matmul %23, %25, %cst_22 {dimension_numbers = #tpu.dot_dimension_numbers<[1], [0], [0], [1], [0, 0, 1, 1], [], []>} : vector<222x3xbf16>, vector<3x10xbf16>, vector<222x10xf32> -> vector<222x10xf32>
    %27 = arith.addf %20, %26 : vector<222x10xf32>
    %c0_23 = arith.constant 0 : index
    %c17 = arith.constant 17 : index
    %c0_24 = arith.constant 0 : index
    %28 = vector.load %arg2[%c0_23, %c17, %c0_24] : memref<1x256x3xf32, #tpu.memory_space<vmem>>, vector<1x222x3xf32>
    %29 = vector.shape_cast %28 : vector<1x222x3xf32> to vector<222x3xf32>
    %30 = arith.truncf %29 : vector<222x3xf32> to vector<222x3xbf16>
    %c4 = arith.constant 4 : index
    %c0_25 = arith.constant 0 : index
    %c0_26 = arith.constant 0 : index
    %31 = vector.load %arg3[%c4, %c0_25, %c0_26] : memref<9x3x10xbf16, #tpu.memory_space<vmem>>, vector<1x3x10xbf16>
    %32 = vector.shape_cast %31 : vector<1x3x10xbf16> to vector<3x10xbf16>
    %cst_27 = arith.constant dense<0.000000e+00> : vector<222x10xf32>
    %33 = tpu.matmul %30, %32, %cst_27 {dimension_numbers = #tpu.dot_dimension_numbers<[1], [0], [0], [1], [0, 0, 1, 1], [], []>} : vector<222x3xbf16>, vector<3x10xbf16>, vector<222x10xf32> -> vector<222x10xf32>
    %34 = arith.addf %27, %33 : vector<222x10xf32>
    %c0_28 = arith.constant 0 : index
    %c18 = arith.constant 18 : index
    %c0_29 = arith.constant 0 : index
    %35 = vector.load %arg2[%c0_28, %c18, %c0_29] : memref<1x256x3xf32, #tpu.memory_space<vmem>>, vector<1x222x3xf32>
    %36 = vector.shape_cast %35 : vector<1x222x3xf32> to vector<222x3xf32>
    %37 = arith.truncf %36 : vector<222x3xf32> to vector<222x3xbf16>
    %c5 = arith.constant 5 : index
    %c0_30 = arith.constant 0 : index
    %c0_31 = arith.constant 0 : index
    %38 = vector.load %arg3[%c5, %c0_30, %c0_31] : memref<9x3x10xbf16, #tpu.memory_space<vmem>>, vector<1x3x10xbf16>
    %39 = vector.shape_cast %38 : vector<1x3x10xbf16> to vector<3x10xbf16>
    %cst_32 = arith.constant dense<0.000000e+00> : vector<222x10xf32>
    %40 = tpu.matmul %37, %39, %cst_32 {dimension_numbers = #tpu.dot_dimension_numbers<[1], [0], [0], [1], [0, 0, 1, 1], [], []>} : vector<222x3xbf16>, vector<3x10xbf16>, vector<222x10xf32> -> vector<222x10xf32>
    %41 = arith.addf %34, %40 : vector<222x10xf32>
    %c0_33 = arith.constant 0 : index
    %c32 = arith.constant 32 : index
    %c0_34 = arith.constant 0 : index
    %42 = vector.load %arg2[%c0_33, %c32, %c0_34] : memref<1x256x3xf32, #tpu.memory_space<vmem>>, vector<1x222x3xf32>
    %43 = vector.shape_cast %42 : vector<1x222x3xf32> to vector<222x3xf32>
    %44 = arith.truncf %43 : vector<222x3xf32> to vector<222x3xbf16>
    %c6 = arith.constant 6 : index
    %c0_35 = arith.constant 0 : index
    %c0_36 = arith.constant 0 : index
    %45 = vector.load %arg3[%c6, %c0_35, %c0_36] : memref<9x3x10xbf16, #tpu.memory_space<vmem>>, vector<1x3x10xbf16>
    %46 = vector.shape_cast %45 : vector<1x3x10xbf16> to vector<3x10xbf16>
    %cst_37 = arith.constant dense<0.000000e+00> : vector<222x10xf32>
    %47 = tpu.matmul %44, %46, %cst_37 {dimension_numbers = #tpu.dot_dimension_numbers<[1], [0], [0], [1], [0, 0, 1, 1], [], []>} : vector<222x3xbf16>, vector<3x10xbf16>, vector<222x10xf32> -> vector<222x10xf32>
    %48 = arith.addf %41, %47 : vector<222x10xf32>
    %c0_38 = arith.constant 0 : index
    %c33 = arith.constant 33 : index
    %c0_39 = arith.constant 0 : index
    %49 = vector.load %arg2[%c0_38, %c33, %c0_39] : memref<1x256x3xf32, #tpu.memory_space<vmem>>, vector<1x222x3xf32>
    %50 = vector.shape_cast %49 : vector<1x222x3xf32> to vector<222x3xf32>
    %51 = arith.truncf %50 : vector<222x3xf32> to vector<222x3xbf16>
    %c7 = arith.constant 7 : index
    %c0_40 = arith.constant 0 : index
    %c0_41 = arith.constant 0 : index
    %52 = vector.load %arg3[%c7, %c0_40, %c0_41] : memref<9x3x10xbf16, #tpu.memory_space<vmem>>, vector<1x3x10xbf16>
    %53 = vector.shape_cast %52 : vector<1x3x10xbf16> to vector<3x10xbf16>
    %cst_42 = arith.constant dense<0.000000e+00> : vector<222x10xf32>
    %54 = tpu.matmul %51, %53, %cst_42 {dimension_numbers = #tpu.dot_dimension_numbers<[1], [0], [0], [1], [0, 0, 1, 1], [], []>} : vector<222x3xbf16>, vector<3x10xbf16>, vector<222x10xf32> -> vector<222x10xf32>
    %55 = arith.addf %48, %54 : vector<222x10xf32>
    %c0_43 = arith.constant 0 : index
    %c34 = arith.constant 34 : index
    %c0_44 = arith.constant 0 : index
    %56 = vector.load %arg2[%c0_43, %c34, %c0_44] : memref<1x256x3xf32, #tpu.memory_space<vmem>>, vector<1x222x3xf32>
    %57 = vector.shape_cast %56 : vector<1x222x3xf32> to vector<222x3xf32>
    %58 = arith.truncf %57 : vector<222x3xf32> to vector<222x3xbf16>
    %c8 = arith.constant 8 : index
    %c0_45 = arith.constant 0 : index
    %c0_46 = arith.constant 0 : index
    %59 = vector.load %arg3[%c8, %c0_45, %c0_46] : memref<9x3x10xbf16, #tpu.memory_space<vmem>>, vector<1x3x10xbf16>
    %60 = vector.shape_cast %59 : vector<1x3x10xbf16> to vector<3x10xbf16>
    %cst_47 = arith.constant dense<0.000000e+00> : vector<222x10xf32>
    %61 = tpu.matmul %58, %60, %cst_47 {dimension_numbers = #tpu.dot_dimension_numbers<[1], [0], [0], [1], [0, 0, 1, 1], [], []>} : vector<222x3xbf16>, vector<3x10xbf16>, vector<222x10xf32> -> vector<222x10xf32>
    %62 = arith.addf %55, %61 : vector<222x10xf32>
    %c0_48 = arith.constant 0 : index
    %c0_49 = arith.constant 0 : index
    %63 = vector.load %arg4[%c0_48, %c0_49] : memref<1x10xf32, #tpu.memory_space<vmem>>, vector<1x10xf32>
    %64 = vector.broadcast %63 : vector<1x10xf32> to vector<222x10xf32>
    %65 = arith.addf %62, %64 : vector<222x10xf32>
    %cst_50 = arith.constant 0.000000e+00 : f32
    %66 = vector.broadcast %cst_50 : f32 to vector<222x10xf32>
    %67 = arith.cmpf ogt, %65, %66 : vector<222x10xf32>
    %68 = vector.broadcast %0 : f32 to vector<222x10xf32>
    %69 = arith.mulf %68, %65 : vector<222x10xf32>
    %70 = arith.select %67, %65, %69 : vector<222x10xi1>, vector<222x10xf32>
    %c0_51 = arith.constant 0 : index
    %c0_52 = arith.constant 0 : index
    %71 = vector.load %arg12[%c0_51, %c0_52] : memref<222x10xf32, #tpu.memory_space<vmem>>, vector<222x10xf32>
    tpu.vector_store %arg12[%c0_51, %c0_52], %70 {strides = array<i32>} : memref<222x10xf32, #tpu.memory_space<vmem>>, vector<222x10xf32>,
    %c0_53 = arith.constant 0 : index
    %c0_54 = arith.constant 0 : index
    %72 = vector.load %arg12[%c0_53, %c0_54] : memref<222x10xf32, #tpu.memory_space<vmem>>, vector<205x10xf32>
    %c1_55 = arith.constant 1 : index
    %c0_56 = arith.constant 0 : index
    %73 = vector.load %arg12[%c1_55, %c0_56] : memref<222x10xf32, #tpu.memory_space<vmem>>, vector<205x10xf32>
    %74 = arith.maximumf %72, %73 : vector<205x10xf32>
    %c16_57 = arith.constant 16 : index
    %c0_58 = arith.constant 0 : index
    %75 = vector.load %arg12[%c16_57, %c0_58] : memref<222x10xf32, #tpu.memory_space<vmem>>, vector<205x10xf32>
    %c17_59 = arith.constant 17 : index
    %c0_60 = arith.constant 0 : index
    %76 = vector.load %arg12[%c17_59, %c0_60] : memref<222x10xf32, #tpu.memory_space<vmem>>, vector<205x10xf32>
    %77 = arith.maximumf %75, %76 : vector<205x10xf32>
    %78 = arith.maximumf %74, %77 : vector<205x10xf32>
    %c0_61 = arith.constant 0 : index
    %c0_62 = arith.constant 0 : index
    %79 = vector.load %arg13[%c0_61, %c0_62] : memref<205x10xf32, #tpu.memory_space<vmem>>, vector<205x10xf32>
    tpu.vector_store %arg13[%c0_61, %c0_62], %78 {strides = array<i32>} : memref<205x10xf32, #tpu.memory_space<vmem>>, vector<205x10xf32>,
    %c1_63 = arith.constant 1 : index
    %80 = memref.load %arg1[%c1_63] : memref<3xf32, #tpu.memory_space<smem>>
    %c0_64 = arith.constant 0 : index
    %c0_65 = arith.constant 0 : index
    %81 = vector.load %arg13[%c0_64, %c0_65] : memref<205x10xf32, #tpu.memory_space<vmem>>, vector<137x10xf32>
    %82 = arith.truncf %81 : vector<137x10xf32> to vector<137x10xbf16>
    %c0_66 = arith.constant 0 : index
    %c0_67 = arith.constant 0 : index
    %c0_68 = arith.constant 0 : index
    %83 = vector.load %arg5[%c0_66, %c0_67, %c0_68] : memref<9x10x16xbf16, #tpu.memory_space<vmem>>, vector<1x10x16xbf16>
    %84 = vector.shape_cast %83 : vector<1x10x16xbf16> to vector<10x16xbf16>
    %cst_69 = arith.constant dense<0.000000e+00> : vector<137x16xf32>
    %85 = tpu.matmul %82, %84, %cst_69 {dimension_numbers = #tpu.dot_dimension_numbers<[1], [0], [0], [1], [0, 0, 1, 1], [], []>} : vector<137x10xbf16>, vector<10x16xbf16>, vector<137x16xf32> -> vector<137x16xf32>
    %c2_70 = arith.constant 2 : index
    %c0_71 = arith.constant 0 : index
    %86 = vector.load %arg13[%c2_70, %c0_71] : memref<205x10xf32, #tpu.memory_space<vmem>>, vector<137x10xf32>
    %87 = arith.truncf %86 : vector<137x10xf32> to vector<137x10xbf16>
    %c1_72 = arith.constant 1 : index
    %c0_73 = arith.constant 0 : index
    %c0_74 = arith.constant 0 : index
    %88 = vector.load %arg5[%c1_72, %c0_73, %c0_74] : memref<9x10x16xbf16, #tpu.memory_space<vmem>>, vector<1x10x16xbf16>
    %89 = vector.shape_cast %88 : vector<1x10x16xbf16> to vector<10x16xbf16>
    %cst_75 = arith.constant dense<0.000000e+00> : vector<137x16xf32>
    %90 = tpu.matmul %87, %89, %cst_75 {dimension_numbers = #tpu.dot_dimension_numbers<[1], [0], [0], [1], [0, 0, 1, 1], [], []>} : vector<137x10xbf16>, vector<10x16xbf16>, vector<137x16xf32> -> vector<137x16xf32>
    %91 = arith.addf %85, %90 : vector<137x16xf32>
    %c4_76 = arith.constant 4 : index
    %c0_77 = arith.constant 0 : index
    %92 = vector.load %arg13[%c4_76, %c0_77] : memref<205x10xf32, #tpu.memory_space<vmem>>, vector<137x10xf32>
    %93 = arith.truncf %92 : vector<137x10xf32> to vector<137x10xbf16>
    %c2_78 = arith.constant 2 : index
    %c0_79 = arith.constant 0 : index
    %c0_80 = arith.constant 0 : index
    %94 = vector.load %arg5[%c2_78, %c0_79, %c0_80] : memref<9x10x16xbf16, #tpu.memory_space<vmem>>, vector<1x10x16xbf16>
    %95 = vector.shape_cast %94 : vector<1x10x16xbf16> to vector<10x16xbf16>
    %cst_81 = arith.constant dense<0.000000e+00> : vector<137x16xf32>
    %96 = tpu.matmul %93, %95, %cst_81 {dimension_numbers = #tpu.dot_dimension_numbers<[1], [0], [0], [1], [0, 0, 1, 1], [], []>} : vector<137x10xbf16>, vector<10x16xbf16>, vector<137x16xf32> -> vector<137x16xf32>
    %97 = arith.addf %91, %96 : vector<137x16xf32>
    %c32_82 = arith.constant 32 : index
    %c0_83 = arith.constant 0 : index
    %98 = vector.load %arg13[%c32_82, %c0_83] : memref<205x10xf32, #tpu.memory_space<vmem>>, vector<137x10xf32>
    %99 = arith.truncf %98 : vector<137x10xf32> to vector<137x10xbf16>
    %c3_84 = arith.constant 3 : index
    %c0_85 = arith.constant 0 : index
    %c0_86 = arith.constant 0 : index
    %100 = vector.load %arg5[%c3_84, %c0_85, %c0_86] : memref<9x10x16xbf16, #tpu.memory_space<vmem>>, vector<1x10x16xbf16>
    %101 = vector.shape_cast %100 : vector<1x10x16xbf16> to vector<10x16xbf16>
    %cst_87 = arith.constant dense<0.000000e+00> : vector<137x16xf32>
    %102 = tpu.matmul %99, %101, %cst_87 {dimension_numbers = #tpu.dot_dimension_numbers<[1], [0], [0], [1], [0, 0, 1, 1], [], []>} : vector<137x10xbf16>, vector<10x16xbf16>, vector<137x16xf32> -> vector<137x16xf32>
    %103 = arith.addf %97, %102 : vector<137x16xf32>
    %c34_88 = arith.constant 34 : index
    %c0_89 = arith.constant 0 : index
    %104 = vector.load %arg13[%c34_88, %c0_89] : memref<205x10xf32, #tpu.memory_space<vmem>>, vector<137x10xf32>
    %105 = arith.truncf %104 : vector<137x10xf32> to vector<137x10xbf16>
    %c4_90 = arith.constant 4 : index
    %c0_91 = arith.constant 0 : index
    %c0_92 = arith.constant 0 : index
    %106 = vector.load %arg5[%c4_90, %c0_91, %c0_92] : memref<9x10x16xbf16, #tpu.memory_space<vmem>>, vector<1x10x16xbf16>
    %107 = vector.shape_cast %106 : vector<1x10x16xbf16> to vector<10x16xbf16>
    %cst_93 = arith.constant dense<0.000000e+00> : vector<137x16xf32>
    %108 = tpu.matmul %105, %107, %cst_93 {dimension_numbers = #tpu.dot_dimension_numbers<[1], [0], [0], [1], [0, 0, 1, 1], [], []>} : vector<137x10xbf16>, vector<10x16xbf16>, vector<137x16xf32> -> vector<137x16xf32>
    %109 = arith.addf %103, %108 : vector<137x16xf32>
    %c36 = arith.constant 36 : index
    %c0_94 = arith.constant 0 : index
    %110 = vector.load %arg13[%c36, %c0_94] : memref<205x10xf32, #tpu.memory_space<vmem>>, vector<137x10xf32>
    %111 = arith.truncf %110 : vector<137x10xf32> to vector<137x10xbf16>
    %c5_95 = arith.constant 5 : index
    %c0_96 = arith.constant 0 : index
    %c0_97 = arith.constant 0 : index
    %112 = vector.load %arg5[%c5_95, %c0_96, %c0_97] : memref<9x10x16xbf16, #tpu.memory_space<vmem>>, vector<1x10x16xbf16>
    %113 = vector.shape_cast %112 : vector<1x10x16xbf16> to vector<10x16xbf16>
    %cst_98 = arith.constant dense<0.000000e+00> : vector<137x16xf32>
    %114 = tpu.matmul %111, %113, %cst_98 {dimension_numbers = #tpu.dot_dimension_numbers<[1], [0], [0], [1], [0, 0, 1, 1], [], []>} : vector<137x10xbf16>, vector<10x16xbf16>, vector<137x16xf32> -> vector<137x16xf32>
    %115 = arith.addf %109, %114 : vector<137x16xf32>
    %c64 = arith.constant 64 : index
    %c0_99 = arith.constant 0 : index
    %116 = vector.load %arg13[%c64, %c0_99] : memref<205x10xf32, #tpu.memory_space<vmem>>, vector<137x10xf32>
    %117 = arith.truncf %116 : vector<137x10xf32> to vector<137x10xbf16>
    %c6_100 = arith.constant 6 : index
    %c0_101 = arith.constant 0 : index
    %c0_102 = arith.constant 0 : index
    %118 = vector.load %arg5[%c6_100, %c0_101, %c0_102] : memref<9x10x16xbf16, #tpu.memory_space<vmem>>, vector<1x10x16xbf16>
    %119 = vector.shape_cast %118 : vector<1x10x16xbf16> to vector<10x16xbf16>
    %cst_103 = arith.constant dense<0.000000e+00> : vector<137x16xf32>
    %120 = tpu.matmul %117, %119, %cst_103 {dimension_numbers = #tpu.dot_dimension_numbers<[1], [0], [0], [1], [0, 0, 1, 1], [], []>} : vector<137x10xbf16>, vector<10x16xbf16>, vector<137x16xf32> -> vector<137x16xf32>
    %121 = arith.addf %115, %120 : vector<137x16xf32>
    %c66 = arith.constant 66 : index
    %c0_104 = arith.constant 0 : index
    %122 = vector.load %arg13[%c66, %c0_104] : memref<205x10xf32, #tpu.memory_space<vmem>>, vector<137x10xf32>
    %123 = arith.truncf %122 : vector<137x10xf32> to vector<137x10xbf16>
    %c7_105 = arith.constant 7 : index
    %c0_106 = arith.constant 0 : index
    %c0_107 = arith.constant 0 : index
    %124 = vector.load %arg5[%c7_105, %c0_106, %c0_107] : memref<9x10x16xbf16, #tpu.memory_space<vmem>>, vector<1x10x16xbf16>
    %125 = vector.shape_cast %124 : vector<1x10x16xbf16> to vector<10x16xbf16>
    %cst_108 = arith.constant dense<0.000000e+00> : vector<137x16xf32>
    %126 = tpu.matmul %123, %125, %cst_108 {dimension_numbers = #tpu.dot_dimension_numbers<[1], [0], [0], [1], [0, 0, 1, 1], [], []>} : vector<137x10xbf16>, vector<10x16xbf16>, vector<137x16xf32> -> vector<137x16xf32>
    %127 = arith.addf %121, %126 : vector<137x16xf32>
    %c68 = arith.constant 68 : index
    %c0_109 = arith.constant 0 : index
    %128 = vector.load %arg13[%c68, %c0_109] : memref<205x10xf32, #tpu.memory_space<vmem>>, vector<137x10xf32>
    %129 = arith.truncf %128 : vector<137x10xf32> to vector<137x10xbf16>
    %c8_110 = arith.constant 8 : index
    %c0_111 = arith.constant 0 : index
    %c0_112 = arith.constant 0 : index
    %130 = vector.load %arg5[%c8_110, %c0_111, %c0_112] : memref<9x10x16xbf16, #tpu.memory_space<vmem>>, vector<1x10x16xbf16>
    %131 = vector.shape_cast %130 : vector<1x10x16xbf16> to vector<10x16xbf16>
    %cst_113 = arith.constant dense<0.000000e+00> : vector<137x16xf32>
    %132 = tpu.matmul %129, %131, %cst_113 {dimension_numbers = #tpu.dot_dimension_numbers<[1], [0], [0], [1], [0, 0, 1, 1], [], []>} : vector<137x10xbf16>, vector<10x16xbf16>, vector<137x16xf32> -> vector<137x16xf32>
    %133 = arith.addf %127, %132 : vector<137x16xf32>
    %c0_114 = arith.constant 0 : index
    %c0_115 = arith.constant 0 : index
    %134 = vector.load %arg6[%c0_114, %c0_115] : memref<1x16xf32, #tpu.memory_space<vmem>>, vector<1x16xf32>
    %135 = vector.broadcast %134 : vector<1x16xf32> to vector<137x16xf32>
    %136 = arith.addf %133, %135 : vector<137x16xf32>
    %cst_116 = arith.constant 0.000000e+00 : f32
    %137 = vector.broadcast %cst_116 : f32 to vector<137x16xf32>
    %138 = arith.cmpf ogt, %136, %137 : vector<137x16xf32>
    %139 = vector.broadcast %80 : f32 to vector<137x16xf32>
    %140 = arith.mulf %139, %136 : vector<137x16xf32>
    %141 = arith.select %138, %136, %140 : vector<137x16xi1>, vector<137x16xf32>
    %c0_117 = arith.constant 0 : index
    %c0_118 = arith.constant 0 : index
    %142 = vector.load %arg14[%c0_117, %c0_118] : memref<137x16xf32, #tpu.memory_space<vmem>>, vector<137x16xf32>
    tpu.vector_store %arg14[%c0_117, %c0_118], %141 {strides = array<i32>} : memref<137x16xf32, #tpu.memory_space<vmem>>, vector<137x16xf32>,
    %c2_119 = arith.constant 2 : index
    %143 = memref.load %arg1[%c2_119] : memref<3xf32, #tpu.memory_space<smem>>
    %c0_120 = arith.constant 0 : index
    %c0_121 = arith.constant 0 : index
    %144 = vector.load %arg14[%c0_120, %c0_121] : memref<137x16xf32, #tpu.memory_space<vmem>>, vector<69x16xf32>
    %145 = arith.truncf %144 : vector<69x16xf32> to vector<69x16xbf16>
    %c0_122 = arith.constant 0 : index
    %c0_123 = arith.constant 0 : index
    %c0_124 = arith.constant 0 : index
    %146 = vector.load %arg7[%c0_122, %c0_123, %c0_124] : memref<9x16x32xbf16, #tpu.memory_space<vmem>>, vector<1x16x32xbf16>
    %147 = vector.shape_cast %146 : vector<1x16x32xbf16> to vector<16x32xbf16>
    %cst_125 = arith.constant dense<0.000000e+00> : vector<69x32xf32>
    %148 = tpu.matmul %145, %147, %cst_125 {dimension_numbers = #tpu.dot_dimension_numbers<[1], [0], [0], [1], [0, 0, 1, 1], [], []>} : vector<69x16xbf16>, vector<16x32xbf16>, vector<69x32xf32> -> vector<69x32xf32>
    %c2_126 = arith.constant 2 : index
    %c0_127 = arith.constant 0 : index
    %149 = vector.load %arg14[%c2_126, %c0_127] : memref<137x16xf32, #tpu.memory_space<vmem>>, vector<69x16xf32>
    %150 = arith.truncf %149 : vector<69x16xf32> to vector<69x16xbf16>
    %c1_128 = arith.constant 1 : index
    %c0_129 = arith.constant 0 : index
    %c0_130 = arith.constant 0 : index
    %151 = vector.load %arg7[%c1_128, %c0_129, %c0_130] : memref<9x16x32xbf16, #tpu.memory_space<vmem>>, vector<1x16x32xbf16>
    %152 = vector.shape_cast %151 : vector<1x16x32xbf16> to vector<16x32xbf16>
    %cst_131 = arith.constant dense<0.000000e+00> : vector<69x32xf32>
    %153 = tpu.matmul %150, %152, %cst_131 {dimension_numbers = #tpu.dot_dimension_numbers<[1], [0], [0], [1], [0, 0, 1, 1], [], []>} : vector<69x16xbf16>, vector<16x32xbf16>, vector<69x32xf32> -> vector<69x32xf32>
    %154 = arith.addf %148, %153 : vector<69x32xf32>
    %c4_132 = arith.constant 4 : index
    %c0_133 = arith.constant 0 : index
    %155 = vector.load %arg14[%c4_132, %c0_133] : memref<137x16xf32, #tpu.memory_space<vmem>>, vector<69x16xf32>
    %156 = arith.truncf %155 : vector<69x16xf32> to vector<69x16xbf16>
    %c2_134 = arith.constant 2 : index
    %c0_135 = arith.constant 0 : index
    %c0_136 = arith.constant 0 : index
    %157 = vector.load %arg7[%c2_134, %c0_135, %c0_136] : memref<9x16x32xbf16, #tpu.memory_space<vmem>>, vector<1x16x32xbf16>
    %158 = vector.shape_cast %157 : vector<1x16x32xbf16> to vector<16x32xbf16>
    %cst_137 = arith.constant dense<0.000000e+00> : vector<69x32xf32>
    %159 = tpu.matmul %156, %158, %cst_137 {dimension_numbers = #tpu.dot_dimension_numbers<[1], [0], [0], [1], [0, 0, 1, 1], [], []>} : vector<69x16xbf16>, vector<16x32xbf16>, vector<69x32xf32> -> vector<69x32xf32>
    %160 = arith.addf %154, %159 : vector<69x32xf32>
    %c32_138 = arith.constant 32 : index
    %c0_139 = arith.constant 0 : index
    %161 = vector.load %arg14[%c32_138, %c0_139] : memref<137x16xf32, #tpu.memory_space<vmem>>, vector<69x16xf32>
    %162 = arith.truncf %161 : vector<69x16xf32> to vector<69x16xbf16>
    %c3_140 = arith.constant 3 : index
    %c0_141 = arith.constant 0 : index
    %c0_142 = arith.constant 0 : index
    %163 = vector.load %arg7[%c3_140, %c0_141, %c0_142] : memref<9x16x32xbf16, #tpu.memory_space<vmem>>, vector<1x16x32xbf16>
    %164 = vector.shape_cast %163 : vector<1x16x32xbf16> to vector<16x32xbf16>
    %cst_143 = arith.constant dense<0.000000e+00> : vector<69x32xf32>
    %165 = tpu.matmul %162, %164, %cst_143 {dimension_numbers = #tpu.dot_dimension_numbers<[1], [0], [0], [1], [0, 0, 1, 1], [], []>} : vector<69x16xbf16>, vector<16x32xbf16>, vector<69x32xf32> -> vector<69x32xf32>
    %166 = arith.addf %160, %165 : vector<69x32xf32>
    %c34_144 = arith.constant 34 : index
    %c0_145 = arith.constant 0 : index
    %167 = vector.load %arg14[%c34_144, %c0_145] : memref<137x16xf32, #tpu.memory_space<vmem>>, vector<69x16xf32>
    %168 = arith.truncf %167 : vector<69x16xf32> to vector<69x16xbf16>
    %c4_146 = arith.constant 4 : index
    %c0_147 = arith.constant 0 : index
    %c0_148 = arith.constant 0 : index
    %169 = vector.load %arg7[%c4_146, %c0_147, %c0_148] : memref<9x16x32xbf16, #tpu.memory_space<vmem>>, vector<1x16x32xbf16>
    %170 = vector.shape_cast %169 : vector<1x16x32xbf16> to vector<16x32xbf16>
    %cst_149 = arith.constant dense<0.000000e+00> : vector<69x32xf32>
    %171 = tpu.matmul %168, %170, %cst_149 {dimension_numbers = #tpu.dot_dimension_numbers<[1], [0], [0], [1], [0, 0, 1, 1], [], []>} : vector<69x16xbf16>, vector<16x32xbf16>, vector<69x32xf32> -> vector<69x32xf32>
    %172 = arith.addf %166, %171 : vector<69x32xf32>
    %c36_150 = arith.constant 36 : index
    %c0_151 = arith.constant 0 : index
    %173 = vector.load %arg14[%c36_150, %c0_151] : memref<137x16xf32, #tpu.memory_space<vmem>>, vector<69x16xf32>
    %174 = arith.truncf %173 : vector<69x16xf32> to vector<69x16xbf16>
    %c5_152 = arith.constant 5 : index
    %c0_153 = arith.constant 0 : index
    %c0_154 = arith.constant 0 : index
    %175 = vector.load %arg7[%c5_152, %c0_153, %c0_154] : memref<9x16x32xbf16, #tpu.memory_space<vmem>>, vector<1x16x32xbf16>
    %176 = vector.shape_cast %175 : vector<1x16x32xbf16> to vector<16x32xbf16>
    %cst_155 = arith.constant dense<0.000000e+00> : vector<69x32xf32>
    %177 = tpu.matmul %174, %176, %cst_155 {dimension_numbers = #tpu.dot_dimension_numbers<[1], [0], [0], [1], [0, 0, 1, 1], [], []>} : vector<69x16xbf16>, vector<16x32xbf16>, vector<69x32xf32> -> vector<69x32xf32>
    %178 = arith.addf %172, %177 : vector<69x32xf32>
    %c64_156 = arith.constant 64 : index
    %c0_157 = arith.constant 0 : index
    %179 = vector.load %arg14[%c64_156, %c0_157] : memref<137x16xf32, #tpu.memory_space<vmem>>, vector<69x16xf32>
    %180 = arith.truncf %179 : vector<69x16xf32> to vector<69x16xbf16>
    %c6_158 = arith.constant 6 : index
    %c0_159 = arith.constant 0 : index
    %c0_160 = arith.constant 0 : index
    %181 = vector.load %arg7[%c6_158, %c0_159, %c0_160] : memref<9x16x32xbf16, #tpu.memory_space<vmem>>, vector<1x16x32xbf16>
    %182 = vector.shape_cast %181 : vector<1x16x32xbf16> to vector<16x32xbf16>
    %cst_161 = arith.constant dense<0.000000e+00> : vector<69x32xf32>
    %183 = tpu.matmul %180, %182, %cst_161 {dimension_numbers = #tpu.dot_dimension_numbers<[1], [0], [0], [1], [0, 0, 1, 1], [], []>} : vector<69x16xbf16>, vector<16x32xbf16>, vector<69x32xf32> -> vector<69x32xf32>
    %184 = arith.addf %178, %183 : vector<69x32xf32>
    %c66_162 = arith.constant 66 : index
    %c0_163 = arith.constant 0 : index
    %185 = vector.load %arg14[%c66_162, %c0_163] : memref<137x16xf32, #tpu.memory_space<vmem>>, vector<69x16xf32>
    %186 = arith.truncf %185 : vector<69x16xf32> to vector<69x16xbf16>
    %c7_164 = arith.constant 7 : index
    %c0_165 = arith.constant 0 : index
    %c0_166 = arith.constant 0 : index
    %187 = vector.load %arg7[%c7_164, %c0_165, %c0_166] : memref<9x16x32xbf16, #tpu.memory_space<vmem>>, vector<1x16x32xbf16>
    %188 = vector.shape_cast %187 : vector<1x16x32xbf16> to vector<16x32xbf16>
    %cst_167 = arith.constant dense<0.000000e+00> : vector<69x32xf32>
    %189 = tpu.matmul %186, %188, %cst_167 {dimension_numbers = #tpu.dot_dimension_numbers<[1], [0], [0], [1], [0, 0, 1, 1], [], []>} : vector<69x16xbf16>, vector<16x32xbf16>, vector<69x32xf32> -> vector<69x32xf32>
    %190 = arith.addf %184, %189 : vector<69x32xf32>
    %c68_168 = arith.constant 68 : index
    %c0_169 = arith.constant 0 : index
    %191 = vector.load %arg14[%c68_168, %c0_169] : memref<137x16xf32, #tpu.memory_space<vmem>>, vector<69x16xf32>
    %192 = arith.truncf %191 : vector<69x16xf32> to vector<69x16xbf16>
    %c8_170 = arith.constant 8 : index
    %c0_171 = arith.constant 0 : index
    %c0_172 = arith.constant 0 : index
    %193 = vector.load %arg7[%c8_170, %c0_171, %c0_172] : memref<9x16x32xbf16, #tpu.memory_space<vmem>>, vector<1x16x32xbf16>
    %194 = vector.shape_cast %193 : vector<1x16x32xbf16> to vector<16x32xbf16>
    %cst_173 = arith.constant dense<0.000000e+00> : vector<69x32xf32>
    %195 = tpu.matmul %192, %194, %cst_173 {dimension_numbers = #tpu.dot_dimension_numbers<[1], [0], [0], [1], [0, 0, 1, 1], [], []>} : vector<69x16xbf16>, vector<16x32xbf16>, vector<69x32xf32> -> vector<69x32xf32>
    %196 = arith.addf %190, %195 : vector<69x32xf32>
    %c0_174 = arith.constant 0 : index
    %c0_175 = arith.constant 0 : index
    %197 = vector.load %arg8[%c0_174, %c0_175] : memref<1x32xf32, #tpu.memory_space<vmem>>, vector<1x32xf32>
    %198 = vector.broadcast %197 : vector<1x32xf32> to vector<69x32xf32>
    %199 = arith.addf %196, %198 : vector<69x32xf32>
    %cst_176 = arith.constant 0.000000e+00 : f32
    %200 = vector.broadcast %cst_176 : f32 to vector<69x32xf32>
    %201 = arith.cmpf ogt, %199, %200 : vector<69x32xf32>
    %202 = vector.broadcast %143 : f32 to vector<69x32xf32>
    %203 = arith.mulf %202, %199 : vector<69x32xf32>
    %204 = arith.select %201, %199, %203 : vector<69x32xi1>, vector<69x32xf32>
    %205 = arith.truncf %204 : vector<69x32xf32> to vector<69x32xbf16>
    %c0_177 = arith.constant 0 : index
    %c0_178 = arith.constant 0 : index
    %206 = vector.load %arg9[%c0_177, %c0_178] : memref<32x5xbf16, #tpu.memory_space<vmem>>, vector<32x5xbf16>
    %cst_179 = arith.constant dense<0.000000e+00> : vector<69x5xf32>
    %207 = tpu.matmul %205, %206, %cst_179 {dimension_numbers = #tpu.dot_dimension_numbers<[1], [0], [0], [1], [0, 0, 1, 1], [], []>} : vector<69x32xbf16>, vector<32x5xbf16>, vector<69x5xf32> -> vector<69x5xf32>
    %c0_180 = arith.constant 0 : index
    %c0_181 = arith.constant 0 : index
    %208 = vector.load %arg10[%c0_180, %c0_181] : memref<1x5xf32, #tpu.memory_space<vmem>>, vector<1x5xf32>
    %209 = vector.broadcast %208 : vector<1x5xf32> to vector<69x5xf32>
    %210 = arith.addf %207, %209 : vector<69x5xf32>
    %211 = math.absf %210 : vector<69x5xf32>
    %cst_182 = arith.constant 0.000000e+00 : f32
    %212 = vector.broadcast %cst_182 : f32 to vector<69x5xf32>
    %213 = arith.subf %212, %211 : vector<69x5xf32>
    %214 = math.exp %213 : vector<69x5xf32>
    %cst_183 = arith.constant 0.000000e+00 : f32
    %215 = vector.broadcast %cst_183 : f32 to vector<69x5xf32>
    %216 = arith.cmpf oge, %210, %215 : vector<69x5xf32>
    %cst_184 = arith.constant 1.000000e+00 : f32
    %217 = vector.broadcast %cst_184 : f32 to vector<69x5xf32>
    %218 = arith.addf %217, %214 : vector<69x5xf32>
    %cst_185 = arith.constant 1.000000e+00 : f32
    %219 = vector.broadcast %cst_185 : f32 to vector<69x5xf32>
    %220 = arith.divf %219, %218 : vector<69x5xf32>
    %cst_186 = arith.constant 1.000000e+00 : f32
    %221 = vector.broadcast %cst_186 : f32 to vector<69x5xf32>
    %222 = arith.addf %221, %214 : vector<69x5xf32>
    %223 = arith.divf %214, %222 : vector<69x5xf32>
    %224 = arith.select %216, %220, %223 : vector<69x5xi1>, vector<69x5xf32>
    %225 = tpu.iota {dimensions = array<i32: 1>} : vector<69x5xi32>
    %c0_i32 = arith.constant 0 : i32
    %226 = vector.broadcast %c0_i32 : i32 to vector<69x5xi32>
    %227 = arith.cmpi eq, %225, %226 : vector<69x5xi32>
    %228 = arith.select %227, %224, %210 : vector<69x5xi1>, vector<69x5xf32>
    %c0_187 = arith.constant 0 : index
    %c0_188 = arith.constant 0 : index
    %c0_189 = arith.constant 0 : index
    %229 = vector.load %arg11[%c0_187, %c0_188, %c0_189] : memref<1x69x5xf32, #tpu.memory_space<vmem>>, vector<1x69x5xf32>
    %230 = vector.shape_cast %229 : vector<1x69x5xf32> to vector<69x5xf32>
    %231 = vector.shape_cast %228 : vector<69x5xf32> to vector<1x69x5xf32>
    tpu.vector_store %arg11[%c0_187, %c0_188, %c0_189], %231 {strides = array<i32>} : memref<1x69x5xf32, #tpu.memory_space<vmem>>, vector<1x69x5xf32>,
    return
  }
  func.func @transform_0(%arg0: i32) -> i32 {
    %c0_i32 = arith.constant 0 : i32
    %c0_i32_0 = arith.constant 0 : i32
    return %c0_i32 : i32
  }
  func.func @transform_1(%arg0: i32) -> (i32, i32, i32) {
    %c0_i32 = arith.constant 0 : i32
    %c0_i32_0 = arith.constant 0 : i32
    %c0_i32_1 = arith.constant 0 : i32
    return %arg0, %c0_i32, %c0_i32_0 : i32, i32, i32
  }
  func.func @transform_2(%arg0: i32) -> (i32, i32, i32) {
    %c0_i32 = arith.constant 0 : i32
    %c0_i32_0 = arith.constant 0 : i32
    %c0_i32_1 = arith.constant 0 : i32
    %c0_i32_2 = arith.constant 0 : i32
    return %c0_i32, %c0_i32_0, %c0_i32_1 : i32, i32, i32
  }
  func.func @transform_3(%arg0: i32) -> (i32, i32) {
    %c0_i32 = arith.constant 0 : i32
    %c0_i32_0 = arith.constant 0 : i32
    %c0_i32_1 = arith.constant 0 : i32
    return %c0_i32, %c0_i32_0 : i32, i32
  }
  func.func @transform_4(%arg0: i32) -> (i32, i32, i32) {
    %c0_i32 = arith.constant 0 : i32
    %c0_i32_0 = arith.constant 0 : i32
    %c0_i32_1 = arith.constant 0 : i32
    %c0_i32_2 = arith.constant 0 : i32
    return %c0_i32, %c0_i32_0, %c0_i32_1 : i32, i32, i32
  }
  func.func @transform_5(%arg0: i32) -> (i32, i32) {
    %c0_i32 = arith.constant 0 : i32
    %c0_i32_0 = arith.constant 0 : i32
    %c0_i32_1 = arith.constant 0 : i32
    return %c0_i32, %c0_i32_0 : i32, i32
  }
  func.func @transform_6(%arg0: i32) -> (i32, i32, i32) {
    %c0_i32 = arith.constant 0 : i32
    %c0_i32_0 = arith.constant 0 : i32
    %c0_i32_1 = arith.constant 0 : i32
    %c0_i32_2 = arith.constant 0 : i32
    return %c0_i32, %c0_i32_0, %c0_i32_1 : i32, i32, i32
  }
  func.func @transform_7(%arg0: i32) -> (i32, i32) {
    %c0_i32 = arith.constant 0 : i32
    %c0_i32_0 = arith.constant 0 : i32
    %c0_i32_1 = arith.constant 0 : i32
    return %c0_i32, %c0_i32_0 : i32, i32
  }
  func.func @transform_8(%arg0: i32) -> (i32, i32) {
    %c0_i32 = arith.constant 0 : i32
    %c0_i32_0 = arith.constant 0 : i32
    %c0_i32_1 = arith.constant 0 : i32
    return %c0_i32, %c0_i32_0 : i32, i32
  }
  func.func @transform_9(%arg0: i32) -> (i32, i32) {
    %c0_i32 = arith.constant 0 : i32
    %c0_i32_0 = arith.constant 0 : i32
    %c0_i32_1 = arith.constant 0 : i32
    return %c0_i32, %c0_i32_0 : i32, i32
  }
  func.func @transform_10(%arg0: i32) -> (i32, i32, i32) {
    %c0_i32 = arith.constant 0 : i32
    %c0_i32_0 = arith.constant 0 : i32
    %c0_i32_1 = arith.constant 0 : i32
    return %arg0, %c0_i32, %c0_i32_0 : i32, i32, i32
  }
}

</mosaic_0001>

<bundles_post_ra>
// kernel: net12_forward.1
= control target key start
LH: loop header
LB: loop body
LE: loop exit
PB: predicated region body
PF: predicated region fallthrough
CT: control target
= control target key end

     0   :  { %15 = vsyncpa [#allocation6], 0  ;;  %s7967_s13 = smov 0   ;;  %s9859_s0 = inlined_call_operand.vmem [shape: f32[3], index: 0, kind: input, shape index: {}]   ;;  %s9860_s1 = inlined_call_operand.vmem [shape: f32[2,256,3], index: 1, kind: input, shape index: {}]   ;;  %s9861_s2 = inlined_call_operand.vmem [shape: bf16[9,3,10], index: 2, kind: input, shape index: {}]   ;;  %s9862_s3 = inlined_call_operand.vmem [shape: f32[1,10], index: 3, kind: input, shape index: {}]   ;;  %s9863_s4 = inlined_call_operand.vmem [shape: bf16[9,10,16], index: 4, kind: input, shape index: {}]   ;;  %s9864_s5 = inlined_call_operand.vmem [shape: f32[1,16], index: 5, kind: input, shape index: {}]   ;;  %s9865_s6 = inlined_call_operand.vmem [shape: bf16[9,16,32], index: 6, kind: input, shape index: {}]   ;;  %s9866_s7 = inlined_call_operand.vmem [shape: f32[1,32], index: 7, kind: input, shape index: {}]   ;;  %s9867_s8 = inlined_call_operand.vmem [shape: bf16[32,5], index: 8, kind: input, shape index: {}]   ;;  %s9868_s9 = inlined_call_operand.vmem [shape: f32[1,5], index: 9, kind: input, shape index: {}]   ;;  %s9869_s10 = inlined_call_operand.vmem [shape: f32[2,69,5], index: 10, kind: output, shape index: {}]  }
   0x1 LB: > { %s7973_s14 = sadd.s32 4294967295, %s7906_s13   ;;  %p6124_p0 = scmp.ge.s32.totalorder %s7906_s13, 1  ;;  %s7906_s13 = sphi %s7967_s13, %s21_s13  }
   0x2   : > { %p267_p1 = scmp.lt.s32.totalorder %s7906_s13, 3  ;;  %s280_s17 = sshll.u32 %s9859_s0, 4  ;;  %s281_s17 = int_to_ptr.vmem [resolvable:$true] %s280_s17 }
   0x3   : > { %p7811_p3 = scmp.eq.s32.totalorder %s7973_s14, 0  ;;  %s7881_s19 = scalar_lea.vmem %s281_s17, 16 }
   0x4   : > { %p7980_p2 = pnand %p6124_p0, %p267_p1  ;;  %p7882_p6 = scmp.ne.s32.totalorder %s281_s17, %s7881_s19 }
   0x5   : > { %p7889_p10 = scmp.lt.s32.totalorder %s281_s17, %s281_s17  ;;  %p7890_p11 = scmp.lt.s32.totalorder %s7881_s19, %s7881_s19 }
   0x6   : > { %p7807_p4 = pneg %p7980_p2 }
   0x7   : > { %p7891_p12 = por %p7890_p11, %p7889_p10 }
   0x8   : > { %p7808_p5 = pnand %p7811_p3, %p7807_p4 }
   0xa   : > { %p7883_p7 = pneg %p7808_p5 }
   0xc   : > { %p7884_p8 = pnand %p7883_p7, %p7882_p6 }
   0xe   : > { %p7885_p9 = pneg %p7884_p8 }
  0x10   : > { %p7892_p13 = pnand %p7891_p12, %p7885_p9 }
  0x12   : > { %7895 = shalt.err (!%p7892_p13)
}
  0x13   : > { %s7908_s20 = smov [#allocation5]   ;;  %325 = sbr.rel (%p7980_p2) target bundleno = 2142 (0x85e), region = 60 }
  0x14   : > { %7810 = dma.vmem_to_smem (!%p7808_p5), %s281_s17, 16, %s7908_s20, [#allocation6]  }
  0x1a   : > { %7901 = dma.done.wait (%p7811_p3), [#allocation6], 16  }
  0x1b   : > { %7903 = vsyncadd (%p7811_p3), [#allocation6], 4294967280 }
  0x1c   : > { %331 = sfence }
  0x1d   : > { %v6132_v0 = vld [vmem:[%s9861_s2 + $0x2] sm:$0x3]  ;;  %vm506_vm0 = vcmask 1040384   ;;  %vm507_vm1 = vcmask 1041408   ;;  %p364_p0 = scmp.lt.s32.totalorder %s7973_s14, 1  ;;  %v7909_v1 = vmov 65535  }
  0x1e   : > { %v508_v2 = vsel %vm506_vm0, 4294967295, %v7909_v1  ;;  %v418_v3 = vld [vmem:[%s9861_s2] sm:$0x3]  ;;  %v6161_v7 = vld [vmem:[%s9861_s2 + $0x4] sm:$0x3]  ;;  %vm463_vm2 = vcmask 23552  }
  0x1f   : > { %v8002_v4 = vsel %vm507_vm1, %v508_v2, 0  ;;  %s9883_s14 = smov (!%p364_p0, %s7973_s14), 1  ;;  %v6176_v58 = vld [vmem:[%s9861_s2 + $0x6] sm:$0x3]  ;;  %vm3064_vm3 = vcmask 1044480   ;;  %vm7911_vm4 = vmmov 0  }
  0x20   : > { %v511_v5 = vand.u32 %v6132_v0, %v8002_v4  ;;  %v701_v6 = vand.u32 %v8002_v4, %v418_v3  ;;  %s6457_s27 = sshll.u32 %s9883_s14, 8  ;;  %v8029_v17 = vand.u32 %v6161_v7, %v8002_v4  ;;  %v1197_v61 = vand.u32 %v6176_v58, %v8002_v4  ;;  %s375_s29 = sld [smem:[#allocation5]] }
  0x21   : > { %s8016_s30 = scalar_lea.vmem %s9860_s1, %s6457_s27  ;;  %vm2802_vm6 = vcmask 80896   ;;  %s6267_s12 = sld [smem:[#allocation5 + $0x1]] }
  0x22   : > { %6744 = vmatprep.subr.bf16.mxu0 %v511_v5  ;;  %v419_v8 = vld [vmem:[%s8016_s30 + $0x1] sm:$0xff]  ;;  %v420_v9 = vld [vmem:[%s8016_s30 + $0x9] sm:$0xff]  ;;  %v421_v10 = vld [vmem:[%s8016_s30 + $0x11] sm:$0xff]  ;;  %s6375_s17 = sld [smem:[#allocation5 + $0x2]]  ;;  %s7802_s22 = smul.u32 72, %s9883_s14 }
  0x23   : > { %6745 = vmatpush3.bf16.msra.mxu0 %v511_v5  ;;  %v447_v11 = vpack.c.bf16 %v420_v9, %v419_v8  ;;  %v422_v12 = vld [vmem:[%s8016_s30 + $0x19] sm:$0xff]  ;;  %v423_v13 = vld [vmem:[%s8016_s30 + $0x21] sm:$0xff]  ;;  %v424_v14 = vld [vmem:[%s8016_s30 + $0x29] sm:$0xff] }
  0x24   : > { %6774 = vmatprep.subr.bf16.mxu0 %v701_v6  ;;  %v8024_v15 = vpack.c.bf16 %v422_v12, %v421_v10  ;;  %v8026_v16 = vpack.c.bf16 %v424_v14, %v423_v13  ;;  %v425_v18 = vld [vmem:[%s8016_s30 + $0x31] sm:$0xff]  ;;  %v426_v19 = vld [vmem:[%s8016_s30 + $0x39] sm:$0xff]  ;;  %v427_v20 = vld [vmem:[%s8016_s30 + $0x41] sm:$0xff]  ;;  %s9800_s14 = scalar_lea.vmem %s9869_s10, %s7802_s22 }
  0x25   : > { %6746 = vmatprep.mubr.msk.bf16.mxu0 %vm463_vm2, %v447_v11  ;;  %v428_v21 = vld [vmem:[%s8016_s30 + $0x49] sm:$0xff]  ;;  %v8041_v22 = vpack.c.bf16 %v426_v19, %v425_v18  ;;  %v429_v24 = vld [vmem:[%s8016_s30 + $0x51] sm:$0xff]  ;;  %v430_v25 = vld [vmem:[%s8016_s30 + $0x59] sm:$0xff] }
  0x26   : > { %6747 = vmatmul.mubr.msk.bf16.vlgmr.msra.gmra.mrb[0].mxu0 %vm463_vm2, %v8024_v15  ;;  %v8043_v23 = vpack.c.bf16 %v428_v21, %v427_v20  ;;  %v431_v26 = vld [vmem:[%s8016_s30 + $0x61] sm:$0xff]  ;;  %v432_v27 = vld [vmem:[%s8016_s30 + $0x69] sm:$0xff]  ;;  %v8053_v28 = vpack.c.bf16 %v430_v25, %v429_v24  ;;  %v433_v30 = vld [vmem:[%s8016_s30 + $0x71] sm:$0xff] }
  0x27   : > { %6775 = vmatpush3.bf16.msra.mxu0 %v701_v6  ;;  %6750 = vmatprep.mubr.msk.bf16.mxu0 %vm463_vm2, %v8026_v16  ;;  %v8055_v29 = vpack.c.bf16 %v432_v27, %v431_v26  ;;  %v434_v31 = vld [vmem:[%s8016_s30 + $0x79] sm:$0xff]  ;;  %v435_v32 = vld [vmem:[%s8016_s30 + $0x81] sm:$0xff]  ;;  %v436_v33 = vld [vmem:[%s8016_s30 + $0x89] sm:$0xff] }
  0x28   : > { %6804 = vmatprep.subr.bf16.mxu0 %v8029_v17  ;;  %v8065_v34 = vpack.c.bf16 %v434_v31, %v433_v30  ;;  %v8067_v35 = vpack.c.bf16 %v436_v33, %v435_v32  ;;  %v437_v36 = vld [vmem:[%s8016_s30 + $0x91] sm:$0xff]  ;;  %v438_v37 = vld [vmem:[%s8016_s30 + $0x99] sm:$0xff]  ;;  %v439_v38 = vld [vmem:[%s8016_s30 + $0xa1] sm:$0xff] }
  0x29   : > { %v440_v39 = vld [vmem:[%s8016_s30 + $0xa9] sm:$0xff]  ;;  %v8077_v40 = vpack.c.bf16 %v438_v37, %v437_v36  ;;  %v441_v42 = vld [vmem:[%s8016_s30 + $0xb1] sm:$0xff]  ;;  %v442_v43 = vld [vmem:[%s8016_s30 + $0xb9] sm:$0xff] }
  0x2a   : > { %v8079_v41 = vpack.c.bf16 %v440_v39, %v439_v38  ;;  %v443_v44 = vld [vmem:[%s8016_s30 + $0xc1] sm:$0xff]  ;;  %v444_v45 = vld [vmem:[%s8016_s30 + $0xc9] sm:$0xff]  ;;  %v8089_v46 = vpack.c.bf16 %v442_v43, %v441_v42  ;;  %v8098_v48 = vld [vmem:[%s8016_s30 + $0xd1] sm:$0xff] }
  0x2b   : > { %v8091_v47 = vpack.c.bf16 %v444_v45, %v443_v44  ;;  %v446_v49 = vld [vmem:[%s8016_s30 + $0xd9] sm:$0x3f]  ;;  %v376_v50 = vld [vmem:[%s8016_s30] sm:$0xff]  ;;  %v377_v51 = vld [vmem:[%s8016_s30 + $0x8] sm:$0xff] }
  0x2c   : > { %v460_v52 = vpack.c.bf16 %v446_v49, %v8098_v48  ;;  %v404_v53 = vpack.c.bf16 %v377_v51, %v376_v50  ;;  %v378_v54 = vld [vmem:[%s8016_s30 + $0x10] sm:$0xff]  ;;  %v379_v55 = vld [vmem:[%s8016_s30 + $0x18] sm:$0xff]  ;;  %v380_v56 = vld [vmem:[%s8016_s30 + $0x20] sm:$0xff] }
  0x2d   : > { %v381_v57 = vld [vmem:[%s8016_s30 + $0x28] sm:$0xff]  ;;  %v8113_v59 = vpack.c.bf16 %v379_v55, %v378_v54  ;;  %v382_v62 = vld [vmem:[%s8016_s30 + $0x30] sm:$0xff]  ;;  %v383_v63 = vld [vmem:[%s8016_s30 + $0x38] sm:$0xff] }
  0x2e   : > { %6751 = vmatmul.mubr.msk.bf16.gmra.mrb[4].mxu0 %vm463_vm2, %v8041_v22  ;;  %v8115_v60 = vpack.c.bf16 %v381_v57, %v380_v56  ;;  %v384_v0 = vld [vmem:[%s8016_s30 + $0x40] sm:$0xff]  ;;  %v385_v1 = vld [vmem:[%s8016_s30 + $0x48] sm:$0xff]  ;;  %v8127_v2 = vpack.c.bf16 %v383_v63, %v382_v62  ;;  %v386_v5 = vld [vmem:[%s8016_s30 + $0x50] sm:$0xff] }
  0x2f   : > { %6754 = vmatprep.mubr.msk.bf16.mxu0 %vm463_vm2, %v8043_v23  ;;  %v8129_v3 = vpack.c.bf16 %v385_v1, %v384_v0  ;;  %v387_v6 = vld [vmem:[%s8016_s30 + $0x58] sm:$0xff]  ;;  %v388_v7 = vld [vmem:[%s8016_s30 + $0x60] sm:$0xff]  ;;  %v389_v8 = vld [vmem:[%s8016_s30 + $0x68] sm:$0xff] }
  0x30   : > { %v8139_v9 = vpack.c.bf16 %v387_v6, %v386_v5  ;;  %v8141_v10 = vpack.c.bf16 %v389_v8, %v388_v7  ;;  %v390_v11 = vld [vmem:[%s8016_s30 + $0x70] sm:$0xff]  ;;  %v391_v12 = vld [vmem:[%s8016_s30 + $0x78] sm:$0xff]  ;;  %v392_v13 = vld [vmem:[%s8016_s30 + $0x80] sm:$0xff] }
  0x31   : > { %v393_v14 = vld [vmem:[%s8016_s30 + $0x88] sm:$0xff]  ;;  %v394_v19 = vld [vmem:[%s8016_s30 + $0x90] sm:$0xff]  ;;  %v395_v20 = vld [vmem:[%s8016_s30 + $0x98] sm:$0xff] }
  0x32   : > { %v8153_v18 = vpack.c.bf16 %v393_v14, %v392_v13  ;;  %v396_v21 = vld [vmem:[%s8016_s30 + $0xa0] sm:$0xff]  ;;  %v397_v24 = vld [vmem:[%s8016_s30 + $0xa8] sm:$0xff]  ;;  %v8163_v25 = vpack.c.bf16 %v395_v20, %v394_v19  ;;  %v398_v27 = vld [vmem:[%s8016_s30 + $0xb0] sm:$0xff] }
  0x33   : > { %v8165_v26 = vpack.c.bf16 %v397_v24, %v396_v21  ;;  %v399_v30 = vld [vmem:[%s8016_s30 + $0xb8] sm:$0xff]  ;;  %v400_v31 = vld [vmem:[%s8016_s30 + $0xc0] sm:$0xff]  ;;  %v401_v32 = vld [vmem:[%s8016_s30 + $0xc8] sm:$0xff] }
  0x34   : > { %v8175_v33 = vpack.c.bf16 %v399_v30, %v398_v27  ;;  %v8177_v36 = vpack.c.bf16 %v401_v32, %v400_v31  ;;  %v8184_v37 = vld [vmem:[%s8016_s30 + $0xd0] sm:$0xff]  ;;  %v403_v38 = vld [vmem:[%s8016_s30 + $0xd8] sm:$0x3f]  ;;  %v848_v39 = vld [vmem:[%s8016_s30 + $0x2] sm:$0xff] }
  0x35   : > { %v849_v42 = vld [vmem:[%s8016_s30 + $0xa] sm:$0xff]  ;;  %v417_v43 = vpack.c.bf16 %v403_v38, %v8184_v37  ;;  %v850_v45 = vld [vmem:[%s8016_s30 + $0x12] sm:$0xff]  ;;  %v851_v49 = vld [vmem:[%s8016_s30 + $0x1a] sm:$0xff] }
  0x36   : > { %6755 = vmatmul.mubr.msk.bf16.gmra.mrb[8].mxu0 %vm463_vm2, %v8053_v28  ;;  %v876_v44 = vpack.c.bf16 %v849_v42, %v848_v39  ;;  %v852_v50 = vld [vmem:[%s8016_s30 + $0x22] sm:$0xff]  ;;  %v853_v51 = vld [vmem:[%s8016_s30 + $0x2a] sm:$0xff]  ;;  %v854_v56 = vld [vmem:[%s8016_s30 + $0x32] sm:$0xff] }
  0x37   : > { %6758 = vmatprep.mubr.msk.bf16.mxu0 %vm463_vm2, %v8055_v29  ;;  %v8201_v54 = vpack.c.bf16 %v853_v51, %v852_v50  ;;  %v855_v57 = vld [vmem:[%s8016_s30 + $0x3a] sm:$0xff]  ;;  %v856_v58 = vld [vmem:[%s8016_s30 + $0x42] sm:$0xff]  ;;  %v857_v62 = vld [vmem:[%s8016_s30 + $0x4a] sm:$0xff] }
  0x38   : > { %v8212_v63 = vpack.c.bf16 %v855_v57, %v854_v56  ;;  %v8214_v0 = vpack.c.bf16 %v857_v62, %v856_v58  ;;  %v859_v1 = vld [vmem:[%s8016_s30 + $0x5a] sm:$0xff]  ;;  %v860_v5 = vld [vmem:[%s8016_s30 + $0x62] sm:$0xff]  ;;  %v861_v6 = vld [vmem:[%s8016_s30 + $0x6a] sm:$0xff] }
  0x39   : > { %v8226_v8 = vpack.c.bf16 %v861_v6, %v860_v5  ;;  %v864_v13 = vld [vmem:[%s8016_s30 + $0x82] sm:$0xff]  ;;  %v865_v14 = vld [vmem:[%s8016_s30 + $0x8a] sm:$0xff]  ;;  %v866_v21 = vld [vmem:[%s8016_s30 + $0x92] sm:$0xff] }
  0x3a   : > { %v8238_v20 = vpack.c.bf16 %v865_v14, %v864_v13  ;;  %v867_v24 = vld [vmem:[%s8016_s30 + $0x9a] sm:$0xff]  ;;  %v868_v27 = vld [vmem:[%s8016_s30 + $0xa2] sm:$0xff]  ;;  %v869_v30 = vld [vmem:[%s8016_s30 + $0xaa] sm:$0xff] }
  0x3b   : > { %v8248_v31 = vpack.c.bf16 %v867_v24, %v866_v21  ;;  %v8250_v32 = vpack.c.bf16 %v869_v30, %v868_v27  ;;  %v870_v38 = vld [vmem:[%s8016_s30 + $0xb2] sm:$0xff]  ;;  %v871_v39 = vld [vmem:[%s8016_s30 + $0xba] sm:$0xff]  ;;  %v872_v42 = vld [vmem:[%s8016_s30 + $0xc2] sm:$0xff] }
  0x3c   : > { %v875_v50 = vld [vmem:[%s8016_s30 + $0xda] sm:$0x3f]  ;;  %v8309_v57 = vld [vmem:[%s8016_s30 + $0xe0] sm:$0xff]  ;;  %v1137_v58 = vld [vmem:[%s8016_s30 + $0xe8] sm:$0x3f] }
  0x3d   : > { %v1151_v62 = vpack.c.bf16 %v1137_v58, %v8309_v57  ;;  %v8349_v5 = vld [vmem:[%s8016_s30 + $0xe1] sm:$0xff]  ;;  %v1399_v6 = vld [vmem:[%s8016_s30 + $0xe9] sm:$0x3f]  ;;  %v6251_v27 = vld [vmem:[%s9861_s2 + $0x10] sm:$0x3] }
  0x3e   : > { %6759 = vmatmul.mubr.msk.bf16.gmra.mrb[12].mxu0 %vm463_vm2, %v8065_v34  ;;  %v1660_v14 = vld [vmem:[%s8016_s30 + $0xe2] sm:$0xff]  ;;  %v1661_v21 = vld [vmem:[%s8016_s30 + $0xea] sm:$0x3f]  ;;  %v2507_v30 = vand.u32 %v6251_v27, %v8002_v4 }
  0x3f   : > { %6762 = vmatprep.mubr.msk.bf16.mxu0 %vm463_vm2, %v8067_v35  ;;  %v1675_v24 = vpack.c.bf16 %v1661_v21, %v1660_v14 }
  0x46   : > { %6763 = vmatmul.mubr.msk.bf16.gmra.mrb[16].mxu0 %vm463_vm2, %v8077_v40 }
  0x47   : > { %6766 = vmatprep.mubr.msk.bf16.mxu0 %vm463_vm2, %v8079_v41 }
  0x4e   : > { %6767 = vmatmul.mubr.msk.bf16.gmra.mrb[20].mxu0 %vm463_vm2, %v8089_v46 }
  0x4f   : > { %6770 = vmatprep.mubr.msk.bf16.mxu0 %vm463_vm2, %v8091_v47 }
  0x56   : > { %6771 = vmatmul.mubr.msk.bf16.gmra.mrb[24].mxu0 %vm463_vm2, %v460_v52  ;;  %v6191_v52 = vld [vmem:[%s9861_s2 + $0x8] sm:$0x3] }
  0x57   : > { %6776 = vmatprep.mubr.msk.bf16.mxu0 %vm463_vm2, %v404_v53  ;;  %v8199_v53 = vpack.c.bf16 %v851_v49, %v850_v45  ;;  %v1459_v55 = vand.u32 %v6191_v52, %v8002_v4  ;;  %v8269_v49 = vld [vmem:[%s8016_s30 + $0xd2] sm:$0xff]  ;;  %v6206_v52 = vld [vmem:[%s9861_s2 + $0xa] sm:$0x3] }
  0x58   : > { %v889_v51 = vpack.c.bf16 %v875_v50, %v8269_v49  ;;  %v1721_v56 = vand.u32 %v6206_v52, %v8002_v4 }
  0x5e   : > { %6777 = vmatmul.mubr.msk.bf16.vlgmr.msra.gmra.mrb[0].mxu0 %vm463_vm2, %v8113_v59 }
  0x5f   : > { %6805 = vmatpush3.bf16.msra.mxu0 %v8029_v17  ;;  %6780 = vmatprep.mubr.msk.bf16.mxu0 %vm463_vm2, %v8115_v60  ;;  %v8151_v17 = vpack.c.bf16 %v391_v12, %v390_v11  ;;  %v862_v11 = vld [vmem:[%s8016_s30 + $0x72] sm:$0xff]  ;;  %v863_v12 = vld [vmem:[%s8016_s30 + $0x7a] sm:$0xff] }
  0x60   : > { %6834 = vmatprep.subr.bf16.mxu0 %v1197_v61  ;;  %v8236_v19 = vpack.c.bf16 %v863_v12, %v862_v11  ;;  %v1413_v11 = vpack.c.bf16 %v1399_v6, %v8349_v5 }
  0x66   : > { %6781 = vmatmul.mubr.msk.bf16.gmra.mrb[4].mxu0 %vm463_vm2, %v8127_v2 }
  0x67   : > { %6784 = vmatprep.mubr.msk.bf16.mxu0 %vm463_vm2, %v8129_v3 }
  0x6e   : > { %6785 = vmatmul.mubr.msk.bf16.gmra.mrb[8].mxu0 %vm463_vm2, %v8139_v9 }
  0x6f   : > { %6788 = vmatprep.mubr.msk.bf16.mxu0 %vm463_vm2, %v8141_v10 }
  0x76   : > { %6789 = vmatmul.mubr.msk.bf16.gmra.mrb[12].mxu0 %vm463_vm2, %v8151_v17 }
  0x77   : > { %6792 = vmatprep.mubr.msk.bf16.mxu0 %vm463_vm2, %v8153_v18 }
  0x7e   : > { %6793 = vmatmul.mubr.msk.bf16.gmra.mrb[16].mxu0 %vm463_vm2, %v8163_v25 }
  0x7f   : > { %6796 = vmatprep.mubr.msk.bf16.mxu0 %vm463_vm2, %v8165_v26 }
  0x86   : > { %6797 = vmatmul.mubr.msk.bf16.gmra.mrb[20].mxu0 %vm463_vm2, %v8175_v33 }
  0x87   : > { %6800 = vmatprep.mubr.msk.bf16.mxu0 %vm463_vm2, %v8177_v36 }
  0x8e   : > { %6801 = vmatmul.mubr.msk.bf16.gmra.mrb[24].mxu0 %vm463_vm2, %v417_v43  ;;  %v873_v43 = vld [vmem:[%s8016_s30 + $0xca] sm:$0xff] }
  0x8f   : > { %6806 = vmatprep.mubr.msk.bf16.mxu0 %vm463_vm2, %v876_v44  ;;  %v8260_v44 = vpack.c.bf16 %v871_v39, %v870_v38  ;;  %v8262_v45 = vpack.c.bf16 %v873_v43, %v872_v42 }
  0x96   : > { %6807 = vmatmul.mubr.msk.bf16.vlgmr.msra.gmra.mrb[0].mxu0 %vm463_vm2, %v8199_v53 }
  0x97   : > { %6835 = vmatpush3.bf16.msra.mxu0 %v1197_v61  ;;  %6810 = vmatprep.mubr.msk.bf16.mxu0 %vm463_vm2, %v8201_v54  ;;  %v858_v61 = vld [vmem:[%s8016_s30 + $0x52] sm:$0xff] }
  0x98   : > { %6864 = vmatprep.subr.bf16.mxu0 %v1459_v55  ;;  %v8224_v7 = vpack.c.bf16 %v859_v1, %v858_v61 }
  0x9e   : > { %6811 = vmatmul.mubr.msk.bf16.gmra.mrb[4].mxu0 %vm463_vm2, %v8212_v63 }
  0x9f   : > { %6814 = vmatprep.mubr.msk.bf16.mxu0 %vm463_vm2, %v8214_v0 }
  0xa6   : > { %6815 = vmatmul.mubr.msk.bf16.gmra.mrb[8].mxu0 %vm463_vm2, %v8224_v7 }
  0xa7   : > { %6818 = vmatprep.mubr.msk.bf16.mxu0 %vm463_vm2, %v8226_v8 }
  0xae   : > { %6819 = vmatmul.mubr.msk.bf16.gmra.mrb[12].mxu0 %vm463_vm2, %v8236_v19 }
  0xaf   : > { %6822 = vmatprep.mubr.msk.bf16.mxu0 %vm463_vm2, %v8238_v20 }
  0xb6   : > { %6823 = vmatmul.mubr.msk.bf16.gmra.mrb[16].mxu0 %vm463_vm2, %v8248_v31 }
  0xb7   : > { %6826 = vmatprep.mubr.msk.bf16.mxu0 %vm463_vm2, %v8250_v32 }
  0xbe   : > { %6827 = vmatmul.mubr.msk.bf16.gmra.mrb[20].mxu0 %vm463_vm2, %v8260_v44 }
  0xbf   : > { %6830 = vmatprep.mubr.msk.bf16.mxu0 %vm463_vm2, %v8262_v45 }
  0xc6   : > { %6831 = vmatmul.mubr.msk.bf16.gmra.mrb[24].mxu0 %vm463_vm2, %v889_v51 }
  0xc7   : > { %6836 = vmatprep.mubr.msk.bf16.mxu0 %vm463_vm2, %v8113_v59  ;;  %v1135_v59 = vld [vmem:[%s8016_s30 + $0xd8] sm:$0xff] }
  0xce   : > { %6837 = vmatmul.mubr.msk.bf16.vlgmr.msra.gmra.mrb[0].mxu0 %vm463_vm2, %v8115_v60 }
  0xcf   : > { %6865 = vmatpush3.bf16.msra.mxu0 %v1459_v55  ;;  %6840 = vmatprep.mubr.msk.bf16.mxu0 %vm463_vm2, %v8127_v2  ;;  %v8302_v55 = vpack.c.bf16 %v1135_v59, %v8184_v37  ;;  %v6221_v37 = vld [vmem:[%s9861_s2 + $0xc] sm:$0x3] }
  0xd0   : > { %6894 = vmatprep.subr.bf16.mxu0 %v1721_v56  ;;  %v1983_v61 = vand.u32 %v6221_v37, %v8002_v4 }
  0xd6   : > { %6841 = vmatmul.mubr.msk.bf16.gmra.mrb[4].mxu0 %vm463_vm2, %v8129_v3 }
  0xd7   : > { %6844 = vmatprep.mubr.msk.bf16.mxu0 %vm463_vm2, %v8139_v9 }
  0xde   : > { %6845 = vmatmul.mubr.msk.bf16.gmra.mrb[8].mxu0 %vm463_vm2, %v8141_v10 }
  0xdf   : > { %6848 = vmatprep.mubr.msk.bf16.mxu0 %vm463_vm2, %v8151_v17 }
  0xe6   : > { %6849 = vmatmul.mubr.msk.bf16.gmra.mrb[12].mxu0 %vm463_vm2, %v8153_v18 }
  0xe7   : > { %6852 = vmatprep.mubr.msk.bf16.mxu0 %vm463_vm2, %v8163_v25 }
  0xee   : > { %6853 = vmatmul.mubr.msk.bf16.gmra.mrb[16].mxu0 %vm463_vm2, %v8165_v26 }
  0xef   : > { %6856 = vmatprep.mubr.msk.bf16.mxu0 %vm463_vm2, %v8175_v33 }
  0xf6   : > { %6857 = vmatmul.mubr.msk.bf16.gmra.mrb[20].mxu0 %vm463_vm2, %v8177_v36 }
  0xf7   : > { %6860 = vmatprep.mubr.msk.bf16.mxu0 %vm463_vm2, %v8302_v55 }
  0xfe   : > { %6861 = vmatmul.mubr.msk.bf16.gmra.mrb[24].mxu0 %vm463_vm2, %v1151_v62 }
  0xff   : > { %6866 = vmatprep.mubr.msk.bf16.mxu0 %vm463_vm2, %v8024_v15  ;;  %v1397_v15 = vld [vmem:[%s8016_s30 + $0xd9] sm:$0xff] }
 0x100   : > { %v8342_v1 = vpack.c.bf16 %v1397_v15, %v8098_v48  ;;  %v6236_v48 = vld [vmem:[%s9861_s2 + $0xe] sm:$0x3] }
 0x101   : > { %v2245_v12 = vand.u32 %v6236_v48, %v8002_v4  ;;  %v1921_v4 = vld [vmem:[%s8016_s30 + $0xe8] sm:$0xff] }
 0x106   : > { %6867 = vmatmul.mubr.msk.bf16.vlgmr.msra.gmra.mrb[0].mxu0 %vm463_vm2, %v8026_v16 }
 0x107   : > { %6895 = vmatpush3.bf16.msra.mxu0 %v1721_v56  ;;  %6870 = vmatprep.mubr.msk.bf16.mxu0 %vm463_vm2, %v8041_v22 }
 0x108   : > { %6924 = vmatprep.subr.bf16.mxu0 %v1983_v61 }
 0x10e   : > { %6871 = vmatmul.mubr.msk.bf16.gmra.mrb[4].mxu0 %vm463_vm2, %v8043_v23 }
 0x10f   : > { %6874 = vmatprep.mubr.msk.bf16.mxu0 %vm463_vm2, %v8053_v28 }
 0x116   : > { %6875 = vmatmul.mubr.msk.bf16.gmra.mrb[8].mxu0 %vm463_vm2, %v8055_v29 }
 0x117   : > { %6878 = vmatprep.mubr.msk.bf16.mxu0 %vm463_vm2, %v8065_v34 }
 0x11e   : > { %6879 = vmatmul.mubr.msk.bf16.gmra.mrb[12].mxu0 %vm463_vm2, %v8067_v35 }
 0x11f   : > { %6882 = vmatprep.mubr.msk.bf16.mxu0 %vm463_vm2, %v8077_v40 }
 0x126   : > { %6883 = vmatmul.mubr.msk.bf16.gmra.mrb[16].mxu0 %vm463_vm2, %v8079_v41 }
 0x127   : > { %6886 = vmatprep.mubr.msk.bf16.mxu0 %vm463_vm2, %v8089_v46 }
 0x12e   : > { %6887 = vmatmul.mubr.msk.bf16.gmra.mrb[20].mxu0 %vm463_vm2, %v8091_v47 }
 0x12f   : > { %6890 = vmatprep.mubr.msk.bf16.mxu0 %vm463_vm2, %v8342_v1 }
 0x136   : > { %6891 = vmatmul.mubr.msk.bf16.gmra.mrb[24].mxu0 %vm463_vm2, %v1413_v11 }
 0x137   : > { %6896 = vmatprep.mubr.msk.bf16.mxu0 %vm463_vm2, %v8199_v53  ;;  %v1659_v53 = vld [vmem:[%s8016_s30 + $0xda] sm:$0xff] }
 0x138   : > { %v8382_v13 = vpack.c.bf16 %v1659_v53, %v8269_v49 }
 0x13e   : > { %6897 = vmatmul.mubr.msk.bf16.vlgmr.msra.gmra.mrb[0].mxu0 %vm463_vm2, %v8201_v54 }
 0x13f   : > { %6925 = vmatpush3.bf16.msra.mxu0 %v1983_v61  ;;  %6900 = vmatprep.mubr.msk.bf16.mxu0 %vm463_vm2, %v8212_v63 }
 0x140   : > { %6954 = vmatprep.subr.bf16.mxu0 %v2245_v12 }
 0x146   : > { %6901 = vmatmul.mubr.msk.bf16.gmra.mrb[4].mxu0 %vm463_vm2, %v8214_v0 }
 0x147   : > { %6904 = vmatprep.mubr.msk.bf16.mxu0 %vm463_vm2, %v8224_v7 }
 0x14e   : > { %6905 = vmatmul.mubr.msk.bf16.gmra.mrb[8].mxu0 %vm463_vm2, %v8226_v8 }
 0x14f   : > { %6908 = vmatprep.mubr.msk.bf16.mxu0 %vm463_vm2, %v8236_v19 }
 0x156   : > { %6909 = vmatmul.mubr.msk.bf16.gmra.mrb[12].mxu0 %vm463_vm2, %v8238_v20 }
 0x157   : > { %6912 = vmatprep.mubr.msk.bf16.mxu0 %vm463_vm2, %v8248_v31 }
 0x15e   : > { %6913 = vmatmul.mubr.msk.bf16.gmra.mrb[16].mxu0 %vm463_vm2, %v8250_v32 }
 0x15f   : > { %6916 = vmatprep.mubr.msk.bf16.mxu0 %vm463_vm2, %v8260_v44 }
 0x166   : > { %6917 = vmatmul.mubr.msk.bf16.gmra.mrb[20].mxu0 %vm463_vm2, %v8262_v45 }
 0x167   : > { %6920 = vmatprep.mubr.msk.bf16.mxu0 %vm463_vm2, %v8382_v13 }
 0x16e   : > { %6921 = vmatmul.mubr.msk.bf16.gmra.mrb[24].mxu0 %vm463_vm2, %v1675_v24 }
 0x16f   : > { %6926 = vmatprep.mubr.msk.bf16.mxu0 %vm463_vm2, %v8115_v60  ;;  %v1936_v60 = vpack.c.bf16 %v1921_v4, %v8309_v57 }
 0x176   : > { %6927 = vmatmul.mubr.msk.bf16.vlgmr.msra.gmra.mrb[0].mxu0 %vm463_vm2, %v8127_v2  ;;  %v1922_v2 = vld [vmem:[%s8016_s30 + $0xf0] sm:$0xff] }
 0x177   : > { %6955 = vmatpush3.bf16.msra.mxu0 %v2245_v12  ;;  %6930 = vmatprep.mubr.msk.bf16.mxu0 %vm463_vm2, %v8129_v3  ;;  %v1923_v3 = vld [vmem:[%s8016_s30 + $0xf8] sm:$0x3f] }
 0x178   : > { %6984 = vmatprep.subr.bf16.mxu0 %v2507_v30 }
 0x17e   : > { %6931 = vmatmul.mubr.msk.bf16.gmra.mrb[4].mxu0 %vm463_vm2, %v8139_v9  ;;  %v1937_v9 = vpack.c.bf16 %v1923_v3, %v1922_v2 }
 0x17f   : > { %6934 = vmatprep.mubr.msk.bf16.mxu0 %vm463_vm2, %v8141_v10  ;;  %v9870_v10 = vmov 0.0  }
 0x180   : > { %7014 = vmatprep.subr.bf16.mxu1 %v9870_v10  ;;  %7016 = vmatprep.mubr.msk.bf16.mxu1 %vm7911_vm4, %v9870_v10 }
 0x186   : > { %6935 = vmatmul.mubr.msk.bf16.gmra.mrb[8].mxu0 %vm463_vm2, %v8151_v17 }
 0x187   : > { %6938 = vmatprep.mubr.msk.bf16.mxu0 %vm463_vm2, %v8153_v18  ;;  %v7827_v18 = vld [vmem:[%s9863_s4 + $0x38] sm:$0x1f]  }
 0x18e   : > { %6939 = vmatmul.mubr.msk.bf16.gmra.mrb[12].mxu0 %vm463_vm2, %v8163_v25  ;;  %v4316_v25 = vsel %vm3064_vm3, %v7827_v18, 0 }
 0x18f   : > { %6942 = vmatprep.mubr.msk.bf16.mxu0 %vm463_vm2, %v8165_v26  ;;  %v8503_v26 = vld [vmem:[%s9862_s3] ss:$0 sm:$0xff] }
 0x196   : > { %6943 = vmatmul.mubr.msk.bf16.gmra.mrb[16].mxu0 %vm463_vm2, %v8175_v33 }
 0x197   : > { %6946 = vmatprep.mubr.msk.bf16.mxu0 %vm463_vm2, %v8177_v36  ;;  %v8505_v36 = vstv %s375_s29 }
 0x19e   : > { %6947 = vmatmul.mubr.msk.bf16.gmra.mrb[20].mxu0 %vm463_vm2, %v8302_v55 }
 0x19f   : > { %6950 = vmatprep.mubr.msk.bf16.mxu0 %vm463_vm2, %v1936_v60 }
 0x1a6   : > { %6951 = vmatmul.mubr.msk.bf16.gmra.mrb[24].mxu0 %vm463_vm2, %v1937_v9 }
 0x1a7   : > { %6956 = vmatprep.mubr.msk.bf16.mxu0 %vm463_vm2, %v8026_v16  ;;  %v2183_v16 = vld [vmem:[%s8016_s30 + $0xe9] sm:$0xff] }
 0x1ae   : > { %6957 = vmatmul.mubr.msk.bf16.vlgmr.msra.gmra.mrb[0].mxu0 %vm463_vm2, %v8041_v22  ;;  %v2198_v22 = vpack.c.bf16 %v2183_v16, %v8349_v5 }
 0x1af   : > { %6985 = vmatpush3.bf16.msra.mxu0 %v2507_v30  ;;  %6960 = vmatprep.mubr.msk.bf16.mxu0 %vm463_vm2, %v8043_v23  ;;  %v2184_v23 = vld [vmem:[%s8016_s30 + $0xf1] sm:$0xff] }
 0x1b0   : > { %7280 = vmatprep.subr.bf16.mxu0 %v9870_v10 }
 0x1b6   : > { %6961 = vmatmul.mubr.msk.bf16.gmra.mrb[4].mxu0 %vm463_vm2, %v8053_v28  ;;  %v2185_v28 = vld [vmem:[%s8016_s30 + $0xf9] sm:$0x3f] }
 0x1b7   : > { %6964 = vmatprep.mubr.msk.bf16.mxu0 %vm463_vm2, %v8055_v29  ;;  %v2199_v29 = vpack.c.bf16 %v2185_v28, %v2184_v23 }
 0x1be   : > { %6965 = vmatmul.mubr.msk.bf16.gmra.mrb[8].mxu0 %vm463_vm2, %v8065_v34  ;;  %v2445_v34 = vld [vmem:[%s8016_s30 + $0xea] sm:$0xff] }
 0x1bf   : > { %6968 = vmatprep.mubr.msk.bf16.mxu0 %vm463_vm2, %v8067_v35  ;;  %v2460_v35 = vpack.c.bf16 %v2445_v34, %v1660_v14 }
 0x1c6   : > { %6969 = vmatmul.mubr.msk.bf16.gmra.mrb[12].mxu0 %vm463_vm2, %v8077_v40  ;;  %v2446_v40 = vld [vmem:[%s8016_s30 + $0xf2] sm:$0xff] }
 0x1c7   : > { %6972 = vmatprep.mubr.msk.bf16.mxu0 %vm463_vm2, %v8079_v41  ;;  %v2447_v41 = vld [vmem:[%s8016_s30 + $0xfa] sm:$0x3f] }
 0x1ce   : > { %6973 = vmatmul.mubr.msk.bf16.gmra.mrb[16].mxu0 %vm463_vm2, %v8089_v46  ;;  %v2461_v46 = vpack.c.bf16 %v2447_v41, %v2446_v40 }
 0x1cf   : > { %6976 = vmatprep.mubr.msk.bf16.mxu0 %vm463_vm2, %v8091_v47  ;;  %v7825_v47 = vld [vmem:[%s9863_s4 + $0x8] sm:$0x1f]  }
 0x1d0   : > { %v3066_v17 = vsel %vm3064_vm3, %v7825_v47, 0 }
 0x1d1   : > { %7015 = vmatpush3.bf16.msra.mxu1 %v3066_v17 }
 0x1d2   : > { %7052 = vmatprep.subr.bf16.mxu1 %v9870_v10 }
 0x1d6   : > { %6977 = vmatmul.mubr.msk.bf16.gmra.mrb[20].mxu0 %vm463_vm2, %v8342_v1 }
 0x1d7   : > { %6980 = vmatprep.mubr.msk.bf16.mxu0 %vm463_vm2, %v2198_v22 }
 0x1de   : > { %6981 = vmatmul.mubr.msk.bf16.gmra.mrb[24].mxu0 %vm463_vm2, %v2199_v29 }
 0x1df   : > { %6986 = vmatprep.mubr.msk.bf16.mxu0 %vm463_vm2, %v8201_v54 }
 0x1e6   : > { %6987 = vmatmul.mubr.msk.bf16.vlgmr.msra.gmra.mrb[0].mxu0 %vm463_vm2, %v8212_v63 }
 0x1e7   : > { %6990 = vmatprep.mubr.msk.bf16.mxu0 %vm463_vm2, %v8214_v0  ;;  %7281 = vmatpush3.bf16.msra.mxu0 %v4316_v25 }
 0x1e8   : > { %7356 = vmatprep.subr.bf16.mxu0 %v9870_v10 }
 0x1ee   : > { %6991 = vmatmul.mubr.msk.bf16.gmra.mrb[4].mxu0 %vm463_vm2, %v8224_v7 }
 0x1ef   : > { %6994 = vmatprep.mubr.msk.bf16.mxu0 %vm463_vm2, %v8226_v8 }
 0x1f6   : > { %6995 = vmatmul.mubr.msk.bf16.gmra.mrb[8].mxu0 %vm463_vm2, %v8236_v19 }
 0x1f7   : > { %6998 = vmatprep.mubr.msk.bf16.mxu0 %vm463_vm2, %v8238_v20 }
 0x1fe   : > { %6999 = vmatmul.mubr.msk.bf16.gmra.mrb[12].mxu0 %vm463_vm2, %v8248_v31 }
 0x1ff   : > { %7002 = vmatprep.mubr.msk.bf16.mxu0 %vm463_vm2, %v8250_v32 }
 0x206   : > { %7003 = vmatmul.mubr.msk.bf16.gmra.mrb[16].mxu0 %vm463_vm2, %v8260_v44 }
 0x207   : > { %7006 = vmatprep.mubr.msk.bf16.mxu0 %vm463_vm2, %v8262_v45 }
 0x20e   : > { %7007 = vmatmul.mubr.msk.bf16.gmra.mrb[20].mxu0 %vm463_vm2, %v8382_v13 }
 0x20f   : > { %7010 = vmatprep.mubr.msk.bf16.mxu0 %vm463_vm2, %v2460_v35 }
 0x216   : > { %7011 = vmatmul.mubr.msk.bf16.gmra.mrb[24].mxu0 %vm463_vm2, %v2461_v46 }
 0x217   : > { %7282 = vmatprep.mubr.msk.bf16.mxu0 %vm7911_vm4, %v9870_v10 }
 0x2b9   : > { %v6988_v33 = vpop.f32.mrb[0].mxu0 }
 0x2ba   : > { %v2691_v54 = vadd.f32 %v6988_v33, %v8503_v26  ;;  %v2543_v63 = vpop.f32.mrb[1].mxu0 }
 0x2bb   : > { %v2689_v0 = vadd.f32 %v8503_v26, %v2543_v63  ;;  %v6989_v7 = vpop.f32.mrb[2].mxu0 }
 0x2bc   : > { %vm2719_vm5 = vcmp.gt.f32.partialorder %v2691_v54, 0.0  ;;  %v2748_v8 = vmul.f32 %v8505_v36, %v2691_v54  ;;  %v2692_v19 = vadd.f32 %v6989_v7, %v8503_v26  ;;  %v2546_v20 = vpop.f32.mrb[3].mxu0 }
 0x2bd   : > { %vm2717_vm7 = vcmp.gt.f32.partialorder %v2689_v0, 0.0  ;;  %v2746_v31 = vmul.f32 %v8505_v36, %v2689_v0  ;;  %v2690_v32 = vadd.f32 %v8503_v26, %v2546_v20 }
 0x2be   : > { %v2776_v38 = vsel %vm2719_vm5, %v2691_v54, %v2748_v8  ;;  %vm2720_vm8 = vcmp.gt.f32.partialorder %v2692_v19, 0.0  ;;  %v2749_v39 = vmul.f32 %v8505_v36, %v2692_v19 }
 0x2bf   : > { %2805 = vst.msk [vmem:[#allocation2 + $0x10] sm:$0xff] %vm2802_vm6, %v2776_v38  ;;  %v2774_v42 = vsel %vm2717_vm7, %v2689_v0, %v2746_v31  ;;  %vm2718_vm9 = vcmp.gt.f32.partialorder %v2690_v32, 0.0  ;;  %v2747_v43 = vmul.f32 %v8505_v36, %v2690_v32 }
 0x2c0   : > { %2803 = vst.msk [vmem:[#allocation2] sm:$0xff] %vm2802_vm6, %v2774_v42  ;;  %v2777_v44 = vsel %vm2720_vm8, %v2692_v19, %v2749_v39 }
 0x2c1   : > { %2806 = vst.msk [vmem:[#allocation2 + $0x18] sm:$0xff] %vm2802_vm6, %v2777_v44  ;;  %v2775_v45 = vsel %vm2718_vm9, %v2690_v32, %v2747_v43  ;;  %v6992_v49 = vpop.f32.mrb[4].mxu0 }
 0x2c2   : > { %2804 = vst.msk [vmem:[#allocation2 + $0x8] sm:$0xff] %vm2802_vm6, %v2775_v45  ;;  %v2695_v50 = vadd.f32 %v6992_v49, %v8503_v26  ;;  %v2559_v51 = vpop.f32.mrb[5].mxu0 }
 0x2c3   : > { %v2693_v52 = vadd.f32 %v8503_v26, %v2559_v51  ;;  %v6993_v56 = vpop.f32.mrb[6].mxu0 }
 0x2c4   : > { %vm2723_vm10 = vcmp.gt.f32.partialorder %v2695_v50, 0.0  ;;  %v2752_v59 = vmul.f32 %v8505_v36, %v2695_v50  ;;  %v2696_v55 = vadd.f32 %v6993_v56, %v8503_v26  ;;  %v2562_v57 = vpop.f32.mrb[7].mxu0 }
 0x2c5   : > { %vm2721_vm11 = vcmp.gt.f32.partialorder %v2693_v52, 0.0  ;;  %v2750_v58 = vmul.f32 %v8505_v36, %v2693_v52  ;;  %v2694_v62 = vadd.f32 %v8503_v26, %v2562_v57 }
 0x2c6   : > { %v2780_v37 = vsel %vm2723_vm10, %v2695_v50, %v2752_v59  ;;  %vm2724_vm12 = vcmp.gt.f32.partialorder %v2696_v55, 0.0  ;;  %v2753_v61 = vmul.f32 %v8505_v36, %v2696_v55  ;;  %v2834_v5 = vld [vmem:[#allocation2 + $0x10] sm:$0xff] }
 0x2c7   : > { %2809 = vst.msk [vmem:[#allocation2 + $0x30] sm:$0xff] %vm2802_vm6, %v2780_v37  ;;  %v2778_v15 = vsel %vm2721_vm11, %v2693_v52, %v2750_v58  ;;  %vm2722_vm13 = vcmp.gt.f32.partialorder %v2694_v62, 0.0  ;;  %v2751_v1 = vmul.f32 %v8505_v36, %v2694_v62  ;;  %v2832_v48 = vld [vmem:[#allocation2] sm:$0xff] }
 0x2c8   : > { %v2860_v6 = vld [vmem:[#allocation2 + $0x11] sm:$0xff]  ;;  %2807 = vst.msk [vmem:[#allocation2 + $0x20] sm:$0xff] %vm2802_vm6, %v2778_v15  ;;  %v2781_v11 = vsel %vm2724_vm12, %v2696_v55, %v2753_v61  ;;  %v7826_v15 = vld [vmem:[%s9863_s4] sm:$0x1f]  }
 0x2c9   : > { %v8529_v12 = vmax.f32 %v2834_v5, %v2860_v6  ;;  %v2858_v53 = vld [vmem:[#allocation2 + $0x1] sm:$0xff]  ;;  %2810 = vst.msk [vmem:[#allocation2 + $0x38] sm:$0xff] %vm2802_vm6, %v2781_v11  ;;  %v2779_v13 = vsel %vm2722_vm13, %v2694_v62, %v2751_v1  ;;  %v6996_v14 = vpop.f32.mrb[8].mxu0  ;;  %v2859_v22 = vld [vmem:[#allocation2 + $0x9] sm:$0xff]  ;;  %v2835_v35 = vld [vmem:[#allocation2 + $0x18] sm:$0xff] }
 0x2ca   : > { %v2884_v21 = vmax.f32 %v2832_v48, %v2858_v53  ;;  %2808 = vst.msk [vmem:[#allocation2 + $0x28] sm:$0xff] %vm2802_vm6, %v2779_v13  ;;  %v2699_v24 = vadd.f32 %v6996_v14, %v8503_v26  ;;  %v2575_v27 = vpop.f32.mrb[9].mxu0  ;;  %v2833_v16 = vld [vmem:[#allocation2 + $0x8] sm:$0xff] }
 0x2cb   : > { %v2697_v30 = vadd.f32 %v8503_v26, %v2575_v27  ;;  %v6997_v4 = vpop.f32.mrb[10].mxu0  ;;  %v2885_v47 = vmax.f32 %v2833_v16, %v2859_v22  ;;  %v3206_v22 = vsel %vm3064_vm3, %v7826_v15, 0 }
 0x2cc   : > { %v2919_v60 = vmax.f32 %v2884_v21, %v8529_v12  ;;  %vm2727_vm14 = vcmp.gt.f32.partialorder %v2699_v24, 0.0  ;;  %v2756_v2 = vmul.f32 %v8505_v36, %v2699_v24  ;;  %v2700_v3 = vadd.f32 %v6997_v4, %v8503_v26  ;;  %v2578_v9 = vpop.f32.mrb[11].mxu0 }
 0x2cd   : > { %vm2725_vm15 = vcmp.gt.f32.partialorder %v2697_v30, 0.0  ;;  %v2754_v23 = vmul.f32 %v8505_v36, %v2697_v30  ;;  %v2698_v28 = vadd.f32 %v8503_v26, %v2578_v9 }
 0x2ce   : > { %2945 = vst.msk [vmem:[#allocation3] sm:$0xff] %vm2802_vm6, %v2919_v60  ;;  %v2784_v29 = vsel %vm2727_vm14, %v2699_v24, %v2756_v2  ;;  %vm2728_vm0 = vcmp.gt.f32.partialorder %v2700_v3, 0.0  ;;  %v2757_v34 = vmul.f32 %v8505_v36, %v2700_v3  ;;  %v2838_v17 = vld [vmem:[#allocation2 + $0x30] sm:$0xff] }
 0x2cf   : > { %v2861_v40 = vld [vmem:[#allocation2 + $0x19] sm:$0xff]  ;;  %2813 = vst.msk [vmem:[#allocation2 + $0x50] sm:$0xff] %vm2802_vm6, %v2784_v29  ;;  %v2782_v41 = vsel %vm2725_vm15, %v2697_v30, %v2754_v23  ;;  %vm2726_vm1 = vcmp.gt.f32.partialorder %v2698_v28, 0.0  ;;  %v2755_v46 = vmul.f32 %v8505_v36, %v2698_v28 }
 0x2d0   : > { %v2836_v18 = vld [vmem:[#allocation2 + $0x20] sm:$0xff]  ;;  %v2887_v25 = vmax.f32 %v2835_v35, %v2861_v40  ;;  %v2864_v33 = vld [vmem:[#allocation2 + $0x31] sm:$0xff]  ;;  %2811 = vst.msk [vmem:[#allocation2 + $0x40] sm:$0xff] %vm2802_vm6, %v2782_v41  ;;  %v2785_v54 = vsel %vm2728_vm0, %v2700_v3, %v2757_v34 }
 0x2d1   : > { %v8545_v63 = vmax.f32 %v2838_v17, %v2864_v33  ;;  %v2837_v0 = vld [vmem:[#allocation2 + $0x28] sm:$0xff]  ;;  %2814 = vst.msk [vmem:[#allocation2 + $0x58] sm:$0xff] %vm2802_vm6, %v2785_v54  ;;  %v2783_v19 = vsel %vm2726_vm1, %v2698_v28, %v2755_v46  ;;  %v7000_v20 = vpop.f32.mrb[12].mxu0  ;;  %v2839_v57 = vld [vmem:[#allocation2 + $0x38] sm:$0xff]  ;;  %vm2830_vm1 = vcmask 78848  }
 0x2d2   : > { %v2862_v7 = vld [vmem:[#allocation2 + $0x21] sm:$0xff]  ;;  %v2863_v8 = vld [vmem:[#allocation2 + $0x29] sm:$0xff]  ;;  %v2920_v31 = vmax.f32 %v2885_v47, %v2887_v25  ;;  %2812 = vst.msk [vmem:[#allocation2 + $0x48] sm:$0xff] %vm2802_vm6, %v2783_v19  ;;  %v2703_v39 = vadd.f32 %v7000_v20, %v8503_v26  ;;  %v2591_v42 = vpop.f32.mrb[13].mxu0 }
 0x2d3   : > { %v2888_v32 = vmax.f32 %v2836_v18, %v2862_v7  ;;  %v2889_v38 = vmax.f32 %v2837_v0, %v2863_v8  ;;  %v2701_v43 = vadd.f32 %v8503_v26, %v2591_v42  ;;  %v7001_v44 = vpop.f32.mrb[14].mxu0 }
 0x2d4   : > { %2946 = vst.msk [vmem:[#allocation3 + $0x8] sm:$0xff] %vm2802_vm6, %v2920_v31  ;;  %vm2731_vm2 = vcmp.gt.f32.partialorder %v2703_v39, 0.0  ;;  %v2594_v51 = vpop.f32.mrb[15].mxu0  ;;  %v2760_v52 = vmul.f32 %v8505_v36, %v2703_v39  ;;  %v2704_v59 = vadd.f32 %v7001_v44, %v8503_v26 }
 0x2d5   : > { %v2921_v45 = vmax.f32 %v8529_v12, %v2888_v32  ;;  %v2922_v49 = vmax.f32 %v2887_v25, %v2889_v38  ;;  %v2923_v50 = vmax.f32 %v2888_v32, %v8545_v63  ;;  %vm2729_vm5 = vcmp.gt.f32.partialorder %v2701_v43, 0.0 }
 0x2d6   : > { %v2758_v56 = vmul.f32 %v8505_v36, %v2701_v43  ;;  %v2702_v55 = vadd.f32 %v8503_v26, %v2594_v51  ;;  %v2788_v62 = vsel %vm2731_vm2, %v2703_v39, %v2760_v52  ;;  %vm2732_vm7 = vcmp.gt.f32.partialorder %v2704_v59, 0.0  ;;  %v2842_v1 = vld [vmem:[#allocation2 + $0x50] sm:$0xff] }
 0x2d7   : > { %2947 = vst.msk [vmem:[#allocation3 + $0x10] sm:$0xff] %vm2802_vm6, %v2921_v45  ;;  %2948 = vst.msk [vmem:[#allocation3 + $0x18] sm:$0xff] %vm2802_vm6, %v2922_v49  ;;  %v2865_v58 = vld [vmem:[#allocation2 + $0x39] sm:$0xff]  ;;  %v2761_v61 = vmul.f32 %v8505_v36, %v2704_v59 }
 0x2d8   : > { %2949 = vst.msk [vmem:[#allocation3 + $0x20] sm:$0xff] %vm2802_vm6, %v2923_v50  ;;  %v2786_v37 = vsel %vm2729_vm5, %v2701_v43, %v2758_v56  ;;  %v2840_v5 = vld [vmem:[#allocation2 + $0x40] sm:$0xff]  ;;  %v2891_v6 = vmax.f32 %v2839_v57, %v2865_v58  ;;  %v2868_v11 = vld [vmem:[#allocation2 + $0x51] sm:$0xff]  ;;  %2817 = vst.msk [vmem:[#allocation2 + $0x70] sm:$0xff] %vm2802_vm6, %v2788_v62  ;;  %vm2730_vm8 = vcmp.gt.f32.partialorder %v2702_v55, 0.0  ;;  %v2759_v48 = vmul.f32 %v8505_v36, %v2702_v55 }
 0x2d9   : > { %2815 = vst.msk [vmem:[#allocation2 + $0x60] sm:$0xff] %vm2802_vm6, %v2786_v37  ;;  %v8568_v12 = vmax.f32 %v2842_v1, %v2868_v11  ;;  %v2841_v53 = vld [vmem:[#allocation2 + $0x48] sm:$0xff]  ;;  %v2789_v21 = vsel %vm2732_vm7, %v2704_v59, %v2761_v61  ;;  %v7004_v24 = vpop.f32.mrb[16].mxu0  ;;  %v2843_v33 = vld [vmem:[#allocation2 + $0x58] sm:$0xff] }
 0x2da   : > { %v2866_v13 = vld [vmem:[#allocation2 + $0x41] sm:$0xff]  ;;  %v2867_v14 = vld [vmem:[#allocation2 + $0x49] sm:$0xff]  ;;  %v2924_v27 = vmax.f32 %v2889_v38, %v2891_v6  ;;  %2818 = vst.msk [vmem:[#allocation2 + $0x78] sm:$0xff] %vm2802_vm6, %v2789_v21  ;;  %v2787_v60 = vsel %vm2730_vm8, %v2702_v55, %v2759_v48  ;;  %v2607_v2 = vpop.f32.mrb[17].mxu0  ;;  %v2707_v3 = vadd.f32 %v7004_v24, %v8503_v26 }
 0x2db   : > { %v2892_v30 = vmax.f32 %v2840_v5, %v2866_v13  ;;  %v8570_v4 = vmax.f32 %v2841_v53, %v2867_v14  ;;  %2816 = vst.msk [vmem:[#allocation2 + $0x68] sm:$0xff] %vm2802_vm6, %v2787_v60  ;;  %v2705_v9 = vadd.f32 %v8503_v26, %v2607_v2  ;;  %v7005_v16 = vpop.f32.mrb[18].mxu0  ;;  %v3002_v46 = vld [vmem:[#allocation3 + $0x2] sm:$0xff] }
 0x2dc   : > { %2950 = vst.msk [vmem:[#allocation3 + $0x28] sm:$0xff] %vm2802_vm6, %v2924_v27  ;;  %v2708_v34 = vadd.f32 %v7005_v16, %v8503_v26  ;;  %v2610_v35 = vpop.f32.mrb[19].mxu0  ;;  %vm2735_vm9 = vcmp.gt.f32.partialorder %v2707_v3, 0.0  ;;  %v2764_v40 = vmul.f32 %v8505_v36, %v2707_v3 }
 0x2dd   : > { %v2925_v23 = vmax.f32 %v8545_v63, %v2892_v30  ;;  %v2926_v28 = vmax.f32 %v2891_v6, %v8570_v4  ;;  %v2927_v29 = vmax.f32 %v2892_v30, %v8568_v12  ;;  %vm2733_vm10 = vcmp.gt.f32.partialorder %v2705_v9, 0.0 }
 0x2de   : > { %v2762_v41 = vmul.f32 %v8505_v36, %v2705_v9  ;;  %v3003_v47 = vld [vmem:[#allocation3 + $0xa] sm:$0xff]  ;;  %vm2736_vm11 = vcmp.gt.f32.partialorder %v2708_v34, 0.0  ;;  %v2765_v17 = vmul.f32 %v8505_v36, %v2708_v34  ;;  %v2706_v18 = vadd.f32 %v8503_v26, %v2610_v35  ;;  %v3004_v20 = vld [vmem:[#allocation3 + $0x12] sm:$0xff] }
 0x2df   : > { %2953 = vst.msk [vmem:[#allocation3 + $0x40] sm:$0xff] %vm2802_vm6, %v2927_v29  ;;  %2951 = vst.msk [vmem:[#allocation3 + $0x30] sm:$0xff] %vm2802_vm6, %v2925_v23  ;;  %v3020_v25 = vpack.c.bf16 %v3003_v47, %v3002_v46  ;;  %v2792_v63 = vsel %vm2735_vm9, %v2707_v3, %v2764_v40  ;;  %v3005_v31 = vld [vmem:[#allocation3 + $0x1a] sm:$0xff]  ;;  %v2846_v32 = vld [vmem:[#allocation2 + $0x70] sm:$0xff]  ;;  %vm2970_vm9 = vcmask 77824  }
 0x2e0   : > { %2952 = vst.msk [vmem:[#allocation3 + $0x38] sm:$0xff] %vm2802_vm6, %v2926_v28  ;;  %v2869_v54 = vld [vmem:[#allocation2 + $0x59] sm:$0xff]  ;;  %v2790_v0 = vsel %vm2733_vm10, %v2705_v9, %v2762_v41  ;;  %2821 = vst.msk [vmem:[#allocation2 + $0x90] sm:$0xff] %vm2802_vm6, %v2792_v63  ;;  %v2793_v8 = vsel %vm2736_vm11, %v2708_v34, %v2765_v17  ;;  %vm2734_vm12 = vcmp.gt.f32.partialorder %v2706_v18, 0.0  ;;  %v2763_v19 = vmul.f32 %v8505_v36, %v2706_v18 }
 0x2e1   : > { %v2895_v7 = vmax.f32 %v2843_v33, %v2869_v54  ;;  %2819 = vst.msk [vmem:[#allocation2 + $0x80] sm:$0xff] %vm2802_vm6, %v2790_v0  ;;  %7017 = vmatmul.mubr.msk.bf16.vlgmr.msra.gmra.mrb[0].mxu1 %vm2802_vm6, %v3020_v25  ;;  %v2844_v38 = vld [vmem:[#allocation2 + $0x60] sm:$0xff]  ;;  %v2872_v39 = vld [vmem:[#allocation2 + $0x71] sm:$0xff]  ;;  %2822 = vst.msk [vmem:[#allocation2 + $0x98] sm:$0xff] %vm2802_vm6, %v2793_v8  ;;  %v7008_v42 = vpop.f32.mrb[20].mxu0  ;;  %v3021_v15 = vpack.c.bf16 %v3005_v31, %v3004_v20 }
 0x2e2   : > { %7053 = vmatpush3.bf16.msra.mxu1 %v3206_v22  ;;  %7020 = vmatprep.mubr.msk.bf16.mxu1 %vm7911_vm4, %v9870_v10  ;;  %v8597_v44 = vmax.f32 %v2846_v32, %v2872_v39  ;;  %v2845_v45 = vld [vmem:[#allocation2 + $0x68] sm:$0xff]  ;;  %v2791_v51 = vsel %vm2734_vm12, %v2706_v18, %v2763_v19  ;;  %v2711_v52 = vadd.f32 %v7008_v42, %v8503_v26  ;;  %v2623_v56 = vpop.f32.mrb[21].mxu0  ;;  %v2847_v13 = vld [vmem:[#allocation2 + $0x78] sm:$0xff] }
 0x2e3   : > { %v2928_v43 = vmax.f32 %v8570_v4, %v2895_v7  ;;  %v2870_v49 = vld [vmem:[#allocation2 + $0x61] sm:$0xff]  ;;  %v2871_v50 = vld [vmem:[#allocation2 + $0x69] sm:$0xff]  ;;  %7090 = vmatprep.subr.bf16.mxu1 %v9870_v10  ;;  %2820 = vst.msk [vmem:[#allocation2 + $0x88] sm:$0xff] %vm2802_vm6, %v2791_v51  ;;  %v2709_v57 = vadd.f32 %v8503_v26, %v2623_v56  ;;  %v7009_v58 = vpop.f32.mrb[22].mxu0 }
 0x2e4   : > { %v2896_v59 = vmax.f32 %v2844_v38, %v2870_v49  ;;  %v2897_v55 = vmax.f32 %v2845_v45, %v2871_v50  ;;  %vm2739_vm13 = vcmp.gt.f32.partialorder %v2711_v52, 0.0  ;;  %v2768_v62 = vmul.f32 %v8505_v36, %v2711_v52  ;;  %v2626_v61 = vpop.f32.mrb[23].mxu0  ;;  %v3006_v18 = vld [vmem:[#allocation3 + $0x22] sm:$0xff] }
 0x2e5   : > { %2954 = vst.msk [vmem:[#allocation3 + $0x48] sm:$0xff] %vm2802_vm6, %v2928_v43  ;;  %v2712_v37 = vadd.f32 %v7009_v58, %v8503_v26  ;;  %vm2737_vm14 = vcmp.gt.f32.partialorder %v2709_v57, 0.0  ;;  %v2766_v48 = vmul.f32 %v8505_v36, %v2709_v57 }
 0x2e6   : > { %v2929_v1 = vmax.f32 %v8568_v12, %v2896_v59  ;;  %v2930_v5 = vmax.f32 %v2895_v7, %v2897_v55  ;;  %v2931_v6 = vmax.f32 %v2896_v59, %v8597_v44  ;;  %v2796_v11 = vsel %vm2739_vm13, %v2711_v52, %v2768_v62  ;;  %v3007_v16 = vld [vmem:[#allocation3 + $0x2a] sm:$0xff] }
 0x2e7   : > { %vm2740_vm15 = vcmp.gt.f32.partialorder %v2712_v37, 0.0  ;;  %v2769_v53 = vmul.f32 %v8505_v36, %v2712_v37  ;;  %2825 = vst.msk [vmem:[#allocation2 + $0xb0] sm:$0xff] %vm2802_vm6, %v2796_v11  ;;  %v2710_v12 = vadd.f32 %v8503_v26, %v2626_v61  ;;  %v2850_v21 = vld [vmem:[#allocation2 + $0x90] sm:$0xff]  ;;  %v2794_v30 = vsel %vm2737_vm14, %v2709_v57, %v2766_v48  ;;  %v3009_v57 = vld [vmem:[#allocation3 + $0x3a] sm:$0xff] }
 0x2e8   : > { %2955 = vst.msk [vmem:[#allocation3 + $0x50] sm:$0xff] %vm2802_vm6, %v2929_v1  ;;  %2956 = vst.msk [vmem:[#allocation3 + $0x58] sm:$0xff] %vm2802_vm6, %v2930_v5  ;;  %v2873_v14 = vld [vmem:[#allocation2 + $0x79] sm:$0xff]  ;;  %v2876_v27 = vld [vmem:[#allocation2 + $0x91] sm:$0xff]  ;;  %v8630_v63 = vpack.c.bf16 %v3007_v16, %v3006_v18 }
 0x2e9   : > { %2957 = vst.msk [vmem:[#allocation3 + $0x60] sm:$0xff] %vm2802_vm6, %v2931_v6  ;;  %v2899_v24 = vmax.f32 %v2847_v13, %v2873_v14  ;;  %v2797_v4 = vsel %vm2740_vm15, %v2712_v37, %v2769_v53  ;;  %7021 = vmatmul.mubr.msk.bf16.gmra.mrb[4].mxu1 %vm2802_vm6, %v3021_v15  ;;  %v2848_v60 = vld [vmem:[#allocation2 + $0x80] sm:$0xff]  ;;  %v8617_v2 = vmax.f32 %v2850_v21, %v2876_v27  ;;  %2823 = vst.msk [vmem:[#allocation2 + $0xa0] sm:$0xff] %vm2802_vm6, %v2794_v30  ;;  %v7012_v9 = vpop.f32.mrb[24].mxu0  ;;  %v2851_v43 = vld [vmem:[#allocation2 + $0x98] sm:$0xff] }
 0x2ea   : > { %2826 = vst.msk [vmem:[#allocation2 + $0xb8] sm:$0xff] %vm2802_vm6, %v2797_v4  ;;  %vm2738_vm0 = vcmp.gt.f32.partialorder %v2710_v12, 0.0  ;;  %v2767_v3 = vmul.f32 %v8505_v36, %v2710_v12  ;;  %7024 = vmatprep.mubr.msk.bf16.mxu1 %vm7911_vm4, %v9870_v10  ;;  %v2849_v23 = vld [vmem:[#allocation2 + $0x88] sm:$0xff]  ;;  %v2715_v34 = vadd.f32 %v7012_v9, %v8503_v26  ;;  %v2639_v35 = vpop.f32.mrb[25].mxu0 }
 0x2eb   : > { %v2932_v22 = vmax.f32 %v2897_v55, %v2899_v24  ;;  %v2874_v28 = vld [vmem:[#allocation2 + $0x81] sm:$0xff]  ;;  %v2875_v29 = vld [vmem:[#allocation2 + $0x89] sm:$0xff]  ;;  %v2713_v47 = vadd.f32 %v8503_v26, %v2639_v35  ;;  %v7013_v17 = vpop.f32.mrb[26].mxu0  ;;  %v3008_v55 = vld [vmem:[#allocation3 + $0x32] sm:$0xff] }
 0x2ec   : > { %v2900_v40 = vmax.f32 %v2848_v60, %v2874_v28  ;;  %v2901_v41 = vmax.f32 %v2849_v23, %v2875_v29  ;;  %v2795_v46 = vsel %vm2738_vm0, %v2710_v12, %v2767_v3  ;;  %vm2743_vm2 = vcmp.gt.f32.partialorder %v2715_v34, 0.0  ;;  %v2642_v54 = vpop.f32.mrb[27].mxu0  ;;  %v4253_v32 = vld [vmem:[#allocation3 + $0x42] sm:$0xff] }
 0x2ed   : > { %2958 = vst.msk [vmem:[#allocation3 + $0x68] sm:$0xff] %vm2802_vm6, %v2932_v22  ;;  %2824 = vst.msk [vmem:[#allocation2 + $0xa8] sm:$0xff] %vm2802_vm6, %v2795_v46  ;;  %v2772_v25 = vmul.f32 %v8505_v36, %v2715_v34  ;;  %v2716_v33 = vadd.f32 %v7013_v17, %v8503_v26  ;;  %vm2741_vm5 = vcmp.gt.f32.partialorder %v2713_v47, 0.0  ;;  %v2770_v20 = vmul.f32 %v8505_v36, %v2713_v47 }
 0x2ee   : > { %v2933_v0 = vmax.f32 %v8597_v44, %v2900_v40  ;;  %v2934_v7 = vmax.f32 %v2899_v24, %v2901_v41  ;;  %v2935_v8 = vmax.f32 %v2900_v40, %v8617_v2  ;;  %v2714_v39 = vadd.f32 %v8503_v26, %v2642_v54  ;;  %v2854_v50 = vld [vmem:[#allocation2 + $0xb0] sm:$0xff] }
 0x2ef   : > { %v2800_v19 = vsel %vm2743_vm2, %v2715_v34, %v2772_v25  ;;  %vm2744_vm7 = vcmp.gt.f32.partialorder %v2716_v33, 0.0  ;;  %v2773_v31 = vmul.f32 %v8505_v36, %v2716_v33  ;;  %v4254_v38 = vld [vmem:[#allocation3 + $0x4a] sm:$0xff]  ;;  %v2798_v45 = vsel %vm2741_vm5, %v2713_v47, %v2770_v20  ;;  %v4255_v5 = vld [vmem:[#allocation3 + $0x52] sm:$0xff] }
 0x2f0   : > { %2959 = vst.msk [vmem:[#allocation3 + $0x70] sm:$0xff] %vm2802_vm6, %v2933_v0  ;;  %2960 = vst.msk [vmem:[#allocation3 + $0x78] sm:$0xff] %vm2802_vm6, %v2934_v7  ;;  %v8641_v42 = vpack.c.bf16 %v4254_v38, %v4253_v32  ;;  %v2877_v44 = vld [vmem:[#allocation2 + $0x99] sm:$0xff]  ;;  %vm2742_vm8 = vcmp.gt.f32.partialorder %v2714_v39, 0.0  ;;  %v2771_v56 = vmul.f32 %v8505_v36, %v2714_v39  ;;  %v8657_v13 = vpack.c.bf16 %v3009_v57, %v3008_v55 }
 0x2f1   : > { %2961 = vst.msk [vmem:[#allocation3 + $0x80] sm:$0xff] %vm2802_vm6, %v2935_v8  ;;  %2829 = vst.msk [vmem:[#allocation2 + $0xd0] sm:$0xff] %vm2802_vm6, %v2800_v19  ;;  %v2801_v49 = vsel %vm2744_vm7, %v2716_v33, %v2773_v31  ;;  %7025 = vmatmul.mubr.msk.bf16.gmra.mrb[8].mxu1 %vm2802_vm6, %v8630_v63  ;;  %v2903_v51 = vmax.f32 %v2851_v43, %v2877_v44  ;;  %v2880_v52 = vld [vmem:[#allocation2 + $0xb1] sm:$0xff]  ;;  %v2852_v26 = vld [vmem:[#allocation2 + $0xa0] sm:$0xff] }
 0x2f2   : > { %2827 = vst.msk [vmem:[#allocation2 + $0xc0] sm:$0xff] %vm2802_vm6, %v2798_v45  ;;  %7283 = vmatmul.mubr.msk.bf16.vlgmr.msra.gmra.mrb[28].mxu0 %vm2802_vm6, %v8641_v42  ;;  %7028 = vmatprep.mubr.msk.bf16.mxu1 %vm7911_vm4, %v9870_v10  ;;  %v2906_v59 = vmax.f32 %v2854_v50, %v2880_v52  ;;  %v2799_v15 = vsel %vm2742_vm8, %v2714_v39, %v2771_v56  ;;  %v4256_v6 = vld [vmem:[#allocation3 + $0x5a] sm:$0xff]  ;;  %v2974_v52 = vld [vmem:[#allocation3 + $0x8] sm:$0xff] }
 0x2f3   : > { %2831 = vst.msk [vmem:[#allocation2 + $0xd8] sm:$0x3f] %vm2830_vm1, %v2801_v49  ;;  %7286 = vmatprep.mubr.msk.bf16.mxu0 %vm7911_vm4, %v9870_v10  ;;  %v2936_v58 = vmax.f32 %v2901_v41, %v2903_v51  ;;  %v8659_v14 = vpack.c.bf16 %v4256_v6, %v4255_v5  ;;  %v2855_v12 = vld [vmem:[#allocation2 + $0xb8] sm:$0xff]  ;;  %v2978_v5 = vld [vmem:[#allocation3 + $0x28] sm:$0xff]  ;;  %v2977_v6 = vld [vmem:[#allocation3 + $0x20] sm:$0xff] }
 0x2f4   : > { %v2853_v62 = vld [vmem:[#allocation2 + $0xa8] sm:$0xff]  ;;  %2828 = vst.msk [vmem:[#allocation2 + $0xc8] sm:$0xff] %vm2802_vm6, %v2799_v15 }
 0x2f5   : > { %v2878_v37 = vld [vmem:[#allocation2 + $0xa1] sm:$0xff]  ;;  %v2879_v61 = vld [vmem:[#allocation2 + $0xa9] sm:$0xff]  ;;  %2962 = vst.msk [vmem:[#allocation3 + $0x88] sm:$0xff] %vm2802_vm6, %v2936_v58 }
 0x2f6   : > { %v2904_v1 = vmax.f32 %v2852_v26, %v2878_v37  ;;  %v2905_v36 = vmax.f32 %v2853_v62, %v2879_v61  ;;  %v4257_v25 = vld [vmem:[#allocation3 + $0x62] sm:$0xff]  ;;  %v2975_v62 = vld [vmem:[#allocation3 + $0x10] sm:$0xff]  ;;  %v2976_v37 = vld [vmem:[#allocation3 + $0x18] sm:$0xff] }
 0x2f7   : > { %v4258_v41 = vld [vmem:[#allocation3 + $0x6a] sm:$0xff]  ;;  %v4259_v0 = vld [vmem:[#allocation3 + $0x72] sm:$0xff] }
 0x2f8   : > { %v2937_v11 = vmax.f32 %v8617_v2, %v2904_v1  ;;  %v2938_v48 = vmax.f32 %v2903_v51, %v2905_v36  ;;  %v2939_v53 = vmax.f32 %v2904_v1, %v2906_v59  ;;  %v2911_v27 = vld [vmem:[#allocation2 + $0xd0] sm:$0xff]  ;;  %v8673_v54 = vpack.c.bf16 %v4258_v41, %v4257_v25  ;;  %v4260_v7 = vld [vmem:[#allocation3 + $0x7a] sm:$0xff]  ;;  %v3313_v41 = vld [vmem:[#allocation3 + $0x4] sm:$0xff] }
 0x2f9   : > { %v2881_v21 = vld [vmem:[#allocation2 + $0xb9] sm:$0xff]  ;;  %7029 = vmatmul.mubr.msk.bf16.gmra.mrb[12].mxu1 %vm2802_vm6, %v8657_v13  ;;  %v8686_v8 = vpack.c.bf16 %v4260_v7, %v4259_v0  ;;  %v7828_v51 = vld [vmem:[%s9863_s4 + $0x10] sm:$0x1f]   ;;  %v2992_v1 = vpack.c.bf16 %v2976_v37, %v2975_v62  ;;  %v3317_v0 = vld [vmem:[#allocation3 + $0x24] sm:$0xff] }
 0x2fa   : > { %2963 = vst.msk [vmem:[#allocation3 + $0x90] sm:$0xff] %vm2802_vm6, %v2937_v11  ;;  %2964 = vst.msk [vmem:[#allocation3 + $0x98] sm:$0xff] %vm2802_vm6, %v2938_v48  ;;  %v2912_v24 = vld [vmem:[#allocation2 + $0xd8] sm:$0x1f]  ;;  %v2907_v30 = vmax.f32 %v2855_v12, %v2881_v21  ;;  %7287 = vmatmul.mubr.msk.bf16.gmra.mrb[32].mxu0 %vm2802_vm6, %v8659_v14  ;;  %7032 = vmatprep.mubr.msk.bf16.mxu1 %vm7911_vm4, %v9870_v10  ;;  %v2856_v2 = vld [vmem:[#allocation2 + $0xc0] sm:$0xff]  ;;  %v3376_v57 = vsel %vm3064_vm3, %v7828_v51, 0  ;;  %v8742_v11 = vpack.c.bf16 %v2978_v5, %v2977_v6 }
 0x2fb   : > { %2965 = vst.msk [vmem:[#allocation3 + $0xa0] sm:$0xff] %vm2802_vm6, %v2939_v53  ;;  %v2914_v4 = vld [vmem:[#allocation2 + $0xd1] sm:$0xff]  ;;  %v2915_v60 = vld [vmem:[#allocation2 + $0xd9] sm:$0x1f]  ;;  %7290 = vmatprep.mubr.msk.bf16.mxu0 %vm7911_vm4, %v9870_v10  ;;  %v2857_v22 = vld [vmem:[#allocation2 + $0xc8] sm:$0x1f] }
 0x2fc   : > { %v2917_v3 = vmax.f32 %v2911_v27, %v2914_v4  ;;  %v2918_v9 = vmax.f32 %v2912_v24, %v2915_v60  ;;  %v2940_v16 = vmax.f32 %v2905_v36, %v2907_v30  ;;  %v2882_v23 = vld [vmem:[#allocation2 + $0xc1] sm:$0xff]  ;;  %v2883_v28 = vld [vmem:[#allocation2 + $0xc9] sm:$0x1f]  ;;  %v2979_v48 = vld [vmem:[#allocation3 + $0x30] sm:$0xff] }
 0x2fd   : > { %v2908_v29 = vmax.f32 %v2856_v2, %v2882_v23  ;;  %v2909_v34 = vmax.f32 %v2857_v22, %v2883_v28  ;;  %v2910_v35 = vld [vmem:[#allocation2 + $0xc8] sm:$0xff]  ;;  %v2980_v53 = vld [vmem:[#allocation3 + $0x38] sm:$0xff]  ;;  %v2981_v24 = vld [vmem:[#allocation3 + $0x40] sm:$0xff] }
 0x2fe   : > { %v2913_v40 = vld [vmem:[#allocation2 + $0xc9] sm:$0xff]  ;;  %2966 = vst.msk [vmem:[#allocation3 + $0xa8] sm:$0xff] %vm2802_vm6, %v2940_v16  ;;  %v8748_v12 = vpack.c.bf16 %v2980_v53, %v2979_v48  ;;  %v2984_v4 = vld [vmem:[#allocation3 + $0x58] sm:$0xff]  ;;  %v2990_v28 = vld [vmem:[#allocation3 + $0x88] sm:$0x1] }
 0x2ff   : > { %v2916_v46 = vmax.f32 %v2910_v35, %v2913_v40  ;;  %v2941_v47 = vmax.f32 %v2906_v59, %v2908_v29  ;;  %v2943_v17 = vmax.f32 %v2908_v29, %v2917_v3  ;;  %v2944_v18 = vmax.f32 %v2909_v34, %v2918_v9  ;;  %v4261_v20 = vld [vmem:[#allocation3 + $0x82] sm:$0xff]  ;;  %v3019_v43 = vld [vmem:[#allocation3 + $0x8a] sm:$0x1]  ;;  %v2987_v16 = vld [vmem:[#allocation3 + $0x70] sm:$0xff] }
 0x300   : > { %v3028_v45 = vpack.c.bf16 %v3019_v43, %v4261_v20  ;;  %v2973_v59 = vld [vmem:[#allocation3] sm:$0xff]  ;;  %v2982_v21 = vld [vmem:[#allocation3 + $0x48] sm:$0xff]  ;;  %v2988_v22 = vld [vmem:[#allocation3 + $0x78] sm:$0xff] }
 0x301   : > { %v2942_v33 = vmax.f32 %v2907_v30, %v2916_v46  ;;  %2967 = vst.msk [vmem:[#allocation3 + $0xb0] sm:$0xff] %vm2802_vm6, %v2941_v47  ;;  %2969 = vst.msk [vmem:[#allocation3 + $0xc0] sm:$0xff] %vm2802_vm6, %v2943_v17  ;;  %7033 = vmatmul.mubr.msk.bf16.gmra.mrb[16].mxu1 %vm2802_vm6, %v8641_v42  ;;  %v4262_v19 = vld [vmem:[#allocation3 + $0x8a] sm:$0xff]  ;;  %v4263_v32 = vld [vmem:[#allocation3 + $0x92] sm:$0xff]  ;;  %v2991_v55 = vpack.c.bf16 %v2974_v52, %v2973_v59  ;;  %v8754_v27 = vpack.c.bf16 %v2982_v21, %v2981_v24 }
 0x302   : > { %2971 = vst.msk [vmem:[#allocation3 + $0xc8] sm:$0x1f] %vm2970_vm9, %v2944_v18  ;;  %7291 = vmatmul.mubr.msk.bf16.gmra.mrb[36].mxu0 %vm2802_vm6, %v8673_v54  ;;  %7036 = vmatprep.mubr.msk.bf16.mxu1 %vm7911_vm4, %v9870_v10  ;;  %v8696_v31 = vpack.c.bf16 %v4262_v19, %v4261_v20  ;;  %v4264_v38 = vld [vmem:[#allocation3 + $0x9a] sm:$0xff]  ;;  %v2983_v30 = vld [vmem:[#allocation3 + $0x50] sm:$0xff]  ;;  %v2986_v2 = vld [vmem:[#allocation3 + $0x68] sm:$0xff]  ;;  %v8772_v23 = vpack.c.bf16 %v2988_v22, %v2987_v16 }
 0x303   : > { %2968 = vst.msk [vmem:[#allocation3 + $0xb8] sm:$0xff] %vm2802_vm6, %v2942_v33  ;;  %7294 = vmatprep.mubr.msk.bf16.mxu0 %vm7911_vm4, %v9870_v10  ;;  %v8706_v39 = vpack.c.bf16 %v4264_v38, %v4263_v32  ;;  %v8760_v60 = vpack.c.bf16 %v2984_v4, %v2983_v30  ;;  %v2985_v3 = vld [vmem:[#allocation3 + $0x60] sm:$0xff]  ;;  %v7829_v35 = vld [vmem:[%s9863_s4 + $0x18] sm:$0x1f]   ;;  %v3314_v40 = vld [vmem:[#allocation3 + $0xc] sm:$0xff] }
 0x304   : > { %v8766_v9 = vpack.c.bf16 %v2986_v2, %v2985_v3  ;;  %v8778_v29 = vld [vmem:[#allocation3 + $0x80] sm:$0xff]  ;;  %v3331_v46 = vpack.c.bf16 %v3314_v40, %v3313_v41  ;;  %v3564_v47 = vsel %vm3064_vm3, %v7829_v35, 0  ;;  %v3315_v17 = vld [vmem:[#allocation3 + $0x14] sm:$0xff]  ;;  %v3318_v33 = vld [vmem:[#allocation3 + $0x2c] sm:$0xff] }
 0x305   : > { %v8716_v49 = vld [vmem:[#allocation3 + $0xa2] sm:$0xff]  ;;  %v2999_v34 = vpack.c.bf16 %v2990_v28, %v8778_v29  ;;  %v8795_v7 = vpack.c.bf16 %v3318_v33, %v3317_v0  ;;  %v3319_v19 = vld [vmem:[#allocation3 + $0x34] sm:$0xff]  ;;  %v3322_v38 = vld [vmem:[#allocation3 + $0x4c] sm:$0xff] }
 0x306   : > { %v3316_v18 = vld [vmem:[#allocation3 + $0x1c] sm:$0xff]  ;;  %v3321_v43 = vld [vmem:[#allocation3 + $0x44] sm:$0xff]  ;;  %v3326_v52 = vld [vmem:[#allocation3 + $0x6c] sm:$0xff] }
 0x307   : > { %v3332_v25 = vpack.c.bf16 %v3316_v18, %v3315_v17  ;;  %v3320_v20 = vld [vmem:[#allocation3 + $0x3c] sm:$0xff]  ;;  %v3327_v59 = vld [vmem:[#allocation3 + $0x74] sm:$0xff]  ;;  %v3330_v62 = vld [vmem:[#allocation3 + $0x8c] sm:$0x1] }
 0x308   : > { %v4266_v44 = vld [vmem:[#allocation3 + $0xaa] sm:$0xff]  ;;  %v8801_v32 = vpack.c.bf16 %v3320_v20, %v3319_v19 }
 0x309   : > { %7037 = vmatmul.mubr.msk.bf16.gmra.mrb[20].mxu1 %vm2802_vm6, %v8659_v14  ;;  %v4277_v50 = vpack.c.bf16 %v4266_v44, %v8716_v49  ;;  %v4269_v61 = vld [vmem:[#allocation3 + $0xc2] sm:$0xff]  ;;  %v4270_v15 = vld [vmem:[#allocation3 + $0xca] sm:$0x1]  ;;  %v8807_v44 = vpack.c.bf16 %v3322_v38, %v3321_v43 }
 0x30a   : > { %7295 = vmatmul.mubr.msk.bf16.gmra.mrb[40].mxu0 %vm2802_vm6, %v8686_v8  ;;  %7040 = vmatprep.mubr.msk.bf16.mxu1 %vm7911_vm4, %v9870_v10  ;;  %v4267_v56 = vld [vmem:[#allocation3 + $0xb2] sm:$0xff]  ;;  %v4268_v26 = vld [vmem:[#allocation3 + $0xba] sm:$0xff]  ;;  %v4279_v36 = vpack.c.bf16 %v4270_v15, %v4269_v61 }
 0x30b   : > { %7298 = vmatprep.mubr.msk.bf16.mxu0 %vm7911_vm4, %v9870_v10  ;;  %v4278_v58 = vpack.c.bf16 %v4268_v26, %v4267_v56  ;;  %v3325_v56 = vld [vmem:[#allocation3 + $0x64] sm:$0xff] }
 0x30c   : > { %v8819_v26 = vpack.c.bf16 %v3326_v52, %v3325_v56  ;;  %v7830_v61 = vld [vmem:[%s9863_s4 + $0x20] sm:$0x1f]  }
 0x30d   : > { %v3752_v6 = vsel %vm3064_vm3, %v7830_v61, 0 }
 0x311   : > { %7041 = vmatmul.mubr.msk.bf16.gmra.mrb[24].mxu1 %vm2802_vm6, %v8673_v54 }
 0x312   : > { %7299 = vmatmul.mubr.msk.bf16.gmra.mrb[44].mxu0 %vm2802_vm6, %v8696_v31  ;;  %7044 = vmatprep.mubr.msk.bf16.mxu1 %vm7911_vm4, %v9870_v10 }
 0x313   : > { %7302 = vmatprep.mubr.msk.bf16.mxu0 %vm7911_vm4, %v9870_v10 }
 0x319   : > { %7045 = vmatmul.mubr.msk.bf16.gmra.mrb[28].mxu1 %vm2802_vm6, %v8686_v8 }
 0x31a   : > { %7303 = vmatmul.mubr.msk.bf16.gmra.mrb[48].mxu0 %vm2802_vm6, %v8706_v39  ;;  %7048 = vmatprep.mubr.msk.bf16.mxu1 %vm7911_vm4, %v9870_v10 }
 0x31b   : > { %7306 = vmatprep.mubr.msk.bf16.mxu0 %vm7911_vm4, %v9870_v10 }
 0x321   : > { %7049 = vmatmul.mubr.msk.bf16.gmra.mrb[32].mxu1 %vm2802_vm6, %v3028_v45  ;;  %v3323_v45 = vld [vmem:[#allocation3 + $0x54] sm:$0xff] }
 0x322   : > { %7307 = vmatmul.mubr.msk.bf16.gmra.mrb[52].mxu0 %vm2802_vm6, %v4277_v50  ;;  %7054 = vmatprep.mubr.msk.bf16.mxu1 %vm7911_vm4, %v9870_v10  ;;  %v3324_v50 = vld [vmem:[#allocation3 + $0x5c] sm:$0xff] }
 0x323   : > { %7310 = vmatprep.mubr.msk.bf16.mxu0 %vm7911_vm4, %v9870_v10  ;;  %v8813_v51 = vpack.c.bf16 %v3324_v50, %v3323_v45 }
 0x329   : > { %7055 = vmatmul.mubr.msk.bf16.vlgmr.msra.gmra.mrb[36].mxu1 %vm2802_vm6, %v2991_v55  ;;  %v3328_v55 = vld [vmem:[#allocation3 + $0x7c] sm:$0xff] }
 0x32a   : > { %7091 = vmatpush3.bf16.msra.mxu1 %v3376_v57  ;;  %7311 = vmatmul.mubr.msk.bf16.gmra.mrb[56].mxu0 %vm2802_vm6, %v4278_v58  ;;  %v8825_v57 = vpack.c.bf16 %v3328_v55, %v3327_v59  ;;  %v8831_v58 = vld [vmem:[#allocation3 + $0x84] sm:$0xff] }
 0x32b   : > { %7058 = vmatprep.mubr.msk.bf16.mxu1 %vm7911_vm4, %v9870_v10  ;;  %7314 = vmatprep.mubr.msk.bf16.mxu0 %vm7911_vm4, %v9870_v10  ;;  %v3339_v37 = vpack.c.bf16 %v3330_v62, %v8831_v58 }
 0x32c   : > { %7128 = vmatprep.subr.bf16.mxu1 %v9870_v10 }
 0x331   : > { %7059 = vmatmul.mubr.msk.bf16.gmra.mrb[40].mxu1 %vm2802_vm6, %v2992_v1 }
 0x332   : > { %7315 = vmatmul.mubr.msk.bf16.gmra.mrb[60].mxu0 %vm2802_vm6, %v4279_v36  ;;  %7062 = vmatprep.mubr.msk.bf16.mxu1 %vm7911_vm4, %v9870_v10 }
 0x333   : > { %7358 = vmatprep.mubr.msk.bf16.mxu0 %vm7911_vm4, %v9870_v10 }
 0x339   : > { %7063 = vmatmul.mubr.msk.bf16.gmra.mrb[44].mxu1 %vm2802_vm6, %v8742_v11 }
 0x33a   : > { %7066 = vmatprep.mubr.msk.bf16.mxu1 %vm7911_vm4, %v9870_v10 }
 0x341   : > { %7067 = vmatmul.mubr.msk.bf16.gmra.mrb[48].mxu1 %vm2802_vm6, %v8748_v12 }
 0x342   : > { %7070 = vmatprep.mubr.msk.bf16.mxu1 %vm7911_vm4, %v9870_v10 }
 0x349   : > { %7071 = vmatmul.mubr.msk.bf16.gmra.mrb[52].mxu1 %vm2802_vm6, %v8754_v27 }
 0x34a   : > { %7074 = vmatprep.mubr.msk.bf16.mxu1 %vm7911_vm4, %v9870_v10 }
 0x351   : > { %7075 = vmatmul.mubr.msk.bf16.gmra.mrb[56].mxu1 %vm2802_vm6, %v8760_v60 }
 0x352   : > { %7078 = vmatprep.mubr.msk.bf16.mxu1 %vm7911_vm4, %v9870_v10 }
 0x359   : > { %7079 = vmatmul.mubr.msk.bf16.gmra.mrb[60].mxu1 %vm2802_vm6, %v8766_v9 }
 0x35a   : > { %7082 = vmatprep.mubr.msk.bf16.mxu1 %vm7911_vm4, %v9870_v10 }
 0x361   : > { %7083 = vmatmul.mubr.msk.bf16.gmra.mrb[64].mxu1 %vm2802_vm6, %v8772_v23 }
 0x362   : > { %7086 = vmatprep.mubr.msk.bf16.mxu1 %vm7911_vm4, %v9870_v10 }
 0x369   : > { %7087 = vmatmul.mubr.msk.bf16.gmra.mrb[68].mxu1 %vm2802_vm6, %v2999_v34 }
 0x36a   : > { %7092 = vmatprep.mubr.msk.bf16.mxu1 %vm7911_vm4, %v9870_v10 }
 0x371   : > { %7093 = vmatmul.mubr.msk.bf16.vlgmr.msra.gmra.mrb[72].mxu1 %vm2802_vm6, %v3331_v46 }
 0x372   : > { %7129 = vmatpush3.bf16.msra.mxu1 %v3564_v47  ;;  %7096 = vmatprep.mubr.msk.bf16.mxu1 %vm7911_vm4, %v9870_v10 }
 0x373   : > { %7166 = vmatprep.subr.bf16.mxu1 %v9870_v10 }
 0x379   : > { %7097 = vmatmul.mubr.msk.bf16.gmra.mrb[76].mxu1 %vm2802_vm6, %v3332_v25 }
 0x37a   : > { %7100 = vmatprep.mubr.msk.bf16.mxu1 %vm7911_vm4, %v9870_v10 }
 0x381   : > { %7101 = vmatmul.mubr.msk.bf16.gmra.mrb[80].mxu1 %vm2802_vm6, %v8795_v7 }
 0x382   : > { %7104 = vmatprep.mubr.msk.bf16.mxu1 %vm7911_vm4, %v9870_v10 }
 0x389   : > { %7105 = vmatmul.mubr.msk.bf16.gmra.mrb[84].mxu1 %vm2802_vm6, %v8801_v32 }
 0x38a   : > { %7108 = vmatprep.mubr.msk.bf16.mxu1 %vm7911_vm4, %v9870_v10 }
 0x391   : > { %7109 = vmatmul.mubr.msk.bf16.gmra.mrb[88].mxu1 %vm2802_vm6, %v8807_v44 }
 0x392   : > { %7112 = vmatprep.mubr.msk.bf16.mxu1 %vm7911_vm4, %v9870_v10 }
 0x399   : > { %7113 = vmatmul.mubr.msk.bf16.gmra.mrb[92].mxu1 %vm2802_vm6, %v8813_v51 }
 0x39a   : > { %7116 = vmatprep.mubr.msk.bf16.mxu1 %vm7911_vm4, %v9870_v10 }
 0x3a1   : > { %7117 = vmatmul.mubr.msk.bf16.gmra.mrb[96].mxu1 %vm2802_vm6, %v8819_v26 }
 0x3a2   : > { %7120 = vmatprep.mubr.msk.bf16.mxu1 %vm7911_vm4, %v9870_v10 }
 0x3a9   : > { %7121 = vmatmul.mubr.msk.bf16.gmra.mrb[100].mxu1 %vm2802_vm6, %v8825_v57 }
 0x3aa   : > { %7124 = vmatprep.mubr.msk.bf16.mxu1 %vm7911_vm4, %v9870_v10 }
 0x3b1   : > { %7125 = vmatmul.mubr.msk.bf16.gmra.mrb[104].mxu1 %vm2802_vm6, %v3339_v37 }
 0x3b2   : > { %7130 = vmatprep.mubr.msk.bf16.mxu1 %vm7911_vm4, %v9870_v10 }
 0x3b4   : > { %v8840_v15 = vpop.f32.mrb[0].mxu1 }
 0x3b5   : > { %v7018_v1 = vpop.f32.mrb[1].mxu1 }
 0x3b6   : > { %v8842_v36 = vpop.f32.mrb[2].mxu1  ;;  %v3514_v1 = vld [vmem:[#allocation3 + $0x88] sm:$0xff] }
 0x3b7   : > { %v7019_v5 = vpop.f32.mrb[3].mxu1 }
 0x3b9   : > { %7131 = vmatmul.mubr.msk.bf16.vlgmr.msra.gmra.mrb[108].mxu1 %vm2802_vm6, %v8742_v11 }
 0x3ba   : > { %7167 = vmatpush3.bf16.msra.mxu1 %v3752_v6  ;;  %7134 = vmatprep.mubr.msk.bf16.mxu1 %vm7911_vm4, %v9870_v10 }
 0x3bb   : > { %7204 = vmatprep.subr.bf16.mxu1 %v9870_v10 }
 0x3bc   : > { %v8850_v48 = vpop.f32.mrb[4].mxu1 }
 0x3bd   : > { %v7022_v53 = vpop.f32.mrb[5].mxu1 }
 0x3be   : > { %v8852_v21 = vpop.f32.mrb[6].mxu1 }
 0x3bf   : > { %v7023_v24 = vpop.f32.mrb[7].mxu1 }
 0x3c1   : > { %7135 = vmatmul.mubr.msk.bf16.gmra.mrb[112].mxu1 %vm2802_vm6, %v8748_v12 }
 0x3c2   : > { %7138 = vmatprep.mubr.msk.bf16.mxu1 %vm7911_vm4, %v9870_v10 }
 0x3c4   : > { %v8858_v30 = vpop.f32.mrb[8].mxu1 }
 0x3c5   : > { %v8860_v11 = vpop.f32.mrb[28].mxu0  ;;  %v7026_v4 = vpop.f32.mrb[9].mxu1 }
 0x3c6   : > { %v7284_v2 = vpop.f32.mrb[29].mxu0  ;;  %v8862_v3 = vpop.f32.mrb[10].mxu1 }
 0x3c7   : > { %v8864_v16 = vpop.f32.mrb[30].mxu0  ;;  %v7027_v22 = vpop.f32.mrb[11].mxu1 }
 0x3c8   : > { %v7285_v28 = vpop.f32.mrb[31].mxu0  ;;  %v8915_v22 = vpack.c.bf16 %v3514_v1, %v8778_v29 }
 0x3c9   : > { %7139 = vmatmul.mubr.msk.bf16.gmra.mrb[116].mxu1 %vm2802_vm6, %v8754_v27 }
 0x3ca   : > { %7142 = vmatprep.mubr.msk.bf16.mxu1 %vm7911_vm4, %v9870_v10 }
 0x3cc   : > { %v8870_v12 = vpop.f32.mrb[12].mxu1 }
 0x3cd   : > { %v8872_v34 = vpop.f32.mrb[32].mxu0  ;;  %v7030_v35 = vpop.f32.mrb[13].mxu1 }
 0x3ce   : > { %v7288_v40 = vpop.f32.mrb[33].mxu0  ;;  %v8874_v41 = vpop.f32.mrb[14].mxu1 }
 0x3cf   : > { %v8876_v46 = vpop.f32.mrb[34].mxu0  ;;  %v7031_v47 = vpop.f32.mrb[15].mxu1  ;;  %v3515_v40 = vld [vmem:[#allocation3 + $0x90] sm:$0xff] }
 0x3d0   : > { %v7289_v17 = vpop.f32.mrb[35].mxu0  ;;  %v3516_v47 = vld [vmem:[#allocation3 + $0x98] sm:$0xff] }
 0x3d1   : > { %7143 = vmatmul.mubr.msk.bf16.gmra.mrb[120].mxu1 %vm2802_vm6, %v8760_v60 }
 0x3d2   : > { %7146 = vmatprep.mubr.msk.bf16.mxu1 %vm7911_vm4, %v9870_v10 }
 0x3d4   : > { %v8882_v18 = vpop.f32.mrb[16].mxu1 }
 0x3d5   : > { %v8884_v25 = vpop.f32.mrb[36].mxu0  ;;  %v7034_v33 = vpop.f32.mrb[17].mxu1 }
 0x3d6   : > { %v7292_v0 = vpop.f32.mrb[37].mxu0  ;;  %v8886_v19 = vpop.f32.mrb[18].mxu1 }
 0x3d7   : > { %v8888_v20 = vpop.f32.mrb[38].mxu0  ;;  %v7035_v38 = vpop.f32.mrb[19].mxu1 }
 0x3d8   : > { %v7293_v43 = vpop.f32.mrb[39].mxu0 }
 0x3d9   : > { %7147 = vmatmul.mubr.msk.bf16.gmra.mrb[124].mxu1 %vm2802_vm6, %v8766_v9 }
 0x3da   : > { %7150 = vmatprep.mubr.msk.bf16.mxu1 %vm7911_vm4, %v9870_v10 }
 0x3dc   : > { %v8894_v45 = vpop.f32.mrb[20].mxu1 }
 0x3dd   : > { %v8896_v50 = vpop.f32.mrb[40].mxu0  ;;  %v7038_v52 = vpop.f32.mrb[21].mxu1 }
 0x3de   : > { %v7296_v56 = vpop.f32.mrb[41].mxu0  ;;  %v8898_v59 = vpop.f32.mrb[22].mxu1  ;;  %v8929_v52 = vpack.c.bf16 %v3516_v47, %v3515_v40 }
 0x3df   : > { %v8900_v55 = vpop.f32.mrb[42].mxu0  ;;  %v7039_v62 = vpop.f32.mrb[23].mxu1 }
 0x3e0   : > { %v7297_v37 = vpop.f32.mrb[43].mxu0 }
 0x3e1   : > { %7151 = vmatmul.mubr.msk.bf16.gmra.mrb[128].mxu1 %vm2802_vm6, %v8772_v23  ;;  %v3518_v37 = vld [vmem:[#allocation3 + $0xa8] sm:$0x1] }
 0x3e2   : > { %7154 = vmatprep.mubr.msk.bf16.mxu1 %vm7911_vm4, %v9870_v10 }
 0x3e4   : > { %v8906_v61 = vpop.f32.mrb[24].mxu1 }
 0x3e5   : > { %v8908_v5 = vpop.f32.mrb[44].mxu0  ;;  %v7042_v6 = vpop.f32.mrb[25].mxu1 }
 0x3e6   : > { %v7300_v53 = vpop.f32.mrb[45].mxu0  ;;  %v8910_v24 = vpop.f32.mrb[26].mxu1 }
 0x3e7   : > { %v8912_v4 = vpop.f32.mrb[46].mxu0  ;;  %v7043_v2 = vpop.f32.mrb[27].mxu1 }
 0x3e8   : > { %v7301_v28 = vpop.f32.mrb[47].mxu0 }
 0x3e9   : > { %7155 = vmatmul.mubr.msk.bf16.gmra.mrb[132].mxu1 %vm2802_vm6, %v8915_v22  ;;  %v8941_v28 = vld [vmem:[#allocation3 + $0xa0] sm:$0xff] }
 0x3ea   : > { %7158 = vmatprep.mubr.msk.bf16.mxu1 %vm7911_vm4, %v9870_v10 }
 0x3ec   : > { %v8921_v35 = vpop.f32.mrb[28].mxu1 }
 0x3ed   : > { %v8923_v17 = vpop.f32.mrb[48].mxu0  ;;  %v7046_v33 = vpop.f32.mrb[29].mxu1 }
 0x3ee   : > { %v7304_v0 = vpop.f32.mrb[49].mxu0  ;;  %v8925_v38 = vpop.f32.mrb[30].mxu1  ;;  %v3527_v33 = vpack.c.bf16 %v3518_v37, %v8941_v28 }
 0x3ef   : > { %v8927_v43 = vpop.f32.mrb[50].mxu0  ;;  %v7047_v29 = vpop.f32.mrb[31].mxu1 }
 0x3f0   : > { %9873 = vst [vmem:[#allocation8_spill] sm:$0xff] %v8927_v43  ;;  %v7305_v56 = vpop.f32.mrb[51].mxu0  ;;  %v7831_v29 = vld [vmem:[%s9863_s4 + $0x28] sm:$0x1f]  }
 0x3f1   : > { %7159 = vmatmul.mubr.msk.bf16.gmra.mrb[136].mxu1 %vm2802_vm6, %v8929_v52 }
 0x3f2   : > { %7162 = vmatprep.mubr.msk.bf16.mxu1 %vm7911_vm4, %v9870_v10 }
 0x3f4   : > { %v8935_v62 = vpop.f32.mrb[32].mxu1 }
 0x3f5   : > { %v8937_v1 = vpop.f32.mrb[52].mxu0  ;;  %v7050_v6 = vpop.f32.mrb[33].mxu1 }
 0x3f6   : > { %9874 = vst [vmem:[#allocation9_spill] sm:$0xff] %v8937_v1  ;;  %v7308_v53 = vpop.f32.mrb[53].mxu0  ;;  %v8939_v2 = vpop.f32.mrb[34].mxu1 }
 0x3f7   : > { %v8943_v40 = vpop.f32.mrb[54].mxu0  ;;  %v7051_v47 = vpop.f32.mrb[35].mxu1 }
 0x3f8   : > { %9875 = vst [vmem:[#allocation10_spill] sm:$0xff] %v8943_v40  ;;  %v7309_v0 = vpop.f32.mrb[55].mxu0 }
 0x3f9   : > { %7163 = vmatmul.mubr.msk.bf16.gmra.mrb[140].mxu1 %vm2802_vm6, %v3527_v33 }
 0x3fa   : > { %7168 = vmatprep.mubr.msk.bf16.mxu1 %vm7911_vm4, %v9870_v10  ;;  %v3940_v10 = vsel %vm3064_vm3, %v7831_v29, 0 }
 0x3fc   : > { %v3242_v56 = vpop.f32.mrb[36].mxu1 }
 0x3fd   : > { %v8953_v6 = vadd.f32 %v3242_v56, %v8840_v15  ;;  %v8955_v53 = vpop.f32.mrb[56].mxu0  ;;  %v7056_v40 = vpop.f32.mrb[37].mxu1  ;;  %v9876_v15 = vmov 0.0  }
 0x3fe   : > { %v7312_v47 = vpop.f32.mrb[57].mxu0  ;;  %v3245_v1 = vpop.f32.mrb[38].mxu1 }
 0x3ff   : > { %v8958_v37 = vadd.f32 %v3245_v1, %v8842_v36  ;;  %v8960_v33 = vpop.f32.mrb[58].mxu0  ;;  %v7057_v0 = vpop.f32.mrb[39].mxu1 }
 0x400   : > { %v7313_v43 = vpop.f32.mrb[59].mxu0 }
 0x401   : > { %7169 = vmatmul.mubr.msk.bf16.vlgmr.msra.gmra.mrb[144].mxu1 %vm2802_vm6, %v8630_v63 }
 0x402   : > { %7205 = vmatpush3.bf16.msra.mxu1 %v3940_v10  ;;  %7172 = vmatprep.mubr.msk.bf16.mxu1 %vm7911_vm4, %v9876_v15 }
 0x403   : > { %7242 = vmatprep.subr.bf16.mxu1 %v9876_v15 }
 0x404   : > { %v3250_v40 = vpop.f32.mrb[40].mxu1 }
 0x405   : > { %v8969_v56 = vadd.f32 %v3250_v40, %v8850_v48  ;;  %v8971_v36 = vpop.f32.mrb[60].mxu0  ;;  %v7060_v1 = vpop.f32.mrb[41].mxu1 }
 0x406   : > { %9877 = vst [vmem:[#allocation11_spill] sm:$0xff] %v8971_v36  ;;  %v7316_v47 = vpop.f32.mrb[61].mxu0  ;;  %v3253_v0 = vpop.f32.mrb[42].mxu1 }
 0x407   : > { %v8974_v43 = vadd.f32 %v3253_v0, %v8852_v21  ;;  %v8976_v29 = vpop.f32.mrb[62].mxu0  ;;  %v7061_v10 = vpop.f32.mrb[43].mxu1 }
 0x408   : > { %v7317_v63 = vpop.f32.mrb[63].mxu0 }
 0x409   : > { %7173 = vmatmul.mubr.msk.bf16.gmra.mrb[148].mxu1 %vm2802_vm6, %v8657_v13 }
 0x40a   : > { %7176 = vmatprep.mubr.msk.bf16.mxu1 %vm7911_vm4, %v9876_v15 }
 0x40c   : > { %v3258_v48 = vpop.f32.mrb[44].mxu1 }
 0x40d   : > { %v8983_v40 = vadd.f32 %v3258_v48, %v8858_v30  ;;  %v7064_v1 = vpop.f32.mrb[45].mxu1 }
 0x40e   : > { %v3261_v47 = vpop.f32.mrb[46].mxu1 }
 0x40f   : > { %v8986_v36 = vadd.f32 %v3261_v47, %v8862_v3  ;;  %v7065_v21 = vpop.f32.mrb[47].mxu1 }
 0x411   : > { %7177 = vmatmul.mubr.msk.bf16.gmra.mrb[152].mxu1 %vm2802_vm6, %v8641_v42 }
 0x412   : > { %7180 = vmatprep.mubr.msk.bf16.mxu1 %vm7911_vm4, %v9876_v15 }
 0x414   : > { %v3266_v13 = vpop.f32.mrb[48].mxu1 }
 0x415   : > { %v8993_v0 = vadd.f32 %v3266_v13, %v8870_v12  ;;  %v7068_v10 = vpop.f32.mrb[49].mxu1 }
 0x416   : > { %v3269_v63 = vpop.f32.mrb[50].mxu1 }
 0x417   : > { %v8996_v30 = vadd.f32 %v3269_v63, %v8874_v41  ;;  %v7069_v48 = vpop.f32.mrb[51].mxu1 }
 0x419   : > { %7181 = vmatmul.mubr.msk.bf16.gmra.mrb[156].mxu1 %vm2802_vm6, %v8659_v14 }
 0x41a   : > { %7184 = vmatprep.mubr.msk.bf16.mxu1 %vm7911_vm4, %v9876_v15 }
 0x41c   : > { %v3274_v42 = vpop.f32.mrb[52].mxu1 }
 0x41d   : > { %v9003_v3 = vadd.f32 %v3274_v42, %v8882_v18  ;;  %v7072_v1 = vpop.f32.mrb[53].mxu1 }
 0x41e   : > { %v3277_v47 = vpop.f32.mrb[54].mxu1 }
 0x41f   : > { %v9006_v12 = vadd.f32 %v3277_v47, %v8886_v19  ;;  %v7073_v21 = vpop.f32.mrb[55].mxu1 }
 0x421   : > { %7185 = vmatmul.mubr.msk.bf16.gmra.mrb[160].mxu1 %vm2802_vm6, %v8673_v54 }
 0x422   : > { %7188 = vmatprep.mubr.msk.bf16.mxu1 %vm7911_vm4, %v9876_v15 }
 0x424   : > { %v3282_v14 = vpop.f32.mrb[56].mxu1 }
 0x425   : > { %v9013_v41 = vadd.f32 %v3282_v14, %v8894_v45  ;;  %v7076_v13 = vpop.f32.mrb[57].mxu1 }
 0x426   : > { %v3285_v10 = vpop.f32.mrb[58].mxu1 }
 0x427   : > { %v9016_v18 = vadd.f32 %v3285_v10, %v8898_v59  ;;  %v7077_v63 = vpop.f32.mrb[59].mxu1 }
 0x429   : > { %7189 = vmatmul.mubr.msk.bf16.gmra.mrb[164].mxu1 %vm2802_vm6, %v8686_v8 }
 0x42a   : > { %7192 = vmatprep.mubr.msk.bf16.mxu1 %vm7911_vm4, %v9876_v15 }
 0x42c   : > { %v3290_v54 = vpop.f32.mrb[60].mxu1 }
 0x42d   : > { %v9023_v19 = vadd.f32 %v3290_v54, %v8906_v61  ;;  %v7080_v48 = vpop.f32.mrb[61].mxu1 }
 0x42e   : > { %v3293_v42 = vpop.f32.mrb[62].mxu1 }
 0x42f   : > { %v9026_v45 = vadd.f32 %v3293_v42, %v8910_v24  ;;  %v7081_v1 = vpop.f32.mrb[63].mxu1  ;;  %v3706_v24 = vld [vmem:[#allocation3 + $0xaa] sm:$0x1] }
 0x431   : > { %7193 = vmatmul.mubr.msk.bf16.gmra.mrb[168].mxu1 %vm2802_vm6, %v8696_v31 }
 0x432   : > { %7196 = vmatprep.mubr.msk.bf16.mxu1 %vm7911_vm4, %v9876_v15 }
 0x434   : > { %v3298_v8 = vpop.f32.mrb[64].mxu1 }
 0x435   : > { %v9033_v59 = vadd.f32 %v3298_v8, %v8921_v35  ;;  %v7084_v47 = vpop.f32.mrb[65].mxu1 }
 0x436   : > { %v3301_v21 = vpop.f32.mrb[66].mxu1 }
 0x437   : > { %v9036_v61 = vadd.f32 %v3301_v21, %v8925_v38  ;;  %v7085_v14 = vpop.f32.mrb[67].mxu1  ;;  %v3715_v38 = vpack.c.bf16 %v3706_v24, %v8716_v49 }
 0x439   : > { %7197 = vmatmul.mubr.msk.bf16.gmra.mrb[172].mxu1 %vm2802_vm6, %v8706_v39  ;;  %v7832_v39 = vld [vmem:[%s9863_s4 + $0x30] sm:$0x1f]  }
 0x43a   : > { %7200 = vmatprep.mubr.msk.bf16.mxu1 %vm7911_vm4, %v9876_v15  ;;  %v4128_v49 = vsel %vm3064_vm3, %v7832_v39, 0 }
 0x43c   : > { %v3306_v31 = vpop.f32.mrb[68].mxu1 }
 0x43d   : > { %v9043_v13 = vadd.f32 %v3306_v31, %v8935_v62  ;;  %v7088_v10 = vpop.f32.mrb[69].mxu1 }
 0x43e   : > { %v3309_v35 = vpop.f32.mrb[70].mxu1 }
 0x43f   : > { %v9046_v63 = vadd.f32 %v3309_v35, %v8939_v2  ;;  %v7089_v54 = vpop.f32.mrb[71].mxu1 }
 0x441   : > { %7201 = vmatmul.mubr.msk.bf16.gmra.mrb[176].mxu1 %vm2802_vm6, %v3715_v38 }
 0x442   : > { %7206 = vmatprep.mubr.msk.bf16.mxu1 %vm7911_vm4, %v9876_v15 }
 0x444   : > { %v3412_v48 = vpop.f32.mrb[72].mxu1 }
 0x445   : > { %v9056_v62 = vadd.f32 %v3412_v48, %v8953_v6  ;;  %v7094_v42 = vpop.f32.mrb[73].mxu1 }
 0x446   : > { %v3415_v1 = vpop.f32.mrb[74].mxu1 }
 0x447   : > { %v9059_v2 = vadd.f32 %v3415_v1, %v8958_v37  ;;  %v7095_v8 = vpop.f32.mrb[75].mxu1 }
 0x449   : > { %7207 = vmatmul.mubr.msk.bf16.vlgmr.msra.gmra.mrb[180].mxu1 %vm2802_vm6, %v8795_v7 }
 0x44a   : > { %7243 = vmatpush3.bf16.msra.mxu1 %v4128_v49  ;;  %7210 = vmatprep.mubr.msk.bf16.mxu1 %vm7911_vm4, %v9876_v15 }
 0x44b   : > { %7318 = vmatprep.subr.bf16.mxu1 %v9876_v15 }
 0x44c   : > { %v3420_v47 = vpop.f32.mrb[76].mxu1 }
 0x44d   : > { %v9068_v6 = vadd.f32 %v3420_v47, %v8969_v56  ;;  %v7098_v21 = vpop.f32.mrb[77].mxu1 }
 0x44e   : > { %v3423_v14 = vpop.f32.mrb[78].mxu1 }
 0x44f   : > { %v9071_v37 = vadd.f32 %v3423_v14, %v8974_v43  ;;  %v7099_v31 = vpop.f32.mrb[79].mxu1 }
 0x451   : > { %7211 = vmatmul.mubr.msk.bf16.gmra.mrb[184].mxu1 %vm2802_vm6, %v8801_v32 }
 0x452   : > { %7214 = vmatprep.mubr.msk.bf16.mxu1 %vm7911_vm4, %v9876_v15 }
 0x454   : > { %v3428_v7 = vpop.f32.mrb[80].mxu1 }
 0x455   : > { %v9078_v24 = vadd.f32 %v3428_v7, %v8983_v40  ;;  %v7102_v10 = vpop.f32.mrb[81].mxu1  ;;  %v3890_v7 = vld [vmem:[#allocation3 + $0x8c] sm:$0xff] }
 0x456   : > { %v3431_v35 = vpop.f32.mrb[82].mxu1 }
 0x457   : > { %v9081_v56 = vadd.f32 %v3431_v35, %v8986_v36  ;;  %v7103_v54 = vpop.f32.mrb[83].mxu1 }
 0x459   : > { %7215 = vmatmul.mubr.msk.bf16.gmra.mrb[188].mxu1 %vm2802_vm6, %v8807_v44 }
 0x45a   : > { %7218 = vmatprep.mubr.msk.bf16.mxu1 %vm7911_vm4, %v9876_v15 }
 0x45c   : > { %v3436_v32 = vpop.f32.mrb[84].mxu1 }
 0x45d   : > { %v9088_v43 = vadd.f32 %v3436_v32, %v8993_v0  ;;  %v7106_v38 = vpop.f32.mrb[85].mxu1  ;;  %v9121_v32 = vpack.c.bf16 %v3890_v7, %v8831_v58 }
 0x45e   : > { %v3439_v39 = vpop.f32.mrb[86].mxu1 }
 0x45f   : > { %v9091_v40 = vadd.f32 %v3439_v39, %v8996_v30  ;;  %v7107_v48 = vpop.f32.mrb[87].mxu1  ;;  %v3891_v39 = vld [vmem:[#allocation3 + $0x94] sm:$0xff] }
 0x460   : > { %v3892_v48 = vld [vmem:[#allocation3 + $0x9c] sm:$0xff] }
 0x461   : > { %7219 = vmatmul.mubr.msk.bf16.gmra.mrb[192].mxu1 %vm2802_vm6, %v8813_v51  ;;  %v9133_v58 = vpack.c.bf16 %v3892_v48, %v3891_v39 }
 0x462   : > { %7222 = vmatprep.mubr.msk.bf16.mxu1 %vm7911_vm4, %v9876_v15 }
 0x464   : > { %v3444_v36 = vpop.f32.mrb[88].mxu1 }
 0x465   : > { %v9098_v42 = vadd.f32 %v3444_v36, %v9003_v3  ;;  %v7110_v1 = vpop.f32.mrb[89].mxu1 }
 0x466   : > { %v3447_v8 = vpop.f32.mrb[90].mxu1 }
 0x467   : > { %v9101_v0 = vadd.f32 %v3447_v8, %v9006_v12  ;;  %v7111_v49 = vpop.f32.mrb[91].mxu1 }
 0x469   : > { %7223 = vmatmul.mubr.msk.bf16.gmra.mrb[196].mxu1 %vm2802_vm6, %v8819_v26 }
 0x46a   : > { %7226 = vmatprep.mubr.msk.bf16.mxu1 %vm7911_vm4, %v9876_v15 }
 0x46c   : > { %v3452_v30 = vpop.f32.mrb[92].mxu1 }
 0x46d   : > { %v9108_v47 = vadd.f32 %v3452_v30, %v9013_v41  ;;  %v7114_v21 = vpop.f32.mrb[93].mxu1  ;;  %v9142_v30 = vld [vmem:[#allocation3 + $0xa4] sm:$0xff] }
 0x46e   : > { %v3455_v14 = vpop.f32.mrb[94].mxu1  ;;  %v3894_v21 = vld [vmem:[#allocation3 + $0xac] sm:$0x1] }
 0x46f   : > { %v9111_v3 = vadd.f32 %v3455_v14, %v9016_v18  ;;  %v7115_v31 = vpop.f32.mrb[95].mxu1  ;;  %v3903_v7 = vpack.c.bf16 %v3894_v21, %v9142_v30 }
 0x471   : > { %7227 = vmatmul.mubr.msk.bf16.gmra.mrb[200].mxu1 %vm2802_vm6, %v8825_v57 }
 0x472   : > { %7230 = vmatprep.mubr.msk.bf16.mxu1 %vm7911_vm4, %v9876_v15 }
 0x474   : > { %v3460_v12 = vpop.f32.mrb[96].mxu1 }
 0x475   : > { %v7118_v10 = vpop.f32.mrb[97].mxu1  ;;  %v9118_v35 = vadd.f32 %v3460_v12, %v9023_v19 }
 0x476   : > { %v3463_v41 = vpop.f32.mrb[98].mxu1  ;;  %v7833_v10 = vld [vmem:[%s9863_s4 + $0x40] sm:$0x1f]  }
 0x477   : > { %v7119_v54 = vpop.f32.mrb[99].mxu1  ;;  %v9124_v18 = vadd.f32 %v3463_v41, %v9026_v45  ;;  %v4504_v48 = vsel %vm3064_vm3, %v7833_v10, 0 }
 0x479   : > { %7231 = vmatmul.mubr.msk.bf16.gmra.mrb[204].mxu1 %vm2802_vm6, %v9121_v32 }
 0x47a   : > { %7234 = vmatprep.mubr.msk.bf16.mxu1 %vm7911_vm4, %v9876_v15 }
 0x47c   : > { %v3468_v38 = vpop.f32.mrb[100].mxu1 }
 0x47d   : > { %v7122_v36 = vpop.f32.mrb[101].mxu1  ;;  %v9131_v19 = vadd.f32 %v3468_v38, %v9033_v59 }
 0x47e   : > { %v3471_v1 = vpop.f32.mrb[102].mxu1 }
 0x47f   : > { %v7123_v8 = vpop.f32.mrb[103].mxu1  ;;  %v9136_v45 = vadd.f32 %v3471_v1, %v9036_v61 }
 0x481   : > { %7235 = vmatmul.mubr.msk.bf16.gmra.mrb[208].mxu1 %vm2802_vm6, %v9133_v58 }
 0x482   : > { %7238 = vmatprep.mubr.msk.bf16.mxu1 %vm7911_vm4, %v9876_v15 }
 0x484   : > { %v3476_v49 = vpop.f32.mrb[104].mxu1 }
 0x485   : > { %v7126_v14 = vpop.f32.mrb[105].mxu1  ;;  %v9145_v59 = vadd.f32 %v3476_v49, %v9043_v13 }
 0x486   : > { %v3479_v31 = vpop.f32.mrb[106].mxu1 }
 0x487   : > { %v7127_v12 = vpop.f32.mrb[107].mxu1  ;;  %v9149_v61 = vadd.f32 %v3479_v31, %v9046_v63 }
 0x489   : > { %7239 = vmatmul.mubr.msk.bf16.gmra.mrb[212].mxu1 %vm2802_vm6, %v3903_v7 }
 0x48a   : > { %7244 = vmatprep.mubr.msk.bf16.mxu1 %vm7911_vm4, %v9876_v15 }
 0x48c   : > { %v3600_v41 = vpop.f32.mrb[108].mxu1 }
 0x48d   : > { %v7132_v54 = vpop.f32.mrb[109].mxu1  ;;  %v9158_v13 = vadd.f32 %v3600_v41, %v9056_v62 }
 0x48e   : > { %v3603_v38 = vpop.f32.mrb[110].mxu1 }
 0x48f   : > { %v7133_v39 = vpop.f32.mrb[111].mxu1  ;;  %v9162_v63 = vadd.f32 %v3603_v38, %v9059_v2 }
 0x491   : > { %7245 = vmatmul.mubr.msk.bf16.vlgmr.msra.gmra.mrb[216].mxu1 %vm2802_vm6, %v8754_v27 }
 0x492   : > { %7319 = vmatpush3.bf16.msra.mxu1 %v4504_v48  ;;  %7248 = vmatprep.mubr.msk.bf16.mxu1 %vm7911_vm4, %v9876_v15 }
 0x493   : > { %7378 = vmatprep.subr.bf16.mxu1 %v9876_v15 }
 0x494   : > { %v3608_v36 = vpop.f32.mrb[112].mxu1 }
 0x495   : > { %v7136_v1 = vpop.f32.mrb[113].mxu1  ;;  %v9170_v62 = vadd.f32 %v3608_v36, %v9068_v6 }
 0x496   : > { %v3611_v8 = vpop.f32.mrb[114].mxu1 }
 0x497   : > { %v7137_v49 = vpop.f32.mrb[115].mxu1  ;;  %v9173_v21 = vadd.f32 %v3611_v8, %v9071_v37 }
 0x499   : > { %7249 = vmatmul.mubr.msk.bf16.gmra.mrb[220].mxu1 %vm2802_vm6, %v8760_v60 }
 0x49a   : > { %7252 = vmatprep.mubr.msk.bf16.mxu1 %vm7911_vm4, %v9876_v15 }
 0x49c   : > { %v3616_v27 = vpop.f32.mrb[116].mxu1 }
 0x49d   : > { %v7140_v2 = vpop.f32.mrb[117].mxu1  ;;  %v9180_v14 = vadd.f32 %v3616_v27, %v9078_v24 }
 0x49e   : > { %v3619_v31 = vpop.f32.mrb[118].mxu1 }
 0x49f   : > { %v7141_v12 = vpop.f32.mrb[119].mxu1  ;;  %v9183_v6 = vadd.f32 %v3619_v31, %v9081_v56  ;;  %v4079_v31 = vld [vmem:[#allocation3 + $0xb0] sm:$0xff] }
 0x4a0   : > { %v4080_v12 = vld [vmem:[#allocation3 + $0xb8] sm:$0xff] }
 0x4a1   : > { %7253 = vmatmul.mubr.msk.bf16.gmra.mrb[224].mxu1 %vm2802_vm6, %v8766_v9 }
 0x4a2   : > { %7256 = vmatprep.mubr.msk.bf16.mxu1 %vm7911_vm4, %v9876_v15 }
 0x4a4   : > { %v3624_v60 = vpop.f32.mrb[120].mxu1 }
 0x4a5   : > { %v7144_v37 = vpop.f32.mrb[121].mxu1  ;;  %v9190_v7 = vadd.f32 %v3624_v60, %v9088_v43 }
 0x4a6   : > { %v3627_v10 = vpop.f32.mrb[122].mxu1 }
 0x4a7   : > { %v7145_v41 = vpop.f32.mrb[123].mxu1  ;;  %v9193_v24 = vadd.f32 %v3627_v10, %v9091_v40 }
 0x4a8   : > { %v4090_v41 = vpack.c.bf16 %v4080_v12, %v4079_v31 }
 0x4a9   : > { %7257 = vmatmul.mubr.msk.bf16.gmra.mrb[228].mxu1 %vm2802_vm6, %v8772_v23 }
 0x4aa   : > { %7260 = vmatprep.mubr.msk.bf16.mxu1 %vm7911_vm4, %v9876_v15 }
 0x4ac   : > { %v3632_v9 = vpop.f32.mrb[124].mxu1 }
 0x4ad   : > { %v7148_v56 = vpop.f32.mrb[125].mxu1  ;;  %v9200_v54 = vadd.f32 %v3632_v9, %v9098_v42  ;;  %v4081_v9 = vld [vmem:[#allocation3 + $0xc0] sm:$0xff] }
 0x4ae   : > { %v3635_v38 = vpop.f32.mrb[126].mxu1  ;;  %v4082_v56 = vld [vmem:[#allocation3 + $0xc8] sm:$0x1] }
 0x4af   : > { %v7149_v39 = vpop.f32.mrb[127].mxu1  ;;  %v9203_v43 = vadd.f32 %v3635_v38, %v9101_v0  ;;  %v4078_v0 = vld [vmem:[#allocation3 + $0xa8] sm:$0xff] }
 0x4b1   : > { %7261 = vmatmul.mubr.msk.bf16.gmra.mrb[232].mxu1 %vm2802_vm6, %v8915_v22 }
 0x4b2   : > { %7264 = vmatprep.mubr.msk.bf16.mxu1 %vm7911_vm4, %v9876_v15 }
 0x4b4   : > { %v3640_v23 = vpop.f32.mrb[128].mxu1 }
 0x4b5   : > { %v7152_v40 = vpop.f32.mrb[129].mxu1  ;;  %v9210_v48 = vadd.f32 %v3640_v23, %v9108_v47 }
 0x4b6   : > { %v3643_v36 = vpop.f32.mrb[130].mxu1  ;;  %v4091_v40 = vpack.c.bf16 %v4082_v56, %v4081_v9 }
 0x4b7   : > { %v7153_v1 = vpop.f32.mrb[131].mxu1  ;;  %v9213_v42 = vadd.f32 %v3643_v36, %v9111_v3  ;;  %v4089_v3 = vpack.c.bf16 %v4078_v0, %v8941_v28 }
 0x4b9   : > { %7265 = vmatmul.mubr.msk.bf16.gmra.mrb[236].mxu1 %vm2802_vm6, %v8929_v52 }
 0x4ba   : > { %7268 = vmatprep.mubr.msk.bf16.mxu1 %vm7911_vm4, %v9876_v15 }
 0x4bc   : > { %v3648_v22 = vpop.f32.mrb[132].mxu1 }
 0x4bd   : > { %v9220_v8 = vadd.f32 %v3648_v22, %v9118_v35  ;;  %v7156_v49 = vpop.f32.mrb[133].mxu1 }
 0x4be   : > { %v3651_v27 = vpop.f32.mrb[134].mxu1 }
 0x4bf   : > { %v9223_v47 = vadd.f32 %v3651_v27, %v9124_v18  ;;  %v7157_v2 = vpop.f32.mrb[135].mxu1 }
 0x4c1   : > { %7269 = vmatmul.mubr.msk.bf16.gmra.mrb[240].mxu1 %vm2802_vm6, %v4089_v3 }
 0x4c2   : > { %7272 = vmatprep.mubr.msk.bf16.mxu1 %vm7911_vm4, %v9876_v15 }
 0x4c4   : > { %v3656_v52 = vpop.f32.mrb[136].mxu1 }
 0x4c5   : > { %v9230_v60 = vadd.f32 %v3656_v52, %v9131_v19  ;;  %v7160_v35 = vpop.f32.mrb[137].mxu1 }
 0x4c6   : > { %v3659_v37 = vpop.f32.mrb[138].mxu1 }
 0x4c7   : > { %v9233_v10 = vadd.f32 %v3659_v37, %v9136_v45  ;;  %v7161_v18 = vpop.f32.mrb[139].mxu1 }
 0x4c9   : > { %7273 = vmatmul.mubr.msk.bf16.gmra.mrb[244].mxu1 %vm2802_vm6, %v4090_v41 }
 0x4ca   : > { %7276 = vmatprep.mubr.msk.bf16.mxu1 %vm7911_vm4, %v9876_v15 }
 0x4cc   : > { %v3664_v28 = vpop.f32.mrb[140].mxu1 }
 0x4cd   : > { %v9239_v38 = vadd.f32 %v3664_v28, %v9145_v59  ;;  %v7164_v19 = vpop.f32.mrb[141].mxu1 }
 0x4ce   : > { %v3667_v39 = vpop.f32.mrb[142].mxu1 }
 0x4cf   : > { %v9242_v23 = vadd.f32 %v3667_v39, %v9149_v61  ;;  %v7165_v45 = vpop.f32.mrb[143].mxu1 }
 0x4d1   : > { %7277 = vmatmul.mubr.msk.bf16.gmra.mrb[248].mxu1 %vm2802_vm6, %v4091_v40 }
 0x4d2   : > { %7320 = vmatprep.mubr.msk.bf16.mxu1 %vm7911_vm4, %v9876_v15 }
 0x4d4   : > { %v3788_v36 = vpop.f32.mrb[144].mxu1 }
 0x4d5   : > { %v9248_v1 = vadd.f32 %v3788_v36, %v9158_v13  ;;  %v7170_v22 = vpop.f32.mrb[145].mxu1 }
 0x4d6   : > { %v3791_v0 = vpop.f32.mrb[146].mxu1 }
 0x4d7   : > { %v9251_v59 = vadd.f32 %v3791_v0, %v9162_v63  ;;  %v7171_v49 = vpop.f32.mrb[147].mxu1 }
 0x4d9   : > { %7321 = vmatmul.mubr.msk.bf16.vlgmr.msra.gmra.mrb[252].mxu1 %vm2802_vm6, %v8807_v44 }
 0x4da   : > { %7324 = vmatprep.mubr.msk.bf16.mxu1 %vm7911_vm4, %v9876_v15 }
 0x4dc   : > { %v3796_v61 = vpop.f32.mrb[148].mxu1 }
 0x4dd   : > { %v9258_v27 = vadd.f32 %v3796_v61, %v9170_v62  ;;  %v7174_v2 = vpop.f32.mrb[149].mxu1  ;;  %v4455_v61 = vld [vmem:[#allocation3 + $0xb4] sm:$0xff] }
 0x4de   : > { %v3799_v3 = vpop.f32.mrb[150].mxu1  ;;  %v4456_v2 = vld [vmem:[#allocation3 + $0xbc] sm:$0xff] }
 0x4df   : > { %v9261_v13 = vadd.f32 %v3799_v3, %v9173_v21  ;;  %v7175_v52 = vpop.f32.mrb[151].mxu1 }
 0x4e1   : > { %7325 = vmatmul.mubr.msk.bf16.gmra.mrb[0].mxu1 %vm2802_vm6, %v8813_v51 }
 0x4e2   : > { %7328 = vmatprep.mubr.msk.bf16.mxu1 %vm7911_vm4, %v9876_v15 }
 0x4e4   : > { %v3804_v44 = vpop.f32.mrb[152].mxu1 }
 0x4e5   : > { %v9268_v63 = vadd.f32 %v3804_v44, %v9180_v14  ;;  %v7178_v31 = vpop.f32.mrb[153].mxu1 }
 0x4e6   : > { %v3807_v12 = vpop.f32.mrb[154].mxu1  ;;  %v4466_v31 = vpack.c.bf16 %v4456_v2, %v4455_v61 }
 0x4e7   : > { %v9271_v62 = vadd.f32 %v3807_v12, %v9183_v6  ;;  %v7179_v35 = vpop.f32.mrb[155].mxu1  ;;  %v4457_v12 = vld [vmem:[#allocation3 + $0xc4] sm:$0xff] }
 0x4e8   : > { %v4458_v35 = vld [vmem:[#allocation3 + $0xcc] sm:$0x1] }
 0x4e9   : > { %7329 = vmatmul.mubr.msk.bf16.gmra.mrb[4].mxu1 %vm2802_vm6, %v8819_v26 }
 0x4ea   : > { %7332 = vmatprep.mubr.msk.bf16.mxu1 %vm7911_vm4, %v9876_v15 }
 0x4ec   : > { %v3812_v51 = vpop.f32.mrb[156].mxu1 }
 0x4ed   : > { %v9278_v21 = vadd.f32 %v3812_v51, %v9190_v7  ;;  %v7182_v37 = vpop.f32.mrb[157].mxu1 }
 0x4ee   : > { %v3815_v18 = vpop.f32.mrb[158].mxu1 }
 0x4ef   : > { %v9281_v14 = vadd.f32 %v3815_v18, %v9193_v24  ;;  %v7183_v41 = vpop.f32.mrb[159].mxu1 }
 0x4f1   : > { %7333 = vmatmul.mubr.msk.bf16.gmra.mrb[8].mxu1 %vm2802_vm6, %v8825_v57 }
 0x4f2   : > { %7336 = vmatprep.mubr.msk.bf16.mxu1 %vm7911_vm4, %v9876_v15 }
 0x4f4   : > { %v3820_v26 = vpop.f32.mrb[160].mxu1 }
 0x4f5   : > { %v9288_v6 = vadd.f32 %v3820_v26, %v9200_v54  ;;  %v7186_v28 = vpop.f32.mrb[161].mxu1  ;;  %v4467_v26 = vpack.c.bf16 %v4458_v35, %v4457_v12 }
 0x4f6   : > { %v3823_v9 = vpop.f32.mrb[162].mxu1 }
 0x4f7   : > { %v9291_v7 = vadd.f32 %v3823_v9, %v9203_v43  ;;  %v7187_v56 = vpop.f32.mrb[163].mxu1  ;;  %v7834_v43 = vld [vmem:[%s9865_s6 + $0x8] sm:$0xff]  }
 0x4f8   : > { %7357 = vmatpush3.bf16.msra.mxu0 %v7834_v43 }
 0x4f9   : > { %7337 = vmatmul.mubr.msk.bf16.gmra.mrb[12].mxu1 %vm2802_vm6, %v9121_v32  ;;  %7400 = vmatprep.subr.bf16.mxu0 %v9876_v15 }
 0x4fa   : > { %7340 = vmatprep.mubr.msk.bf16.mxu1 %vm7911_vm4, %v9876_v15 }
 0x4fc   : > { %v3828_v57 = vpop.f32.mrb[164].mxu1 }
 0x4fd   : > { %v9298_v24 = vadd.f32 %v3828_v57, %v9210_v48  ;;  %v7190_v19 = vpop.f32.mrb[165].mxu1  ;;  %v4454_v48 = vld [vmem:[#allocation3 + $0xac] sm:$0xff] }
 0x4fe   : > { %v3831_v39 = vpop.f32.mrb[166].mxu1  ;;  %v4465_v49 = vpack.c.bf16 %v4454_v48, %v9142_v30 }
 0x4ff   : > { %v9301_v54 = vadd.f32 %v3831_v39, %v9213_v42  ;;  %v7191_v45 = vpop.f32.mrb[167].mxu1 }
 0x501   : > { %7341 = vmatmul.mubr.msk.bf16.gmra.mrb[16].mxu1 %vm2802_vm6, %v9133_v58 }
 0x502   : > { %7344 = vmatprep.mubr.msk.bf16.mxu1 %vm7911_vm4, %v9876_v15 }
 0x504   : > { %v3836_v32 = vpop.f32.mrb[168].mxu1 }
 0x505   : > { %v9312_v40 = vadd.f32 %v3836_v32, %v9220_v8  ;;  %v7194_v42 = vpop.f32.mrb[169].mxu1 }
 0x506   : > { %v3839_v36 = vpop.f32.mrb[170].mxu1 }
 0x507   : > { %v9315_v22 = vadd.f32 %v3839_v36, %v9223_v47  ;;  %v7195_v0 = vpop.f32.mrb[171].mxu1 }
 0x509   : > { %7345 = vmatmul.mubr.msk.bf16.gmra.mrb[20].mxu1 %vm2802_vm6, %v4465_v49 }
 0x50a   : > { %7348 = vmatprep.mubr.msk.bf16.mxu1 %vm7911_vm4, %v9876_v15 }
 0x50c   : > { %v3844_v58 = vpop.f32.mrb[172].mxu1 }
 0x50d   : > { %v9322_v3 = vadd.f32 %v3844_v58, %v9230_v60  ;;  %v7198_v8 = vpop.f32.mrb[173].mxu1 }
 0x50e   : > { %v3847_v52 = vpop.f32.mrb[174].mxu1 }
 0x50f   : > { %v9325_v44 = vadd.f32 %v3847_v52, %v9233_v10  ;;  %v7199_v47 = vpop.f32.mrb[175].mxu1 }
 0x511   : > { %7349 = vmatmul.mubr.msk.bf16.gmra.mrb[24].mxu1 %vm2802_vm6, %v4466_v31 }
 0x512   : > { %7352 = vmatprep.mubr.msk.bf16.mxu1 %vm7911_vm4, %v9876_v15 }
 0x514   : > { %v3852_v30 = vpop.f32.mrb[176].mxu1 }
 0x515   : > { %v3875_v51 = vadd.f32 %v3852_v30, %v9239_v38  ;;  %v7202_v37 = vpop.f32.mrb[177].mxu1 }
 0x516   : > { %v3855_v60 = vpop.f32.mrb[178].mxu1 }
 0x517   : > { %v3876_v18 = vadd.f32 %v3855_v60, %v9242_v23  ;;  %v7203_v41 = vpop.f32.mrb[179].mxu1  ;;  %v7835_v23 = vld [vmem:[%s9865_s6] sm:$0xff]  }
 0x518   : > { %7379 = vmatpush3.bf16.msra.mxu1 %v7835_v23 }
 0x519   : > { %7353 = vmatmul.mubr.msk.bf16.gmra.mrb[28].mxu1 %vm2802_vm6, %v4467_v26  ;;  %7422 = vmatprep.subr.bf16.mxu1 %v9876_v15  ;;  %vm4709_vm6 = vcmask 130048  }
 0x51a   : > { %7380 = vmatprep.mubr.msk.bf16.mxu1 %vm7911_vm4, %v9876_v15 }
 0x51c   : > { %v3976_v10 = vpop.f32.mrb[180].mxu1 }
 0x51d   : > { %v4047_v28 = vadd.f32 %v3976_v10, %v9248_v1  ;;  %v7208_v9 = vpop.f32.mrb[181].mxu1 }
 0x51e   : > { %v3979_v56 = vpop.f32.mrb[182].mxu1 }
 0x51f   : > { %v4048_v57 = vadd.f32 %v3979_v56, %v9251_v59  ;;  %v7209_v19 = vpop.f32.mrb[183].mxu1 }
 0x524   : > { %v3984_v38 = vpop.f32.mrb[184].mxu1 }
 0x525   : > { %v4049_v39 = vadd.f32 %v3984_v38, %v9258_v27  ;;  %v7212_v45 = vpop.f32.mrb[185].mxu1 }
 0x526   : > { %v3987_v43 = vpop.f32.mrb[186].mxu1 }
 0x527   : > { %v4050_v32 = vadd.f32 %v3987_v43, %v9261_v13  ;;  %v7213_v48 = vpop.f32.mrb[187].mxu1 }
 0x52c   : > { %v3992_v1 = vpop.f32.mrb[188].mxu1 }
 0x52d   : > { %v4051_v42 = vadd.f32 %v3992_v1, %v9268_v63  ;;  %v7216_v59 = vpop.f32.mrb[189].mxu1 }
 0x52e   : > { %v3995_v36 = vpop.f32.mrb[190].mxu1 }
 0x52f   : > { %v4052_v0 = vadd.f32 %v3995_v36, %v9271_v62  ;;  %v7217_v27 = vpop.f32.mrb[191].mxu1 }
 0x534   : > { %v4000_v49 = vpop.f32.mrb[192].mxu1 }
 0x535   : > { %v4053_v58 = vadd.f32 %v4000_v49, %v9278_v21  ;;  %v7220_v61 = vpop.f32.mrb[193].mxu1 }
 0x536   : > { %v4003_v2 = vpop.f32.mrb[194].mxu1 }
 0x537   : > { %v4054_v8 = vadd.f32 %v4003_v2, %v9281_v14  ;;  %v7221_v13 = vpop.f32.mrb[195].mxu1 }
 0x53c   : > { %v4008_v52 = vpop.f32.mrb[196].mxu1 }
 0x53d   : > { %v4055_v47 = vadd.f32 %v4008_v52, %v9288_v6  ;;  %v7224_v31 = vpop.f32.mrb[197].mxu1 }
 0x53e   : > { %v4011_v30 = vpop.f32.mrb[198].mxu1 }
 0x53f   : > { %v4056_v63 = vadd.f32 %v4011_v30, %v9291_v7  ;;  %v7225_v12 = vpop.f32.mrb[199].mxu1 }
 0x544   : > { %v4016_v35 = vpop.f32.mrb[200].mxu1 }
 0x545   : > { %v9350_v62 = vadd.f32 %v4016_v35, %v9298_v24  ;;  %v7228_v37 = vpop.f32.mrb[201].mxu1 }
 0x546   : > { %v4019_v60 = vpop.f32.mrb[202].mxu1 }
 0x547   : > { %v9353_v21 = vadd.f32 %v4019_v60, %v9301_v54  ;;  %v7229_v41 = vpop.f32.mrb[203].mxu1 }
 0x54c   : > { %v4024_v14 = vpop.f32.mrb[204].mxu1 }
 0x54d   : > { %v9356_v26 = vadd.f32 %v4024_v14, %v9312_v40  ;;  %v7232_v6 = vpop.f32.mrb[205].mxu1 }
 0x54e   : > { %v4027_v10 = vpop.f32.mrb[206].mxu1 }
 0x54f   : > { %v9359_v9 = vadd.f32 %v4027_v10, %v9315_v22  ;;  %v7233_v7 = vpop.f32.mrb[207].mxu1 }
 0x554   : > { %v4032_v56 = vpop.f32.mrb[208].mxu1 }
 0x555   : > { %v9362_v24 = vadd.f32 %v4032_v56, %v9322_v3  ;;  %v7236_v19 = vpop.f32.mrb[209].mxu1 }
 0x556   : > { %v4035_v38 = vpop.f32.mrb[210].mxu1 }
 0x557   : > { %v9365_v54 = vadd.f32 %v4035_v38, %v9325_v44  ;;  %v7237_v45 = vpop.f32.mrb[211].mxu1 }
 0x55c   : > { %v4040_v23 = vpop.f32.mrb[212].mxu1 }
 0x55d   : > { %v9367_v43 = vadd.f32 %v4040_v23, %v3875_v51  ;;  %v7240_v40 = vpop.f32.mrb[213].mxu1 }
 0x55e   : > { %v4043_v48 = vpop.f32.mrb[214].mxu1 }
 0x55f   : > { %v9369_v1 = vadd.f32 %v4043_v48, %v3876_v18  ;;  %v7241_v22 = vpop.f32.mrb[215].mxu1 }
 0x560   : > { %v9878_v22 = vld [vmem:[#allocation8_spill] sm:$0xff] }
 0x564   : > { %v4164_v59 = vpop.f32.mrb[216].mxu1 }
 0x565   : > { %v4235_v36 = vadd.f32 %v4164_v59, %v4047_v28  ;;  %v7246_v27 = vpop.f32.mrb[217].mxu1 }
 0x566   : > { %v4167_v49 = vpop.f32.mrb[218].mxu1 }
 0x567   : > { %v4236_v3 = vadd.f32 %v4167_v49, %v4048_v57  ;;  %v7247_v61 = vpop.f32.mrb[219].mxu1  ;;  %v9372_v2 = vadd.f32 %v8860_v11, %v4235_v36 }
 0x568   : > { %v9880_v61 = vld [vmem:[#allocation10_spill] sm:$0xff] }
 0x569   : > { %v9375_v44 = vadd.f32 %v8864_v16, %v4236_v3 }
 0x56c   : > { %v4172_v13 = vpop.f32.mrb[220].mxu1 }
 0x56d   : > { %v4237_v51 = vadd.f32 %v4172_v13, %v4049_v39  ;;  %v7250_v52 = vpop.f32.mrb[221].mxu1 }
 0x56e   : > { %v4175_v31 = vpop.f32.mrb[222].mxu1 }
 0x56f   : > { %v4238_v30 = vadd.f32 %v4175_v31, %v4050_v32  ;;  %v7251_v18 = vpop.f32.mrb[223].mxu1  ;;  %v9378_v12 = vadd.f32 %v8872_v34, %v4237_v51 }
 0x571   : > { %v9381_v28 = vadd.f32 %v8876_v46, %v4238_v30 }
 0x574   : > { %v4180_v57 = vpop.f32.mrb[224].mxu1 }
 0x575   : > { %v4239_v35 = vadd.f32 %v4180_v57, %v4051_v42  ;;  %v7254_v37 = vpop.f32.mrb[225].mxu1 }
 0x576   : > { %v4183_v11 = vpop.f32.mrb[226].mxu1 }
 0x577   : > { %v4240_v60 = vadd.f32 %v4183_v11, %v4052_v0  ;;  %v7255_v41 = vpop.f32.mrb[227].mxu1  ;;  %v9384_v16 = vadd.f32 %v8884_v25, %v4239_v35 }
 0x579   : > { %v9387_v39 = vadd.f32 %v8888_v20, %v4240_v60  ;;  %v9881_v60 = vld [vmem:[#allocation11_spill] sm:$0xff] }
 0x57c   : > { %v4188_v32 = vpop.f32.mrb[228].mxu1 }
 0x57d   : > { %v4241_v14 = vadd.f32 %v4188_v32, %v4053_v58  ;;  %v7258_v6 = vpop.f32.mrb[229].mxu1 }
 0x57e   : > { %v4191_v34 = vpop.f32.mrb[230].mxu1 }
 0x57f   : > { %v4242_v10 = vadd.f32 %v4191_v34, %v4054_v8  ;;  %v7259_v7 = vpop.f32.mrb[231].mxu1  ;;  %v9390_v46 = vadd.f32 %v8896_v50, %v4241_v14  ;;  %v9439_v14 = vstv %s6267_s12 }
 0x581   : > { %v9393_v42 = vadd.f32 %v8900_v55, %v4242_v10 }
 0x584   : > { %v4196_v0 = vpop.f32.mrb[232].mxu1 }
 0x585   : > { %v4243_v56 = vadd.f32 %v4196_v0, %v4055_v47  ;;  %v7262_v19 = vpop.f32.mrb[233].mxu1 }
 0x586   : > { %v4199_v25 = vpop.f32.mrb[234].mxu1 }
 0x587   : > { %v4244_v38 = vadd.f32 %v4199_v25, %v4056_v63  ;;  %v7263_v45 = vpop.f32.mrb[235].mxu1  ;;  %v9396_v20 = vadd.f32 %v8908_v5, %v4243_v56 }
 0x589   : > { %v9399_v58 = vadd.f32 %v8912_v4, %v4244_v38 }
 0x58c   : > { %v4204_v8 = vpop.f32.mrb[236].mxu1 }
 0x58d   : > { %v4245_v23 = vadd.f32 %v4204_v8, %v9350_v62  ;;  %v7266_v50 = vpop.f32.mrb[237].mxu1  ;;  %v9879_v62 = vld [vmem:[#allocation9_spill] sm:$0xff] }
 0x58e   : > { %v4207_v40 = vpop.f32.mrb[238].mxu1 }
 0x58f   : > { %v4246_v55 = vadd.f32 %v4207_v40, %v9353_v21  ;;  %v7267_v48 = vpop.f32.mrb[239].mxu1  ;;  %v9404_v47 = vadd.f32 %v8923_v17, %v4245_v23 }
 0x591   : > { %v9407_v63 = vadd.f32 %v9878_v22, %v4246_v55 }
 0x594   : > { %v4212_v59 = vpop.f32.mrb[240].mxu1 }
 0x595   : > { %v4247_v5 = vadd.f32 %v4212_v59, %v9356_v26  ;;  %v7270_v36 = vpop.f32.mrb[241].mxu1 }
 0x596   : > { %v4215_v4 = vpop.f32.mrb[242].mxu1 }
 0x597   : > { %v4248_v27 = vadd.f32 %v4215_v4, %v9359_v9  ;;  %v7271_v49 = vpop.f32.mrb[243].mxu1  ;;  %v9412_v3 = vadd.f32 %v9879_v62, %v4247_v5 }
 0x599   : > { %v9415_v21 = vadd.f32 %v9880_v61, %v4248_v27 }
 0x59c   : > { %v4220_v13 = vpop.f32.mrb[244].mxu1 }
 0x59d   : > { %v4249_v17 = vadd.f32 %v4220_v13, %v9362_v24  ;;  %v7274_v51 = vpop.f32.mrb[245].mxu1 }
 0x59e   : > { %v4223_v52 = vpop.f32.mrb[246].mxu1 }
 0x59f   : > { %v4250_v31 = vadd.f32 %v4223_v52, %v9365_v54  ;;  %v7275_v30 = vpop.f32.mrb[247].mxu1  ;;  %v9420_v26 = vadd.f32 %v8955_v53, %v4249_v17 }
 0x5a0   : > { %v7836_v30 = vld [vmem:[%s9865_s6 + $0x10] sm:$0xff]  }
 0x5a1   : > { %v9423_v9 = vadd.f32 %v8960_v33, %v4250_v31  ;;  %v9436_v33 = vld [vmem:[%s9864_s5] ss:$0 sm:$0xff] }
 0x5a4   : > { %v4228_v18 = vpop.f32.mrb[248].mxu1 }
 0x5a5   : > { %v4251_v57 = vadd.f32 %v4228_v18, %v9367_v43  ;;  %v7278_v35 = vpop.f32.mrb[249].mxu1 }
 0x5a6   : > { %v4231_v37 = vpop.f32.mrb[250].mxu1 }
 0x5a7   : > { %v4252_v11 = vadd.f32 %v4231_v37, %v9369_v1  ;;  %v7279_v24 = vpop.f32.mrb[251].mxu1  ;;  %v9428_v41 = vadd.f32 %v9881_v60, %v4251_v57 }
 0x5a9   : > { %v9431_v54 = vadd.f32 %v8976_v29, %v4252_v11 }
 0x5ac   : > { %v4540_v53 = vpop.f32.mrb[252].mxu1 }
 0x5ad   : > { %v4611_v43 = vadd.f32 %v4540_v53, %v9372_v2  ;;  %v7322_v32 = vpop.f32.mrb[253].mxu1 }
 0x5ae   : > { %v4543_v6 = vpop.f32.mrb[254].mxu1 }
 0x5af   : > { %v4636_v1 = vadd.f32 %v9436_v33, %v4611_v43  ;;  %v4612_v34 = vadd.f32 %v4543_v6, %v9375_v44  ;;  %v7323_v10 = vpop.f32.mrb[255].mxu1 }
 0x5b1   : > { %vm4654_vm3 = vcmp.gt.f32.partialorder %v4636_v1, 0.0  ;;  %v4673_v29 = vmul.f32 %v9439_v14, %v4636_v1  ;;  %v4637_v7 = vadd.f32 %v9436_v33, %v4612_v34 }
 0x5b3   : > { %v4691_v0 = vsel %vm4654_vm3, %v4636_v1, %v4673_v29  ;;  %vm4655_vm10 = vcmp.gt.f32.partialorder %v4637_v7, 0.0  ;;  %v4674_v56 = vmul.f32 %v9439_v14, %v4637_v7 }
 0x5b4   : > { %4710 = vst.msk [vmem:[#allocation4] sm:$0xff] %vm4709_vm6, %v4691_v0  ;;  %v4548_v2 = vpop.f32.mrb[0].mxu1 }
 0x5b5   : > { %v4692_v19 = vsel %vm4655_vm10, %v4637_v7, %v4674_v56  ;;  %v4613_v25 = vadd.f32 %v4548_v2, %v9378_v12  ;;  %v7326_v38 = vpop.f32.mrb[1].mxu1 }
 0x5b6   : > { %4711 = vst.msk [vmem:[#allocation4 + $0x8] sm:$0xff] %vm4709_vm6, %v4692_v19  ;;  %v4551_v44 = vpop.f32.mrb[2].mxu1 }
 0x5b7   : > { %v4638_v45 = vadd.f32 %v9436_v33, %v4613_v25  ;;  %v4614_v8 = vadd.f32 %v4551_v44, %v9381_v28  ;;  %v7327_v23 = vpop.f32.mrb[3].mxu1  ;;  %v7837_v28 = vld [vmem:[%s9865_s6 + $0x18] sm:$0xff]  }
 0x5b9   : > { %vm4656_vm11 = vcmp.gt.f32.partialorder %v4638_v45, 0.0  ;;  %v4675_v50 = vmul.f32 %v9439_v14, %v4638_v45  ;;  %v4639_v40 = vadd.f32 %v9436_v33, %v4614_v8 }
 0x5bb   : > { %v4693_v55 = vsel %vm4656_vm11, %v4638_v45, %v4675_v50  ;;  %vm4657_vm12 = vcmp.gt.f32.partialorder %v4639_v40, 0.0  ;;  %v4676_v48 = vmul.f32 %v9439_v14, %v4639_v40  ;;  %v4730_v22 = vld [vmem:[#allocation4] sm:$0xff] }
 0x5bc   : > { %4712 = vst.msk [vmem:[#allocation4 + $0x10] sm:$0xff] %vm4709_vm6, %v4693_v55  ;;  %v4556_v12 = vpop.f32.mrb[4].mxu1 }
 0x5bd   : > { %v4731_v59 = vld [vmem:[#allocation4 + $0x8] sm:$0xff]  ;;  %v4694_v5 = vsel %vm4657_vm12, %v4639_v40, %v4676_v48  ;;  %v4615_v36 = vadd.f32 %v4556_v12, %v9384_v16  ;;  %v7330_v4 = vpop.f32.mrb[5].mxu1 }
 0x5be   : > { %v4739_v27 = vpack.c.bf16 %v4731_v59, %v4730_v22  ;;  %4713 = vst.msk [vmem:[#allocation4 + $0x18] sm:$0xff] %vm4709_vm6, %v4694_v5  ;;  %v4559_v49 = vpop.f32.mrb[6].mxu1  ;;  %v4746_v31 = vld [vmem:[#allocation4 + $0x2] sm:$0xff] }
 0x5bf   : > { %v4640_v62 = vadd.f32 %v9436_v33, %v4615_v36  ;;  %v4616_v61 = vadd.f32 %v4559_v49, %v9387_v39  ;;  %v7331_v13 = vpop.f32.mrb[7].mxu1 }
 0x5c0   : > { %7381 = vmatmul.mubr.msk.bf16.vlgmr.msra.gmra.mrb[32].mxu1 %vm4709_vm6, %v4739_v27 }
 0x5c1   : > { %vm4658_vm13 = vcmp.gt.f32.partialorder %v4640_v62, 0.0  ;;  %v4677_v17 = vmul.f32 %v9439_v14, %v4640_v62  ;;  %v4641_v16 = vadd.f32 %v9436_v33, %v4616_v61  ;;  %7384 = vmatprep.mubr.msk.bf16.mxu1 %vm7911_vm4, %v9876_v15  ;;  %7423 = vmatpush3.bf16.msra.mxu1 %v7837_v28 }
 0x5c2   : > { %7466 = vmatprep.subr.bf16.mxu1 %v9876_v15 }
 0x5c3   : > { %v4695_v51 = vsel %vm4658_vm13, %v4640_v62, %v4677_v17  ;;  %vm4659_vm14 = vcmp.gt.f32.partialorder %v4641_v16, 0.0  ;;  %v4678_v52 = vmul.f32 %v9439_v14, %v4641_v16  ;;  %v4747_v39 = vld [vmem:[#allocation4 + $0xa] sm:$0xff]  ;;  %vm4727_vm13 = vcmask 122880  }
 0x5c4   : > { %4714 = vst.msk [vmem:[#allocation4 + $0x20] sm:$0xff] %vm4709_vm6, %v4695_v51  ;;  %v4564_v18 = vpop.f32.mrb[8].mxu1  ;;  %v4755_v57 = vpack.c.bf16 %v4747_v39, %v4746_v31  ;;  %v4732_v24 = vld [vmem:[#allocation4 + $0x10] sm:$0xff] }
 0x5c5   : > { %v4696_v35 = vsel %vm4659_vm14, %v4641_v16, %v4678_v52  ;;  %v4617_v37 = vadd.f32 %v4564_v18, %v9390_v46  ;;  %v7334_v11 = vpop.f32.mrb[9].mxu1  ;;  %v4733_v60 = vld [vmem:[#allocation4 + $0x18] sm:$0xff] }
 0x5c6   : > { %4715 = vst.msk [vmem:[#allocation4 + $0x28] sm:$0xff] %vm4709_vm6, %v4696_v35  ;;  %v4567_v53 = vpop.f32.mrb[10].mxu1  ;;  %7359 = vmatmul.mubr.msk.bf16.vlgmr.msra.gmra.mrb[64].mxu0 %vm4709_vm6, %v4755_v57  ;;  %v4740_v43 = vpack.c.bf16 %v4733_v60, %v4732_v24  ;;  %v4748_v29 = vld [vmem:[#allocation4 + $0x12] sm:$0xff] }
 0x5c7   : > { %v4642_v32 = vadd.f32 %v9436_v33, %v4617_v37  ;;  %v4618_v6 = vadd.f32 %v4567_v53, %v9393_v42  ;;  %7401 = vmatpush3.bf16.msra.mxu0 %v7836_v30  ;;  %v7335_v1 = vpop.f32.mrb[11].mxu1  ;;  %7362 = vmatprep.mubr.msk.bf16.mxu0 %vm7911_vm4, %v9876_v15 }
 0x5c8   : > { %7385 = vmatmul.mubr.msk.bf16.gmra.mrb[36].mxu1 %vm4709_vm6, %v4740_v43  ;;  %7444 = vmatprep.subr.bf16.mxu0 %v9876_v15 }
 0x5c9   : > { %vm4660_vm15 = vcmp.gt.f32.partialorder %v4642_v32, 0.0  ;;  %v4679_v46 = vmul.f32 %v9439_v14, %v4642_v32  ;;  %v4643_v34 = vadd.f32 %v9436_v33, %v4618_v6  ;;  %7388 = vmatprep.mubr.msk.bf16.mxu1 %vm7911_vm4, %v9876_v15 }
 0x5cb   : > { %v4697_v10 = vsel %vm4660_vm15, %v4642_v32, %v4679_v46  ;;  %vm4661_vm0 = vcmp.gt.f32.partialorder %v4643_v34, 0.0  ;;  %v4680_v42 = vmul.f32 %v9439_v14, %v4643_v34  ;;  %v4749_v7 = vld [vmem:[#allocation4 + $0x1a] sm:$0xff]  ;;  %vm5854_vm15 = vcmask 261120  }
 0x5cc   : > { %4716 = vst.msk [vmem:[#allocation4 + $0x30] sm:$0xff] %vm4709_vm6, %v4697_v10  ;;  %v4572_v0 = vpop.f32.mrb[12].mxu1  ;;  %v4756_v56 = vpack.c.bf16 %v4749_v7, %v4748_v29  ;;  %v5068_v2 = vld [vmem:[#allocation4 + $0x20] sm:$0xff] }
 0x5cd   : > { %v5069_v19 = vld [vmem:[#allocation4 + $0x28] sm:$0xff]  ;;  %v4698_v25 = vsel %vm4661_vm0, %v4643_v34, %v4680_v42  ;;  %v4619_v38 = vadd.f32 %v4572_v0, %v9396_v20  ;;  %v7338_v44 = vpop.f32.mrb[13].mxu1  ;;  %v7839_v0 = vld [vmem:[%s9865_s6 + $0x28] sm:$0xff]  }
 0x5ce   : > { %v9489_v45 = vpack.c.bf16 %v5069_v19, %v5068_v2  ;;  %4717 = vst.msk [vmem:[#allocation4 + $0x38] sm:$0xff] %vm4709_vm6, %v4698_v25  ;;  %v4575_v8 = vpop.f32.mrb[14].mxu1  ;;  %7363 = vmatmul.mubr.msk.bf16.gmra.mrb[68].mxu0 %vm4709_vm6, %v4756_v56  ;;  %v4950_v44 = vld [vmem:[#allocation4 + $0xc] sm:$0xff] }
 0x5cf   : > { %v4644_v23 = vadd.f32 %v9436_v33, %v4619_v38  ;;  %v4620_v50 = vadd.f32 %v4575_v8, %v9399_v58  ;;  %v7339_v40 = vpop.f32.mrb[15].mxu1  ;;  %7366 = vmatprep.mubr.msk.bf16.mxu0 %vm7911_vm4, %v9876_v15  ;;  %v4750_v58 = vld [vmem:[#allocation4 + $0x22] sm:$0xff] }
 0x5d0   : > { %7389 = vmatmul.mubr.msk.bf16.gmra.mrb[40].mxu1 %vm4709_vm6, %v9489_v45 }
 0x5d1   : > { %vm4662_vm1 = vcmp.gt.f32.partialorder %v4644_v23, 0.0  ;;  %v4681_v20 = vmul.f32 %v9439_v14, %v4644_v23  ;;  %v4645_v55 = vadd.f32 %v9436_v33, %v4620_v50  ;;  %7392 = vmatprep.mubr.msk.bf16.mxu1 %vm7911_vm4, %v9876_v15 }
 0x5d3   : > { %v4699_v48 = vsel %vm4662_vm1, %v4644_v23, %v4681_v20  ;;  %vm4663_vm2 = vcmp.gt.f32.partialorder %v4645_v55, 0.0  ;;  %v4682_v12 = vmul.f32 %v9439_v14, %v4645_v55  ;;  %v4751_v22 = vld [vmem:[#allocation4 + $0x2a] sm:$0xff] }
 0x5d4   : > { %4718 = vst.msk [vmem:[#allocation4 + $0x40] sm:$0xff] %vm4709_vm6, %v4699_v48  ;;  %v4580_v59 = vpop.f32.mrb[16].mxu1  ;;  %v9505_v5 = vpack.c.bf16 %v4751_v22, %v4750_v58  ;;  %v4736_v27 = vld [vmem:[#allocation4 + $0x30] sm:$0xff]  ;;  %v4949_v23 = vld [vmem:[#allocation4 + $0x4] sm:$0xff] }
 0x5d5   : > { %v4700_v36 = vsel %vm4663_vm2, %v4645_v55, %v4682_v12  ;;  %v4621_v4 = vadd.f32 %v4580_v59, %v9404_v47  ;;  %v7342_v28 = vpop.f32.mrb[17].mxu1  ;;  %v4737_v49 = vld [vmem:[#allocation4 + $0x38] sm:$0xff]  ;;  %v4958_v40 = vpack.c.bf16 %v4950_v44, %v4949_v23 }
 0x5d6   : > { %4719 = vst.msk [vmem:[#allocation4 + $0x48] sm:$0xff] %vm4709_vm6, %v4700_v36  ;;  %v4583_v62 = vpop.f32.mrb[18].mxu1  ;;  %7367 = vmatmul.mubr.msk.bf16.gmra.mrb[72].mxu0 %vm4709_vm6, %v9505_v5  ;;  %v9511_v61 = vpack.c.bf16 %v4737_v49, %v4736_v27  ;;  %v4951_v27 = vld [vmem:[#allocation4 + $0x14] sm:$0xff] }
 0x5d7   : > { %v4646_v13 = vadd.f32 %v9436_v33, %v4621_v4  ;;  %v4622_v17 = vadd.f32 %v4583_v62, %v9407_v63  ;;  %v7343_v16 = vpop.f32.mrb[19].mxu1  ;;  %7370 = vmatprep.mubr.msk.bf16.mxu0 %vm7911_vm4, %v9876_v15  ;;  %v4752_v63 = vld [vmem:[#allocation4 + $0x32] sm:$0xff]  ;;  %v4952_v4 = vld [vmem:[#allocation4 + $0x1c] sm:$0xff] }
 0x5d8   : > { %7393 = vmatmul.mubr.msk.bf16.gmra.mrb[44].mxu1 %vm4709_vm6, %v9511_v61  ;;  %v4959_v62 = vpack.c.bf16 %v4952_v4, %v4951_v27 }
 0x5d9   : > { %vm4664_vm5 = vcmp.gt.f32.partialorder %v4646_v13, 0.0  ;;  %v4683_v47 = vmul.f32 %v9439_v14, %v4646_v13  ;;  %v4647_v51 = vadd.f32 %v9436_v33, %v4622_v17  ;;  %7396 = vmatprep.mubr.msk.bf16.mxu1 %vm7911_vm4, %v9876_v15  ;;  %v5306_v17 = vld [vmem:[#allocation4 + $0x24] sm:$0xff] }
 0x5db   : > { %v4701_v52 = vsel %vm4664_vm5, %v4646_v13, %v4683_v47  ;;  %vm4665_vm7 = vcmp.gt.f32.partialorder %v4647_v51, 0.0  ;;  %v4684_v31 = vmul.f32 %v9439_v14, %v4647_v51  ;;  %v4753_v39 = vld [vmem:[#allocation4 + $0x3a] sm:$0xff]  ;;  %v4754_v1 = vld [vmem:[#allocation4 + $0x42] sm:$0x1f] }
 0x5dc   : > { %v4738_v30 = vld [vmem:[#allocation4 + $0x40] sm:$0x1f]  ;;  %4720 = vst.msk [vmem:[#allocation4 + $0x50] sm:$0xff] %vm4709_vm6, %v4701_v52  ;;  %v4588_v18 = vpop.f32.mrb[20].mxu1  ;;  %v9525_v57 = vpack.c.bf16 %v4753_v39, %v4752_v63  ;;  %v4759_v10 = vpack.c.bf16 %v4754_v1, %v4754_v1  ;;  %v4955_v63 = vld [vmem:[#allocation4 + $0x34] sm:$0xff] }
 0x5dd   : > { %v4702_v35 = vsel %vm4665_vm7, %v4647_v51, %v4684_v31  ;;  %v4623_v37 = vadd.f32 %v4588_v18, %v9412_v3  ;;  %v7346_v11 = vpop.f32.mrb[21].mxu1  ;;  %v4743_v60 = vpack.c.bf16 %v4738_v30, %v4738_v30  ;;  %v5073_v49 = vld [vmem:[#allocation4 + $0x48] sm:$0xff]  ;;  %v5072_v13 = vld [vmem:[#allocation4 + $0x40] sm:$0xff] }
 0x5de   : > { %4721 = vst.msk [vmem:[#allocation4 + $0x58] sm:$0xff] %vm4709_vm6, %v4702_v35  ;;  %v4591_v24 = vpop.f32.mrb[22].mxu1  ;;  %7371 = vmatmul.mubr.msk.bf16.gmra.mrb[76].mxu0 %vm4709_vm6, %v9525_v57  ;;  %v4956_v31 = vld [vmem:[#allocation4 + $0x3c] sm:$0xff]  ;;  %v4957_v35 = vld [vmem:[#allocation4 + $0x44] sm:$0x1f] }
 0x5df   : > { %v4648_v53 = vadd.f32 %v9436_v33, %v4623_v37  ;;  %v4624_v43 = vadd.f32 %v4591_v24, %v9415_v21  ;;  %v7347_v32 = vpop.f32.mrb[23].mxu1  ;;  %7374 = vmatprep.mubr.msk.bf16.mxu0 %vm7911_vm4, %v9876_v15  ;;  %v4961_v30 = vpack.c.bf16 %v4956_v31, %v4955_v63  ;;  %v4962_v37 = vpack.c.bf16 %v4957_v35, %v4957_v35  ;;  %v7841_v11 = vld [vmem:[%s9865_s6 + $0x38] sm:$0xff]   ;;  %v7840_v24 = vld [vmem:[%s9865_s6 + $0x30] sm:$0xff]   ;;  %v7843_v31 = vld [vmem:[%s9867_s8] sm:$0xff]  }
 0x5e0   : > { %7397 = vmatmul.mubr.msk.bf16.gmra.mrb[48].mxu1 %vm4709_vm6, %v4743_v60  ;;  %v5544_v32 = vld [vmem:[#allocation4 + $0x42] sm:$0xff] }
 0x5e1   : > { %vm4666_vm8 = vcmp.gt.f32.partialorder %v4648_v53, 0.0  ;;  %v4685_v3 = vmul.f32 %v9439_v14, %v4648_v53  ;;  %v4649_v6 = vadd.f32 %v9436_v33, %v4624_v43  ;;  %7424 = vmatprep.mubr.msk.bf16.mxu1 %vm7911_vm4, %v9876_v15 }
 0x5e3   : > { %v4703_v46 = vsel %vm4666_vm8, %v4648_v53, %v4685_v3  ;;  %vm4667_vm9 = vcmp.gt.f32.partialorder %v4649_v6, 0.0  ;;  %v4686_v34 = vmul.f32 %v9439_v14, %v4649_v6  ;;  %v5074_v51 = vld [vmem:[#allocation4 + $0x50] sm:$0xff]  ;;  %v5310_v53 = vld [vmem:[#allocation4 + $0x44] sm:$0xff] }
 0x5e4   : > { %4722 = vst.msk [vmem:[#allocation4 + $0x60] sm:$0xff] %vm4709_vm6, %v4703_v46  ;;  %v4596_v21 = vpop.f32.mrb[24].mxu1  ;;  %v5311_v60 = vld [vmem:[#allocation4 + $0x4c] sm:$0xff] }
 0x5e5   : > { %v4704_v42 = vsel %vm4667_vm9, %v4649_v6, %v4686_v34  ;;  %v4625_v29 = vadd.f32 %v4596_v21, %v9420_v26  ;;  %v7350_v7 = vpop.f32.mrb[25].mxu1  ;;  %v5075_v16 = vld [vmem:[#allocation4 + $0x58] sm:$0xff]  ;;  %v9627_v43 = vpack.c.bf16 %v5311_v60, %v5310_v53 }
 0x5e6   : > { %4723 = vst.msk [vmem:[#allocation4 + $0x68] sm:$0xff] %vm4709_vm6, %v4704_v42  ;;  %v4599_v56 = vpop.f32.mrb[26].mxu1  ;;  %7375 = vmatmul.mubr.msk.bf16.gmra.mrb[80].mxu0 %vm4709_vm6, %v4759_v10  ;;  %v9590_v52 = vpack.c.bf16 %v5075_v16, %v5074_v51  ;;  %v5312_v1 = vld [vmem:[#allocation4 + $0x54] sm:$0xff] }
 0x5e7   : > { %v4650_v2 = vadd.f32 %v9436_v33, %v4625_v29  ;;  %v4626_v19 = vadd.f32 %v4599_v56, %v9423_v9  ;;  %v7351_v25 = vpop.f32.mrb[27].mxu1  ;;  %7402 = vmatprep.mubr.msk.bf16.mxu0 %vm7911_vm4, %v9876_v15  ;;  %v5193_v34 = vld [vmem:[#allocation4 + $0x52] sm:$0xff] }
 0x5e8   : > { %7425 = vmatmul.mubr.msk.bf16.vlgmr.msra.gmra.mrb[52].mxu1 %vm4709_vm6, %v9489_v45  ;;  %v7838_v45 = vld [vmem:[%s9865_s6 + $0x20] sm:$0xff]  }
 0x5e9   : > { %vm4668_vm3 = vcmp.gt.f32.partialorder %v4650_v2, 0.0  ;;  %v4687_v26 = vmul.f32 %v9439_v14, %v4650_v2  ;;  %v4651_v38 = vadd.f32 %v9436_v33, %v4626_v19  ;;  %7428 = vmatprep.mubr.msk.bf16.mxu1 %vm7911_vm4, %v9876_v15  ;;  %7467 = vmatpush3.bf16.msra.mxu1 %v7839_v0  ;;  %v7842_v0 = vld [vmem:[%s9865_s6 + $0x40] sm:$0xff]  }
 0x5ea   : > { %7510 = vmatprep.subr.bf16.mxu1 %v9876_v15 }
 0x5eb   : > { %v4705_v9 = vsel %vm4668_vm3, %v4650_v2, %v4687_v26  ;;  %vm4669_vm10 = vcmp.gt.f32.partialorder %v4651_v38, 0.0  ;;  %v4688_v8 = vmul.f32 %v9439_v14, %v4651_v38  ;;  %v5076_v39 = vld [vmem:[#allocation4 + $0x60] sm:$0x1f] }
 0x5ec   : > { %4724 = vst.msk [vmem:[#allocation4 + $0x70] sm:$0xff] %vm4709_vm6, %v4705_v9  ;;  %v4604_v50 = vpop.f32.mrb[28].mxu1  ;;  %v5081_v18 = vpack.c.bf16 %v5076_v39, %v5076_v39  ;;  %v5313_v3 = vld [vmem:[#allocation4 + $0x5c] sm:$0xff] }
 0x5ed   : > { %v4706_v20 = vsel %vm4669_vm10, %v4651_v38, %v4688_v8  ;;  %v4627_v55 = vadd.f32 %v4604_v50, %v9428_v41  ;;  %v7354_v48 = vpop.f32.mrb[29].mxu1  ;;  %v5318_v46 = vpack.c.bf16 %v5313_v3, %v5312_v1  ;;  %v5314_v21 = vld [vmem:[#allocation4 + $0x64] sm:$0x1f]  ;;  %vm6044_vm10 = vcmask 39936  }
 0x5ee   : > { %4725 = vst.msk [vmem:[#allocation4 + $0x78] sm:$0xff] %vm4709_vm6, %v4706_v20  ;;  %v4607_v12 = vpop.f32.mrb[30].mxu1  ;;  %7403 = vmatmul.mubr.msk.bf16.vlgmr.msra.gmra.mrb[84].mxu0 %vm4709_vm6, %v4958_v40  ;;  %v5319_v42 = vpack.c.bf16 %v5314_v21, %v5314_v21  ;;  %v5195_v29 = vld [vmem:[#allocation4 + $0x62] sm:$0x1f]  ;;  %v5430_v25 = vld [vmem:[#allocation4 + $0x68] sm:$0xff] }
 0x5ef   : > { %v4652_v58 = vadd.f32 %v9436_v33, %v4627_v55  ;;  %v4628_v22 = vadd.f32 %v4607_v12, %v9431_v54  ;;  %7445 = vmatpush3.bf16.msra.mxu0 %v7838_v45  ;;  %v7355_v59 = vpop.f32.mrb[31].mxu1  ;;  %7406 = vmatprep.mubr.msk.bf16.mxu0 %vm7911_vm4, %v9876_v15  ;;  %v5200_v7 = vpack.c.bf16 %v5195_v29, %v5195_v29  ;;  %v5548_v2 = vld [vmem:[#allocation4 + $0x62] sm:$0xff] }
 0x5f0   : > { %7429 = vmatmul.mubr.msk.bf16.gmra.mrb[56].mxu1 %vm4709_vm6, %v9511_v61  ;;  %7488 = vmatprep.subr.bf16.mxu0 %v9876_v15  ;;  %v5429_v26 = vld [vmem:[#allocation4 + $0x60] sm:$0xff] }
 0x5f1   : > { %vm4670_vm11 = vcmp.gt.f32.partialorder %v4652_v58, 0.0  ;;  %v4689_v41 = vmul.f32 %v9439_v14, %v4652_v58  ;;  %v4653_v36 = vadd.f32 %v9436_v33, %v4628_v22  ;;  %7432 = vmatprep.mubr.msk.bf16.mxu1 %vm7911_vm4, %v9876_v15  ;;  %v9581_v33 = vpack.c.bf16 %v5073_v49, %v5072_v13 }
 0x5f2   : > { %v5436_v44 = vpack.c.bf16 %v5430_v25, %v5429_v26 }
 0x5f3   : > { %v4707_v54 = vsel %vm4670_vm11, %v4652_v58, %v4689_v41  ;;  %vm4671_vm12 = vcmp.gt.f32.partialorder %v4653_v36, 0.0  ;;  %v4690_v28 = vmul.f32 %v9439_v14, %v4653_v36  ;;  %v5307_v14 = vld [vmem:[#allocation4 + $0x2c] sm:$0xff]  ;;  %v5667_v58 = vld [vmem:[#allocation4 + $0x64] sm:$0xff] }
 0x5f4   : > { %4726 = vst.msk [vmem:[#allocation4 + $0x80] sm:$0xff] %vm4709_vm6, %v4707_v54  ;;  %v5315_v47 = vpack.c.bf16 %v5307_v14, %v5306_v17  ;;  %v5549_v56 = vld [vmem:[#allocation4 + $0x6a] sm:$0xff] }
 0x5f5   : > { %v4708_v61 = vsel %vm4671_vm12, %v4653_v36, %v4690_v28  ;;  %v5555_v19 = vpack.c.bf16 %v5549_v56, %v5548_v2  ;;  %v5550_v9 = vld [vmem:[#allocation4 + $0x72] sm:$0xff] }
 0x5f6   : > { %4728 = vst.msk [vmem:[#allocation4 + $0x88] sm:$0x1] %vm4727_vm13, %v4708_v61  ;;  %7407 = vmatmul.mubr.msk.bf16.gmra.mrb[88].mxu0 %vm4709_vm6, %v4959_v62  ;;  %v5432_v23 = vld [vmem:[#allocation4 + $0x78] sm:$0xff]  ;;  %v5431_v45 = vld [vmem:[#allocation4 + $0x70] sm:$0xff] }
 0x5f7   : > { %7410 = vmatprep.mubr.msk.bf16.mxu0 %vm7911_vm4, %v9876_v15  ;;  %v5437_v40 = vpack.c.bf16 %v5432_v23, %v5431_v45  ;;  %v5668_v12 = vld [vmem:[#allocation4 + $0x6c] sm:$0xff]  ;;  %v5669_v41 = vld [vmem:[#allocation4 + $0x74] sm:$0xff] }
 0x5f8   : > { %7433 = vmatmul.mubr.msk.bf16.gmra.mrb[60].mxu1 %vm4709_vm6, %v9581_v33  ;;  %v5674_v22 = vpack.c.bf16 %v5668_v12, %v5667_v58 }
 0x5f9   : > { %7436 = vmatprep.mubr.msk.bf16.mxu1 %vm7911_vm4, %v9876_v15 }
 0x5fb   : > { %v5551_v38 = vld [vmem:[#allocation4 + $0x7a] sm:$0xff]  ;;  %v5552_v50 = vld [vmem:[#allocation4 + $0x82] sm:$0x1f] }
 0x5fc   : > { %v5556_v8 = vpack.c.bf16 %v5551_v38, %v5550_v9  ;;  %v5557_v20 = vpack.c.bf16 %v5552_v50, %v5552_v50  ;;  %v5433_v55 = vld [vmem:[#allocation4 + $0x80] sm:$0x1f] }
 0x5fd   : > { %v5438_v48 = vpack.c.bf16 %v5433_v55, %v5433_v55  ;;  %v5670_v59 = vld [vmem:[#allocation4 + $0x7c] sm:$0xff]  ;;  %v5671_v4 = vld [vmem:[#allocation4 + $0x84] sm:$0x1f] }
 0x5fe   : > { %7411 = vmatmul.mubr.msk.bf16.gmra.mrb[92].mxu0 %vm4709_vm6, %v5315_v47  ;;  %v5675_v36 = vpack.c.bf16 %v5670_v59, %v5669_v41  ;;  %v5676_v54 = vpack.c.bf16 %v5671_v4, %v5671_v4 }
 0x5ff   : > { %7414 = vmatprep.mubr.msk.bf16.mxu0 %vm7911_vm4, %v9876_v15 }
 0x600   : > { %7437 = vmatmul.mubr.msk.bf16.gmra.mrb[64].mxu1 %vm4709_vm6, %v9590_v52 }
 0x601   : > { %7440 = vmatprep.mubr.msk.bf16.mxu1 %vm7911_vm4, %v9876_v15 }
 0x606   : > { %7415 = vmatmul.mubr.msk.bf16.gmra.mrb[96].mxu0 %vm4709_vm6, %v4961_v30 }
 0x607   : > { %7418 = vmatprep.mubr.msk.bf16.mxu0 %vm7911_vm4, %v9876_v15 }
 0x608   : > { %7441 = vmatmul.mubr.msk.bf16.gmra.mrb[68].mxu1 %vm4709_vm6, %v5081_v18 }
 0x609   : > { %7468 = vmatprep.mubr.msk.bf16.mxu1 %vm7911_vm4, %v9876_v15 }
 0x60e   : > { %7419 = vmatmul.mubr.msk.bf16.gmra.mrb[100].mxu0 %vm4709_vm6, %v4962_v37 }
 0x60f   : > { %7446 = vmatprep.mubr.msk.bf16.mxu0 %vm7911_vm4, %v9876_v15 }
 0x610   : > { %7469 = vmatmul.mubr.msk.bf16.vlgmr.msra.gmra.mrb[72].mxu1 %vm4709_vm6, %v5315_v47 }
 0x611   : > { %7472 = vmatprep.mubr.msk.bf16.mxu1 %vm7911_vm4, %v9876_v15  ;;  %7511 = vmatpush3.bf16.msra.mxu1 %v7841_v11 }
 0x612   : > { %7554 = vmatprep.subr.bf16.mxu1 %v9876_v15 }
 0x616   : > { %7447 = vmatmul.mubr.msk.bf16.vlgmr.msra.gmra.mrb[104].mxu0 %vm4709_vm6, %v9505_v5  ;;  %v5545_v5 = vld [vmem:[#allocation4 + $0x4a] sm:$0xff] }
 0x617   : > { %7489 = vmatpush3.bf16.msra.mxu0 %v7840_v24  ;;  %7450 = vmatprep.mubr.msk.bf16.mxu0 %vm7911_vm4, %v9876_v15  ;;  %v5553_v6 = vpack.c.bf16 %v5545_v5, %v5544_v32 }
 0x618   : > { %7473 = vmatmul.mubr.msk.bf16.gmra.mrb[76].mxu1 %vm4709_vm6, %v4961_v30  ;;  %7532 = vmatprep.subr.bf16.mxu0 %v9876_v15 }
 0x619   : > { %7476 = vmatprep.mubr.msk.bf16.mxu1 %vm7911_vm4, %v9876_v15 }
 0x61e   : > { %7451 = vmatmul.mubr.msk.bf16.gmra.mrb[108].mxu0 %vm4709_vm6, %v9525_v57  ;;  %v5194_v57 = vld [vmem:[#allocation4 + $0x5a] sm:$0xff] }
 0x61f   : > { %7454 = vmatprep.mubr.msk.bf16.mxu0 %vm7911_vm4, %v9876_v15  ;;  %v5199_v10 = vpack.c.bf16 %v5194_v57, %v5193_v34 }
 0x620   : > { %7477 = vmatmul.mubr.msk.bf16.gmra.mrb[80].mxu1 %vm4709_vm6, %v9627_v43 }
 0x621   : > { %7480 = vmatprep.mubr.msk.bf16.mxu1 %vm7911_vm4, %v9876_v15 }
 0x626   : > { %7455 = vmatmul.mubr.msk.bf16.gmra.mrb[112].mxu0 %vm4709_vm6, %v5553_v6 }
 0x627   : > { %7458 = vmatprep.mubr.msk.bf16.mxu0 %vm7911_vm4, %v9876_v15 }
 0x628   : > { %7481 = vmatmul.mubr.msk.bf16.gmra.mrb[84].mxu1 %vm4709_vm6, %v5318_v46 }
 0x629   : > { %7484 = vmatprep.mubr.msk.bf16.mxu1 %vm7911_vm4, %v9876_v15 }
 0x62e   : > { %7459 = vmatmul.mubr.msk.bf16.gmra.mrb[116].mxu0 %vm4709_vm6, %v5199_v10 }
 0x62f   : > { %7462 = vmatprep.mubr.msk.bf16.mxu0 %vm7911_vm4, %v9876_v15 }
 0x630   : > { %7485 = vmatmul.mubr.msk.bf16.gmra.mrb[88].mxu1 %vm4709_vm6, %v5319_v42 }
 0x631   : > { %7512 = vmatprep.mubr.msk.bf16.mxu1 %vm7911_vm4, %v9876_v15 }
 0x636   : > { %7463 = vmatmul.mubr.msk.bf16.gmra.mrb[120].mxu0 %vm4709_vm6, %v5200_v7 }
 0x637   : > { %7490 = vmatprep.mubr.msk.bf16.mxu0 %vm7911_vm4, %v9876_v15 }
 0x638   : > { %7513 = vmatmul.mubr.msk.bf16.vlgmr.msra.gmra.mrb[92].mxu1 %vm4709_vm6, %v5553_v6 }
 0x639   : > { %7516 = vmatprep.mubr.msk.bf16.mxu1 %vm7911_vm4, %v9876_v15  ;;  %7555 = vmatpush3.bf16.msra.mxu1 %v7843_v31 }
 0x63a   : > { %7556 = vmatprep.subr.bf16.mxu1 %v9876_v15 }
 0x63e   : > { %7491 = vmatmul.mubr.msk.bf16.vlgmr.msra.gmra.mrb[124].mxu0 %vm4709_vm6, %v9581_v33 }
 0x63f   : > { %7533 = vmatpush3.bf16.msra.mxu0 %v7842_v0  ;;  %7494 = vmatprep.mubr.msk.bf16.mxu0 %vm7911_vm4, %v9876_v15  ;;  %v7844_v0 = vld [vmem:[%s9867_s8 + $0x8] sm:$0xff]  }
 0x640   : > { %7517 = vmatmul.mubr.msk.bf16.gmra.mrb[96].mxu1 %vm4709_vm6, %v5199_v10 }
 0x641   : > { %7520 = vmatprep.mubr.msk.bf16.mxu1 %vm7911_vm4, %v9876_v15  ;;  %7557 = vmatpush3.bf16.msra.mxu1 %v7844_v0 }
 0x646   : > { %7495 = vmatmul.mubr.msk.bf16.gmra.mrb[128].mxu0 %vm4709_vm6, %v9590_v52 }
 0x647   : > { %7498 = vmatprep.mubr.msk.bf16.mxu0 %vm7911_vm4, %v9876_v15 }
 0x648   : > { %7521 = vmatmul.mubr.msk.bf16.gmra.mrb[100].mxu1 %vm4709_vm6, %v5555_v19 }
 0x649   : > { %7524 = vmatprep.mubr.msk.bf16.mxu1 %vm7911_vm4, %v9876_v15 }
 0x64e   : > { %7499 = vmatmul.mubr.msk.bf16.gmra.mrb[132].mxu0 %vm4709_vm6, %v5436_v44 }
 0x64f   : > { %7502 = vmatprep.mubr.msk.bf16.mxu0 %vm7911_vm4, %v9876_v15 }
 0x650   : > { %7525 = vmatmul.mubr.msk.bf16.gmra.mrb[104].mxu1 %vm4709_vm6, %v5556_v8 }
 0x651   : > { %7528 = vmatprep.mubr.msk.bf16.mxu1 %vm7911_vm4, %v9876_v15 }
 0x656   : > { %7503 = vmatmul.mubr.msk.bf16.gmra.mrb[136].mxu0 %vm4709_vm6, %v5437_v40 }
 0x657   : > { %7506 = vmatprep.mubr.msk.bf16.mxu0 %vm7911_vm4, %v9876_v15 }
 0x658   : > { %7529 = vmatmul.mubr.msk.bf16.gmra.mrb[108].mxu1 %vm4709_vm6, %v5557_v20 }
 0x659   : > { %7558 = vmatprep.mubr.msk.bf16.mxu1 %vm7911_vm4, %v9876_v15 }
 0x65e   : > { %7507 = vmatmul.mubr.msk.bf16.gmra.mrb[140].mxu0 %vm4709_vm6, %v5438_v48 }
 0x65f   : > { %7534 = vmatprep.mubr.msk.bf16.mxu0 %vm7911_vm4, %v9876_v15 }
 0x666   : > { %7535 = vmatmul.mubr.msk.bf16.vlgmr.msra.gmra.mrb[144].mxu0 %vm4709_vm6, %v9627_v43 }
 0x667   : > { %7538 = vmatprep.mubr.msk.bf16.mxu0 %vm7911_vm4, %v9876_v15 }
 0x66e   : > { %7539 = vmatmul.mubr.msk.bf16.gmra.mrb[148].mxu0 %vm4709_vm6, %v5318_v46 }
 0x66f   : > { %7542 = vmatprep.mubr.msk.bf16.mxu0 %vm7911_vm4, %v9876_v15 }
 0x676   : > { %7543 = vmatmul.mubr.msk.bf16.gmra.mrb[152].mxu0 %vm4709_vm6, %v5674_v22 }
 0x677   : > { %7546 = vmatprep.mubr.msk.bf16.mxu0 %vm7911_vm4, %v9876_v15 }
 0x67e   : > { %7547 = vmatmul.mubr.msk.bf16.gmra.mrb[156].mxu0 %vm4709_vm6, %v5675_v36 }
 0x67f   : > { %7550 = vmatprep.mubr.msk.bf16.mxu0 %vm7911_vm4, %v9876_v15 }
 0x686   : > { %7551 = vmatmul.mubr.msk.bf16.gmra.mrb[160].mxu0 %vm4709_vm6, %v5676_v54 }
 0x693   : > { %v4911_v28 = vpop.f32.mrb[32].mxu1 }
 0x694   : > { %v7382_v27 = vpop.f32.mrb[33].mxu1 }
 0x695   : > { %v4914_v49 = vpop.f32.mrb[34].mxu1 }
 0x696   : > { %v7383_v62 = vpop.f32.mrb[35].mxu1 }
 0x699   : > { %v4818_v61 = vpop.f32.mrb[64].mxu0 }
 0x69a   : > { %v4912_v13 = vadd.f32 %v4911_v28, %v4818_v61  ;;  %v7360_v33 = vpop.f32.mrb[65].mxu0 }
 0x69b   : > { %v4821_v14 = vpop.f32.mrb[66].mxu0  ;;  %v4919_v17 = vpop.f32.mrb[36].mxu1 }
 0x69c   : > { %v4915_v16 = vadd.f32 %v4914_v49, %v4821_v14  ;;  %v7361_v47 = vpop.f32.mrb[67].mxu0  ;;  %v7386_v51 = vpop.f32.mrb[37].mxu1 }
 0x69d   : > { %v4922_v52 = vpop.f32.mrb[38].mxu1 }
 0x69e   : > { %v7387_v63 = vpop.f32.mrb[39].mxu1 }
 0x6a1   : > { %v4826_v39 = vpop.f32.mrb[68].mxu0 }
 0x6a2   : > { %v4920_v30 = vadd.f32 %v4919_v17, %v4826_v39  ;;  %v7364_v18 = vpop.f32.mrb[69].mxu0 }
 0x6a3   : > { %v4829_v35 = vpop.f32.mrb[70].mxu0  ;;  %v4927_v37 = vpop.f32.mrb[40].mxu1 }
 0x6a4   : > { %v4923_v11 = vadd.f32 %v4922_v52, %v4829_v35  ;;  %v7365_v24 = vpop.f32.mrb[71].mxu0  ;;  %v7390_v60 = vpop.f32.mrb[41].mxu1 }
 0x6a5   : > { %v4930_v53 = vpop.f32.mrb[42].mxu1 }
 0x6a6   : > { %v7391_v43 = vpop.f32.mrb[43].mxu1 }
 0x6a9   : > { %v4834_v5 = vpop.f32.mrb[72].mxu0 }
 0x6aa   : > { %v4928_v32 = vadd.f32 %v4927_v37, %v4834_v5  ;;  %v7368_v3 = vpop.f32.mrb[73].mxu0 }
 0x6ab   : > { %v4837_v6 = vpop.f32.mrb[74].mxu0  ;;  %v4935_v1 = vpop.f32.mrb[44].mxu1 }
 0x6ac   : > { %v4931_v46 = vadd.f32 %v4930_v53, %v4837_v6  ;;  %v7369_v57 = vpop.f32.mrb[75].mxu0  ;;  %v7394_v34 = vpop.f32.mrb[45].mxu1 }
 0x6ad   : > { %v4938_v21 = vpop.f32.mrb[46].mxu1 }
 0x6ae   : > { %v7395_v10 = vpop.f32.mrb[47].mxu1 }
 0x6b1   : > { %v4842_v42 = vpop.f32.mrb[76].mxu0 }
 0x6b2   : > { %v4936_v29 = vadd.f32 %v4935_v1, %v4842_v42  ;;  %v7372_v7 = vpop.f32.mrb[77].mxu0 }
 0x6b3   : > { %v4845_v56 = vpop.f32.mrb[78].mxu0  ;;  %v4943_v2 = vpop.f32.mrb[48].mxu1 }
 0x6b4   : > { %v4939_v19 = vadd.f32 %v4938_v21, %v4845_v56  ;;  %v7373_v25 = vpop.f32.mrb[79].mxu0  ;;  %v7398_v26 = vpop.f32.mrb[49].mxu1 }
 0x6b5   : > { %v4946_v38 = vpop.f32.mrb[50].mxu1 }
 0x6b6   : > { %v7399_v44 = vpop.f32.mrb[51].mxu1 }
 0x6b9   : > { %v4850_v9 = vpop.f32.mrb[80].mxu0 }
 0x6ba   : > { %v4944_v8 = vadd.f32 %v4943_v2, %v4850_v9  ;;  %v7376_v23 = vpop.f32.mrb[81].mxu0 }
 0x6bb   : > { %v4853_v45 = vpop.f32.mrb[82].mxu0  ;;  %v5140_v50 = vpop.f32.mrb[52].mxu1 }
 0x6bc   : > { %v7377_v40 = vpop.f32.mrb[83].mxu0  ;;  %v7426_v20 = vpop.f32.mrb[53].mxu1 }
 0x6bd   : > { %v5143_v55 = vpop.f32.mrb[54].mxu1 }
 0x6be   : > { %v7427_v48 = vpop.f32.mrb[55].mxu1 }
 0x6c1   : > { %v5021_v12 = vpop.f32.mrb[84].mxu0 }
 0x6c2   : > { %v5059_v58 = vadd.f32 %v5021_v12, %v4912_v13  ;;  %v7404_v22 = vpop.f32.mrb[85].mxu0 }
 0x6c3   : > { %v5024_v59 = vpop.f32.mrb[86].mxu0  ;;  %v5148_v41 = vpop.f32.mrb[56].mxu1 }
 0x6c4   : > { %v5060_v36 = vadd.f32 %v5024_v59, %v4915_v16  ;;  %v7405_v4 = vpop.f32.mrb[87].mxu0  ;;  %v7430_v54 = vpop.f32.mrb[57].mxu1  ;;  %v5178_v28 = vadd.f32 %v5140_v50, %v5059_v58 }
 0x6c5   : > { %v5151_v27 = vpop.f32.mrb[58].mxu1 }
 0x6c6   : > { %v7431_v49 = vpop.f32.mrb[59].mxu1  ;;  %v5179_v62 = vadd.f32 %v5143_v55, %v5060_v36 }
 0x6c9   : > { %v5029_v61 = vpop.f32.mrb[88].mxu0 }
 0x6ca   : > { %v5061_v33 = vadd.f32 %v5029_v61, %v4920_v30  ;;  %v7408_v14 = vpop.f32.mrb[89].mxu0 }
 0x6cb   : > { %v5032_v17 = vpop.f32.mrb[90].mxu0  ;;  %v5156_v47 = vpop.f32.mrb[60].mxu1 }
 0x6cc   : > { %v5062_v51 = vadd.f32 %v5032_v17, %v4923_v11  ;;  %v7409_v52 = vpop.f32.mrb[91].mxu0  ;;  %v7434_v31 = vpop.f32.mrb[61].mxu1  ;;  %v5180_v63 = vadd.f32 %v5148_v41, %v5061_v33 }
 0x6cd   : > { %v5159_v13 = vpop.f32.mrb[62].mxu1 }
 0x6ce   : > { %v7435_v39 = vpop.f32.mrb[63].mxu1  ;;  %v5181_v18 = vadd.f32 %v5151_v27, %v5062_v51 }
 0x6d1   : > { %v5037_v35 = vpop.f32.mrb[92].mxu0 }
 0x6d2   : > { %v5063_v16 = vadd.f32 %v5037_v35, %v4928_v32  ;;  %v7412_v37 = vpop.f32.mrb[93].mxu0 }
 0x6d3   : > { %v5040_v24 = vpop.f32.mrb[94].mxu0  ;;  %v5164_v60 = vpop.f32.mrb[64].mxu1 }
 0x6d4   : > { %v5064_v53 = vadd.f32 %v5040_v24, %v4931_v46  ;;  %v7413_v43 = vpop.f32.mrb[95].mxu0  ;;  %v7438_v5 = vpop.f32.mrb[65].mxu1  ;;  %v5182_v3 = vadd.f32 %v5156_v47, %v5063_v16 }
 0x6d5   : > { %v5167_v30 = vpop.f32.mrb[66].mxu1 }
 0x6d6   : > { %v7439_v6 = vpop.f32.mrb[67].mxu1  ;;  %v5183_v1 = vadd.f32 %v5159_v13, %v5064_v53 }
 0x6d9   : > { %v5045_v57 = vpop.f32.mrb[96].mxu0 }
 0x6da   : > { %v5065_v11 = vadd.f32 %v5045_v57, %v4936_v29  ;;  %v7416_v34 = vpop.f32.mrb[97].mxu0 }
 0x6db   : > { %v5048_v21 = vpop.f32.mrb[98].mxu0  ;;  %v5172_v10 = vpop.f32.mrb[68].mxu1 }
 0x6dc   : > { %v5066_v42 = vadd.f32 %v5048_v21, %v4939_v19  ;;  %v7417_v7 = vpop.f32.mrb[99].mxu0  ;;  %v7442_v0 = vpop.f32.mrb[69].mxu1  ;;  %v5184_v56 = vadd.f32 %v5164_v60, %v5065_v11 }
 0x6dd   : > { %v5175_v32 = vpop.f32.mrb[70].mxu1 }
 0x6de   : > { %v7443_v2 = vpop.f32.mrb[71].mxu1  ;;  %v5185_v25 = vadd.f32 %v5167_v30, %v5066_v42 }
 0x6e1   : > { %v5053_v26 = vpop.f32.mrb[100].mxu0 }
 0x6e2   : > { %v5067_v46 = vadd.f32 %v5053_v26, %v4944_v8  ;;  %v7420_v38 = vpop.f32.mrb[101].mxu0 }
 0x6e3   : > { %v5056_v44 = vpop.f32.mrb[102].mxu0  ;;  %v5378_v9 = vpop.f32.mrb[72].mxu1 }
 0x6e4   : > { %v7421_v23 = vpop.f32.mrb[103].mxu0  ;;  %v7470_v45 = vpop.f32.mrb[73].mxu1  ;;  %v5186_v50 = vadd.f32 %v5172_v10, %v5067_v46 }
 0x6e5   : > { %v5381_v40 = vpop.f32.mrb[74].mxu1 }
 0x6e6   : > { %v7471_v29 = vpop.f32.mrb[75].mxu1 }
 0x6e9   : > { %v5259_v20 = vpop.f32.mrb[104].mxu0 }
 0x6ea   : > { %v5297_v55 = vadd.f32 %v5259_v20, %v5178_v28  ;;  %v7448_v48 = vpop.f32.mrb[105].mxu0 }
 0x6eb   : > { %v5262_v19 = vpop.f32.mrb[106].mxu0  ;;  %v5386_v12 = vpop.f32.mrb[76].mxu1 }
 0x6ec   : > { %v5298_v58 = vadd.f32 %v5262_v19, %v5179_v62  ;;  %v7449_v22 = vpop.f32.mrb[107].mxu0  ;;  %v7474_v59 = vpop.f32.mrb[77].mxu1  ;;  %v5416_v41 = vadd.f32 %v5378_v9, %v5297_v55 }
 0x6ed   : > { %v5389_v36 = vpop.f32.mrb[78].mxu1 }
 0x6ee   : > { %v7475_v4 = vpop.f32.mrb[79].mxu1  ;;  %v5417_v8 = vadd.f32 %v5381_v40, %v5298_v58 }
 0x6f1   : > { %v5267_v54 = vpop.f32.mrb[108].mxu0 }
 0x6f2   : > { %v5299_v27 = vadd.f32 %v5267_v54, %v5180_v63  ;;  %v7452_v49 = vpop.f32.mrb[109].mxu0 }
 0x6f3   : > { %v5270_v61 = vpop.f32.mrb[110].mxu0  ;;  %v5394_v33 = vpop.f32.mrb[80].mxu1 }
 0x6f4   : > { %v5300_v14 = vadd.f32 %v5270_v61, %v5181_v18  ;;  %v7453_v17 = vpop.f32.mrb[111].mxu0  ;;  %v7478_v47 = vpop.f32.mrb[81].mxu1  ;;  %v5418_v51 = vadd.f32 %v5386_v12, %v5299_v27 }
 0x6f5   : > { %v5397_v28 = vpop.f32.mrb[82].mxu1 }
 0x6f6   : > { %v7479_v52 = vpop.f32.mrb[83].mxu1  ;;  %v5419_v31 = vadd.f32 %v5389_v36, %v5300_v14 }
 0x6f9   : > { %v5275_v13 = vpop.f32.mrb[112].mxu0 }
 0x6fa   : > { %v5301_v62 = vadd.f32 %v5275_v13, %v5182_v3  ;;  %v7456_v39 = vpop.f32.mrb[113].mxu0 }
 0x6fb   : > { %v5278_v35 = vpop.f32.mrb[114].mxu0  ;;  %v5402_v16 = vpop.f32.mrb[84].mxu1 }
 0x6fc   : > { %v5302_v37 = vadd.f32 %v5278_v35, %v5183_v1  ;;  %v7457_v24 = vpop.f32.mrb[115].mxu0  ;;  %v7482_v60 = vpop.f32.mrb[85].mxu1  ;;  %v5420_v53 = vadd.f32 %v5394_v33, %v5301_v62 }
 0x6fd   : > { %v5405_v63 = vpop.f32.mrb[86].mxu1 }
 0x6fe   : > { %v7483_v43 = vpop.f32.mrb[87].mxu1  ;;  %v5421_v5 = vadd.f32 %v5397_v28, %v5302_v37 }
 0x701   : > { %v5283_v30 = vpop.f32.mrb[116].mxu0 }
 0x702   : > { %v5303_v18 = vadd.f32 %v5283_v30, %v5184_v56  ;;  %v7460_v6 = vpop.f32.mrb[117].mxu0 }
 0x703   : > { %v5286_v57 = vpop.f32.mrb[118].mxu0  ;;  %v5410_v11 = vpop.f32.mrb[88].mxu1 }
 0x704   : > { %v5304_v34 = vadd.f32 %v5286_v57, %v5185_v25  ;;  %v7461_v21 = vpop.f32.mrb[119].mxu0  ;;  %v7486_v10 = vpop.f32.mrb[89].mxu1  ;;  %v5422_v42 = vadd.f32 %v5402_v16, %v5303_v18 }
 0x705   : > { %v5413_v3 = vpop.f32.mrb[90].mxu1 }
 0x706   : > { %v7487_v7 = vpop.f32.mrb[91].mxu1  ;;  %v5423_v0 = vadd.f32 %v5405_v63, %v5304_v34 }
 0x709   : > { %v5291_v32 = vpop.f32.mrb[120].mxu0 }
 0x70a   : > { %v5305_v1 = vadd.f32 %v5291_v32, %v5186_v50  ;;  %v7464_v2 = vpop.f32.mrb[121].mxu0 }
 0x70b   : > { %v5294_v26 = vpop.f32.mrb[122].mxu0  ;;  %v5616_v46 = vpop.f32.mrb[92].mxu1 }
 0x70c   : > { %v7465_v38 = vpop.f32.mrb[123].mxu0  ;;  %v7514_v44 = vpop.f32.mrb[93].mxu1  ;;  %v5424_v9 = vadd.f32 %v5410_v11, %v5305_v1 }
 0x70d   : > { %v5619_v23 = vpop.f32.mrb[94].mxu1  ;;  %v9717_v38 = vstv %s6375_s17 }
 0x70e   : > { %v7515_v56 = vpop.f32.mrb[95].mxu1 }
 0x711   : > { %v5497_v45 = vpop.f32.mrb[124].mxu0 }
 0x712   : > { %v5535_v40 = vadd.f32 %v5497_v45, %v5416_v41  ;;  %v7492_v29 = vpop.f32.mrb[125].mxu0 }
 0x713   : > { %v5500_v25 = vpop.f32.mrb[126].mxu0  ;;  %v5624_v20 = vpop.f32.mrb[96].mxu1 }
 0x714   : > { %v5536_v55 = vadd.f32 %v5500_v25, %v5417_v8  ;;  %v7493_v48 = vpop.f32.mrb[127].mxu0  ;;  %v7518_v19 = vpop.f32.mrb[97].mxu1  ;;  %v5654_v12 = vadd.f32 %v5616_v46, %v5535_v40 }
 0x715   : > { %v5627_v58 = vpop.f32.mrb[98].mxu1 }
 0x716   : > { %v7519_v22 = vpop.f32.mrb[99].mxu1  ;;  %v5655_v50 = vadd.f32 %v5619_v23, %v5536_v55 }
 0x719   : > { %v5505_v59 = vpop.f32.mrb[128].mxu0 }
 0x71a   : > { %v5537_v36 = vadd.f32 %v5505_v59, %v5418_v51  ;;  %v7496_v4 = vpop.f32.mrb[129].mxu0 }
 0x71b   : > { %v5508_v54 = vpop.f32.mrb[130].mxu0  ;;  %v5632_v27 = vpop.f32.mrb[100].mxu1 }
 0x71c   : > { %v5538_v49 = vadd.f32 %v5508_v54, %v5419_v31  ;;  %v7497_v61 = vpop.f32.mrb[131].mxu0  ;;  %v7522_v33 = vpop.f32.mrb[101].mxu1  ;;  %v5656_v14 = vadd.f32 %v5624_v20, %v5537_v36 }
 0x71d   : > { %v5635_v41 = vpop.f32.mrb[102].mxu1 }
 0x71e   : > { %v7523_v17 = vpop.f32.mrb[103].mxu1  ;;  %v5657_v47 = vadd.f32 %v5627_v58, %v5538_v49 }
 0x721   : > { %v5513_v28 = vpop.f32.mrb[132].mxu0 }
 0x722   : > { %v5539_v8 = vadd.f32 %v5513_v28, %v5420_v53  ;;  %v7500_v52 = vpop.f32.mrb[133].mxu0 }
 0x723   : > { %v5516_v13 = vpop.f32.mrb[134].mxu0  ;;  %v5640_v62 = vpop.f32.mrb[104].mxu1 }
 0x724   : > { %v5540_v39 = vadd.f32 %v5516_v13, %v5421_v5  ;;  %v7501_v35 = vpop.f32.mrb[135].mxu0  ;;  %v7526_v16 = vpop.f32.mrb[105].mxu1  ;;  %v5658_v37 = vadd.f32 %v5632_v27, %v5539_v8 }
 0x725   : > { %v5643_v51 = vpop.f32.mrb[106].mxu1 }
 0x726   : > { %v7527_v24 = vpop.f32.mrb[107].mxu1  ;;  %v5659_v60 = vadd.f32 %v5635_v41, %v5540_v39 }
 0x729   : > { %v5521_v63 = vpop.f32.mrb[136].mxu0 }
 0x72a   : > { %v5541_v31 = vadd.f32 %v5521_v63, %v5422_v42  ;;  %v7504_v43 = vpop.f32.mrb[137].mxu0 }
 0x72b   : > { %v5524_v30 = vpop.f32.mrb[138].mxu0  ;;  %v5648_v18 = vpop.f32.mrb[108].mxu1 }
 0x72c   : > { %v5542_v6 = vadd.f32 %v5524_v30, %v5423_v0  ;;  %v7505_v57 = vpop.f32.mrb[139].mxu0  ;;  %v7530_v11 = vpop.f32.mrb[109].mxu1  ;;  %v9706_v34 = vadd.f32 %v5640_v62, %v5541_v31  ;;  %v9715_v0 = vld [vmem:[%s9866_s7] ss:$0 sm:$0xff] }
 0x72d   : > { %v5651_v53 = vpop.f32.mrb[110].mxu1 }
 0x72e   : > { %v7531_v21 = vpop.f32.mrb[111].mxu1  ;;  %v9708_v10 = vadd.f32 %v5643_v51, %v5542_v6 }
 0x731   : > { %v5529_v5 = vpop.f32.mrb[140].mxu0 }
 0x732   : > { %v5543_v3 = vadd.f32 %v5529_v5, %v5424_v9  ;;  %v7508_v7 = vpop.f32.mrb[141].mxu0 }
 0x733   : > { %v5532_v32 = vpop.f32.mrb[142].mxu0 }
 0x734   : > { %v7509_v1 = vpop.f32.mrb[143].mxu0  ;;  %v9710_v2 = vadd.f32 %v5648_v18, %v5543_v3 }
 0x739   : > { %v5735_v42 = vpop.f32.mrb[144].mxu0 }
 0x73a   : > { %v5773_v26 = vadd.f32 %v5735_v42, %v5654_v12  ;;  %v7536_v46 = vpop.f32.mrb[145].mxu0 }
 0x73b   : > { %v5738_v44 = vpop.f32.mrb[146].mxu0 }
 0x73c   : > { %v5789_v23 = vadd.f32 %v9715_v0, %v5773_v26  ;;  %v5774_v9 = vadd.f32 %v5738_v44, %v5655_v50  ;;  %v7537_v56 = vpop.f32.mrb[147].mxu0 }
 0x73e   : > { %v5808_v45 = vmul.f32 %v9717_v38, %v5789_v23  ;;  %v5790_v40 = vadd.f32 %v9715_v0, %v5774_v9  ;;  %vm5798_vm6 = vcmp.gt.f32.partialorder %v5789_v23, 0.0 }
 0x740   : > { %vm5799_vm14 = vcmp.gt.f32.partialorder %v5790_v40, 0.0  ;;  %v5809_v29 = vmul.f32 %v9717_v38, %v5790_v40  ;;  %v5817_v20 = vsel %vm5798_vm6, %v5789_v23, %v5808_v45 }
 0x741   : > { %v5743_v25 = vpop.f32.mrb[148].mxu0 }
 0x742   : > { %v5818_v55 = vsel %vm5799_vm14, %v5790_v40, %v5809_v29  ;;  %v5775_v48 = vadd.f32 %v5743_v25, %v5656_v14  ;;  %v7540_v19 = vpop.f32.mrb[149].mxu0 }
 0x743   : > { %v5826_v12 = vpack.c.bf16 %v5818_v55, %v5817_v20  ;;  %v5746_v58 = vpop.f32.mrb[150].mxu0 }
 0x744   : > { %v5791_v22 = vadd.f32 %v9715_v0, %v5775_v48  ;;  %v5776_v50 = vadd.f32 %v5746_v58, %v5657_v47  ;;  %v7541_v59 = vpop.f32.mrb[151].mxu0 }
 0x745   : > { %7559 = vmatmul.mubr.msk.bf16.vlgmr.msra.gmra.mrb[112].mxu1 %vm5854_vm15, %v5826_v12 }
 0x746   : > { %v5810_v36 = vmul.f32 %v9717_v38, %v5791_v22  ;;  %v5792_v4 = vadd.f32 %v9715_v0, %v5776_v50  ;;  %7562 = vmatprep.mubr.msk.bf16.mxu1 %vm7911_vm4, %v9876_v15  ;;  %vm5800_vm0 = vcmp.gt.f32.partialorder %v5791_v22, 0.0 }
 0x748   : > { %vm5801_vm1 = vcmp.gt.f32.partialorder %v5792_v4, 0.0  ;;  %v5811_v54 = vmul.f32 %v9717_v38, %v5792_v4  ;;  %v5819_v49 = vsel %vm5800_vm0, %v5791_v22, %v5810_v36 }
 0x749   : > { %v5751_v27 = vpop.f32.mrb[152].mxu0 }
 0x74a   : > { %v5820_v61 = vsel %vm5801_vm1, %v5792_v4, %v5811_v54  ;;  %v5777_v33 = vadd.f32 %v5751_v27, %v5658_v37  ;;  %v7544_v14 = vpop.f32.mrb[153].mxu0 }
 0x74b   : > { %v5827_v41 = vpack.c.bf16 %v5820_v61, %v5819_v49  ;;  %v5754_v17 = vpop.f32.mrb[154].mxu0 }
 0x74c   : > { %v5793_v47 = vadd.f32 %v9715_v0, %v5777_v33  ;;  %v5778_v28 = vadd.f32 %v5754_v17, %v5659_v60  ;;  %v7545_v8 = vpop.f32.mrb[155].mxu0 }
 0x74d   : > { %7563 = vmatmul.mubr.msk.bf16.gmra.mrb[116].mxu1 %vm5854_vm15, %v5827_v41 }
 0x74e   : > { %v5812_v52 = vmul.f32 %v9717_v38, %v5793_v47  ;;  %v5794_v13 = vadd.f32 %v9715_v0, %v5778_v28  ;;  %7566 = vmatprep.mubr.msk.bf16.mxu1 %vm7911_vm4, %v9876_v15  ;;  %vm5802_vm2 = vcmp.gt.f32.partialorder %v5793_v47, 0.0 }
 0x750   : > { %vm5803_vm5 = vcmp.gt.f32.partialorder %v5794_v13, 0.0  ;;  %v5813_v62 = vmul.f32 %v9717_v38, %v5794_v13  ;;  %v5821_v35 = vsel %vm5802_vm2, %v5793_v47, %v5812_v52  ;;  %vm6053_vm2 = vcmask 36864  }
 0x751   : > { %v5759_v39 = vpop.f32.mrb[156].mxu0 }
 0x752   : > { %v5822_v16 = vsel %vm5803_vm5, %v5794_v13, %v5813_v62  ;;  %v5779_v37 = vadd.f32 %v5759_v39, %v9706_v34  ;;  %v7548_v51 = vpop.f32.mrb[157].mxu0 }
 0x753   : > { %v5828_v24 = vpack.c.bf16 %v5822_v16, %v5821_v35  ;;  %v5762_v60 = vpop.f32.mrb[158].mxu0  ;;  %v6032_v35 = vlaneseq }
 0x754   : > { %v5795_v63 = vadd.f32 %v9715_v0, %v5779_v37  ;;  %v5780_v31 = vadd.f32 %v5762_v60, %v9708_v10  ;;  %v7549_v43 = vpop.f32.mrb[159].mxu0 }
 0x755   : > { %7567 = vmatmul.mubr.msk.bf16.gmra.mrb[120].mxu1 %vm5854_vm15, %v5828_v24 }
 0x756   : > { %v5814_v30 = vmul.f32 %v9717_v38, %v5795_v63  ;;  %v5796_v18 = vadd.f32 %v9715_v0, %v5780_v31  ;;  %7570 = vmatprep.mubr.msk.bf16.mxu1 %vm7911_vm4, %v9876_v15  ;;  %vm5804_vm7 = vcmp.gt.f32.partialorder %v5795_v63, 0.0 }
 0x758   : > { %vm5805_vm8 = vcmp.gt.f32.partialorder %v5796_v18, 0.0  ;;  %v5815_v6 = vmul.f32 %v9717_v38, %v5796_v18  ;;  %v5823_v11 = vsel %vm5804_vm7, %v5795_v63, %v5814_v30 }
 0x759   : > { %v5767_v57 = vpop.f32.mrb[160].mxu0 }
 0x75a   : > { %v5824_v34 = vsel %vm5805_vm8, %v5796_v18, %v5815_v6  ;;  %v5781_v53 = vadd.f32 %v5767_v57, %v9710_v2  ;;  %v7552_v21 = vpop.f32.mrb[161].mxu0  ;;  %v9756_v2 = vld [vmem:[%s9868_s9] ss:$0 sm:$0xff]  ;;  %v9789_v18 = vand.u32 127, %v6032_v35 }
 0x75b   : > { %v5829_v10 = vpack.c.bf16 %v5824_v34, %v5823_v11  ;;  %v5770_v5 = vpop.f32.mrb[162].mxu0 }
 0x75c   : > { %v5797_v3 = vadd.f32 %v9715_v0, %v5781_v53  ;;  %v7553_v7 = vpop.f32.mrb[163].mxu0 }
 0x75d   : > { %7571 = vmatmul.mubr.msk.bf16.gmra.mrb[124].mxu1 %vm5854_vm15, %v5829_v10 }
 0x75e   : > { %vm5806_vm9 = vcmp.gt.f32.partialorder %v5797_v3, 0.0  ;;  %v5816_v32 = vmul.f32 %v9717_v38, %v5797_v3  ;;  %7574 = vmatprep.mubr.msk.bf16.mxu1 %vm7911_vm4, %v9876_v15  ;;  %vm6034_vm4 = vcmp.eq.s32.totalorder %v9789_v18, 0 }
 0x760   : > { %v5825_v1 = vsel %vm5806_vm9, %v5797_v3, %v5816_v32 }
 0x761   : > { %v5830_v42 = vpack.c.bf16 %v5825_v1, %v5825_v1 }
 0x765   : > { %7575 = vmatmul.mubr.msk.bf16.gmra.mrb[128].mxu1 %vm5854_vm15, %v5830_v42 }
 0x818   : > { %v5904_v26 = vpop.f32.mrb[112].mxu1 }
 0x819   : > { %v9759_v0 = vadd.f32 %v9756_v2, %v5904_v26  ;;  %v7560_v46 = vpop.f32.mrb[113].mxu1 }
 0x81a   : > { %v5907_v44 = vpop.f32.mrb[114].mxu1 }
 0x81b   : > { %v5942_v38 = vand.u32 2147483647, %v9759_v0  ;;  %v9763_v23 = vadd.f32 %v9756_v2, %v5907_v44  ;;  %v7561_v15 = vpop.f32.mrb[115].mxu1  ;;  %vm5978_vm3 = vcmp.ge.f32.partialorder %v9759_v0, 0.0 }
 0x81d   : > { %v5951_v9 = vsub.f32 0.0, %v5942_v38  ;;  %v5943_v56 = vand.u32 2147483647, %v9763_v23  ;;  %vm5979_vm11 = vcmp.ge.f32.partialorder %v9763_v23, 0.0 }
 0x81f   : > { %v5960_v45 = vmul.f32 1.442695, %v5951_v9  ;;  %v5952_v40 = vsub.f32 0.0, %v5943_v56 }
 0x820   : > { %v5912_v29 = vpop.f32.mrb[116].mxu1 }
 0x821   : > { %7845 = vpow2.f32 %v5960_v45  ;;  %v5962_v25 = vmul.f32 1.442695, %v5952_v40  ;;  %v9767_v20 = vadd.f32 %v9756_v2, %v5912_v29  ;;  %v7564_v55 = vpop.f32.mrb[117].mxu1 }
 0x822   : > { %v5915_v48 = vpop.f32.mrb[118].mxu1 }
 0x823   : > { %7847 = vpow2.f32 %v5962_v25  ;;  %v5944_v19 = vand.u32 2147483647, %v9767_v20  ;;  %v9771_v12 = vadd.f32 %v9756_v2, %v5915_v48  ;;  %v7565_v58 = vpop.f32.mrb[119].mxu1  ;;  %vm5980_vm12 = vcmp.ge.f32.partialorder %v9767_v20, 0.0 }
 0x825   : > { %v5953_v22 = vsub.f32 0.0, %v5944_v19  ;;  %v5945_v50 = vand.u32 2147483647, %v9771_v12  ;;  %vm5981_vm13 = vcmp.ge.f32.partialorder %v9771_v12, 0.0 }
 0x827   : > { %v5964_v59 = vmul.f32 1.442695, %v5953_v22  ;;  %v5954_v36 = vsub.f32 0.0, %v5945_v50 }
 0x828   : > { %v5920_v4 = vpop.f32.mrb[120].mxu1 }
 0x829   : > { %7849 = vpow2.f32 %v5964_v59  ;;  %v5966_v54 = vmul.f32 1.442695, %v5954_v36  ;;  %v9775_v27 = vadd.f32 %v9756_v2, %v5920_v4  ;;  %v7568_v49 = vpop.f32.mrb[121].mxu1 }
 0x82a   : > { %v5923_v61 = vpop.f32.mrb[122].mxu1 }
 0x82b   : > { %v7846_v33 = vpop.eup %7845  ;;  %7851 = vpow2.f32 %v5966_v54  ;;  %v5946_v14 = vand.u32 2147483647, %v9775_v27  ;;  %v9779_v41 = vadd.f32 %v9756_v2, %v5923_v61  ;;  %v7569_v17 = vpop.f32.mrb[123].mxu1  ;;  %vm5982_vm6 = vcmp.ge.f32.partialorder %v9775_v27, 0.0 }
 0x82c   : > { %v5987_v47 = vadd.f32 1.0, %v7846_v33 }
 0x82d   : > { %v7848_v28 = vpop.eup %7847  ;;  %v5955_v8 = vsub.f32 0.0, %v5946_v14  ;;  %v5947_v52 = vand.u32 2147483647, %v9779_v41  ;;  %vm5983_vm14 = vcmp.ge.f32.partialorder %v9779_v41, 0.0 }
 0x82e   : > { %7853 = vrcp.f32 %v5987_v47  ;;  %v5988_v13 = vadd.f32 1.0, %v7848_v28 }
 0x82f   : > { %v5968_v62 = vmul.f32 1.442695, %v5955_v8  ;;  %v5956_v39 = vsub.f32 0.0, %v5947_v52 }
 0x830   : > { %7855 = vrcp.f32 %v5988_v13  ;;  %v5928_v16 = vpop.f32.mrb[124].mxu1 }
 0x831   : > { %7857 = vpow2.f32 %v5968_v62  ;;  %v5970_v37 = vmul.f32 1.442695, %v5956_v39  ;;  %v9783_v51 = vadd.f32 %v9756_v2, %v5928_v16  ;;  %v7572_v24 = vpop.f32.mrb[125].mxu1 }
 0x832   : > { %v5931_v60 = vpop.f32.mrb[126].mxu1 }
 0x833   : > { %v7850_v63 = vpop.eup %7849  ;;  %7859 = vpow2.f32 %v5970_v37  ;;  %v5948_v31 = vand.u32 2147483647, %v9783_v51  ;;  %v9787_v43 = vadd.f32 %v9756_v2, %v5931_v60  ;;  %v7573_v30 = vpop.f32.mrb[127].mxu1  ;;  %vm5984_vm15 = vcmp.ge.f32.partialorder %v9783_v51, 0.0 }
 0x834   : > { %v5989_v6 = vadd.f32 1.0, %v7850_v63 }
 0x835   : > { %v7852_v57 = vpop.eup %7851  ;;  %v5957_v11 = vsub.f32 0.0, %v5948_v31  ;;  %v5949_v34 = vand.u32 2147483647, %v9787_v43  ;;  %vm5985_vm0 = vcmp.ge.f32.partialorder %v9787_v43, 0.0 }
 0x836   : > { %7861 = vrcp.f32 %v5989_v6  ;;  %v5990_v53 = vadd.f32 1.0, %v7852_v57 }
 0x837   : > { %v5972_v21 = vmul.f32 1.442695, %v5957_v11  ;;  %v5958_v10 = vsub.f32 0.0, %v5949_v34 }
 0x838   : > { %v7854_v5 = vpop.eup %7853  ;;  %7863 = vrcp.f32 %v5990_v53  ;;  %v5936_v3 = vpop.f32.mrb[128].mxu1 }
 0x839   : > { %v6014_v7 = vmul.f32 %v7854_v5, %v7846_v33  ;;  %7865 = vpow2.f32 %v5972_v21  ;;  %v5974_v32 = vmul.f32 1.442695, %v5958_v10  ;;  %v9795_v1 = vadd.f32 %v9756_v2, %v5936_v3  ;;  %v7576_v42 = vpop.f32.mrb[129].mxu1 }
 0x83a   : > { %v7856_v26 = vpop.eup %7855  ;;  %v5939_v46 = vpop.f32.mrb[130].mxu1 }
 0x83b   : > { %v7858_v44 = vpop.eup %7857  ;;  %v6023_v38 = vsel %vm5978_vm3, %v7854_v5, %v6014_v7  ;;  %v6015_v15 = vmul.f32 %v7856_v26, %v7848_v28  ;;  %7867 = vpow2.f32 %v5974_v32  ;;  %v5950_v2 = vand.u32 2147483647, %v9795_v1  ;;  %v7577_v9 = vpop.f32.mrb[131].mxu1 }
 0x83c   : > { %v6035_v56 = vsel %vm6034_vm4, %v6023_v38, %v9759_v0  ;;  %v5991_v45 = vadd.f32 1.0, %v7858_v44  ;;  %vm5986_vm1 = vcmp.ge.f32.partialorder %v9795_v1, 0.0 }
 0x83d   : > { %v7860_v40 = vpop.eup %7859  ;;  %6045 = vst.msk [vmem:[%s9800_s14] sm:$0xff] %vm6044_vm10, %v6035_v56  ;;  %v6024_v29 = vsel %vm5979_vm11, %v7856_v26, %v6015_v15  ;;  %v5959_v25 = vsub.f32 0.0, %v5950_v2 }
 0x83e   : > { %v6036_v55 = vsel %vm6034_vm4, %v6024_v29, %v9763_v23  ;;  %7869 = vrcp.f32 %v5991_v45  ;;  %v5992_v48 = vadd.f32 1.0, %v7860_v40 }
 0x83f   : > { %6046 = vst.msk [vmem:[%s9800_s14 + $0x8] sm:$0xff] %vm6044_vm10, %v6036_v55  ;;  %v5976_v19 = vmul.f32 1.442695, %v5959_v25 }
 0x840   : > { %v7862_v58 = vpop.eup %7861  ;;  %7871 = vrcp.f32 %v5992_v48 }
 0x841   : > { %v6016_v0 = vmul.f32 %v7862_v58, %v7850_v63  ;;  %7873 = vpow2.f32 %v5976_v19 }
 0x842   : > { %v7864_v22 = vpop.eup %7863 }
 0x843   : > { %v7866_v50 = vpop.eup %7865  ;;  %v6025_v59 = vsel %vm5980_vm12, %v7862_v58, %v6016_v0  ;;  %v6017_v36 = vmul.f32 %v7864_v22, %v7852_v57 }
 0x844   : > { %v6037_v23 = vsel %vm6034_vm4, %v6025_v59, %v9767_v20  ;;  %v5993_v4 = vadd.f32 1.0, %v7866_v50 }
 0x845   : > { %v7868_v54 = vpop.eup %7867  ;;  %6047 = vst.msk [vmem:[%s9800_s14 + $0x10] sm:$0xff] %vm6044_vm10, %v6037_v23  ;;  %v6026_v49 = vsel %vm5981_vm13, %v7864_v22, %v6017_v36 }
 0x846   : > { %v6038_v61 = vsel %vm6034_vm4, %v6026_v49, %v9771_v12  ;;  %7875 = vrcp.f32 %v5993_v4  ;;  %v5994_v33 = vadd.f32 1.0, %v7868_v54 }
 0x847   : > { %6048 = vst.msk [vmem:[%s9800_s14 + $0x18] sm:$0xff] %vm6044_vm10, %v6038_v61 }
 0x848   : > { %v7870_v14 = vpop.eup %7869  ;;  %7877 = vrcp.f32 %v5994_v33 }
 0x849   : > { %v6018_v20 = vmul.f32 %v7870_v14, %v7858_v44 }
 0x84a   : > { %v7872_v17 = vpop.eup %7871 }
 0x84b   : > { %v7874_v47 = vpop.eup %7873  ;;  %v6027_v28 = vsel %vm5982_vm6, %v7870_v14, %v6018_v20  ;;  %v6019_v8 = vmul.f32 %v7872_v17, %v7860_v40 }
 0x84c   : > { %v6039_v52 = vsel %vm6034_vm4, %v6027_v28, %v9775_v27  ;;  %v5995_v12 = vadd.f32 1.0, %v7874_v47 }
 0x84d   : > { %6049 = vst.msk [vmem:[%s9800_s14 + $0x20] sm:$0xff] %vm6044_vm10, %v6039_v52  ;;  %v6028_v13 = vsel %vm5983_vm14, %v7872_v17, %v6019_v8 }
 0x84e   : > { %v6040_v62 = vsel %vm6034_vm4, %v6028_v13, %v9779_v41  ;;  %7879 = vrcp.f32 %v5995_v12 }
 0x84f   : > { %6050 = vst.msk [vmem:[%s9800_s14 + $0x28] sm:$0xff] %vm6044_vm10, %v6040_v62 }
 0x850   : > { %v7876_v39 = vpop.eup %7875 }
 0x851   : > { %v6020_v35 = vmul.f32 %v7876_v39, %v7866_v50 }
 0x852   : > { %v7878_v16 = vpop.eup %7877 }
 0x853   : > { %v6029_v27 = vsel %vm5984_vm15, %v7876_v39, %v6020_v35  ;;  %v6021_v37 = vmul.f32 %v7878_v16, %v7868_v54 }
 0x854   : > { %v6041_v24 = vsel %vm6034_vm4, %v6029_v27, %v9783_v51 }
 0x855   : > { %6051 = vst.msk [vmem:[%s9800_s14 + $0x30] sm:$0xff] %vm6044_vm10, %v6041_v24  ;;  %v6030_v41 = vsel %vm5985_vm0, %v7878_v16, %v6021_v37 }
 0x856   : > { %v6042_v60 = vsel %vm6034_vm4, %v6030_v41, %v9787_v43 }
 0x857   : > { %6052 = vst.msk [vmem:[%s9800_s14 + $0x38] sm:$0xff] %vm6044_vm10, %v6042_v60 }
 0x858   : > { %v7880_v63 = vpop.eup %7879 }
 0x859   : > { %v6022_v31 = vmul.f32 %v7880_v63, %v7874_v47 }
 0x85b   : > { %v6031_v30 = vsel %vm5986_vm1, %v7880_v63, %v6022_v31 }
 0x85c   : > { %v6043_v51 = vsel %vm6034_vm4, %v6031_v30, %v9795_v1 }
 0x85d   : > { %6054 = vst.msk [vmem:[%s9800_s14 + $0x40] sm:$0x1f] %vm6053_vm2, %v6043_v51 }
 0x85e PF: > { %s21_s13 = sadd.s32 1, %s7906_s13  }
 0x85f   : > { %p18_p1 = scmp.ge.s32.totalorder %s21_s13, 4  }
 0x861   :  { %20 = sbr.rel (!%p18_p1) target bundleno = 1 (0x1), region = 119 }
 0x868   :  { %6076 = vsyncpa [#allocation6], 1 }
 0x869   :  { %6078 = vsyncpa [#allocation6 + $0x1], 1 }

</bundles_post_ra>
